<compile_context>
chip_gen: v5e
topology: v5e:2x2
jax: 0.10.0
libtpu: 0.0.40
codegen_flags: <defaults>
</compile_context>

<pallas_src>
import jax
import jax.numpy as jnp
from jax.experimental import pallas as pl
from jax.experimental.pallas import tpu as pltpu

EMBED = 32     # embedding_size
H1 = 1024      # fc1 out (also width of each fc2 half)
H2 = 2048      # fc2 out
ES_H = 128     # edit_strength_fc1 out
TN = 512       # output-column tile (grid of 2 -> per-step overhead amortized,
               # still >= 2 steps so v7x dual-TC split / pipelining stays engaged)


def control_mlp_kernel(x_ref, es_ref, w1_ref, b1_ref,
                       w2_ref, b2_ref,
                       ew1_ref, eb1_ref, ew2_ref, eb2_ref, out_ref):
    # ---- main branch fc1 (recomputed per tile; tiny, hidden under w2 DMA) ----
    xb = x_ref[...].astype(jnp.bfloat16)                                      # (B, E)
    h1 = jnp.dot(xb, w1_ref[...], preferred_element_type=jnp.float32) + b1_ref[...]
    h1 = jnp.maximum(h1, 0.0).astype(jnp.bfloat16)                            # (B, 1024) bf16

    # ---- edit-strength branch: relu(Linear(1,128)) -> Linear(128,2) ---------
    es = es_ref[...]                                                          # (B, 1)
    he = jnp.maximum(es * ew1_ref[...] + eb1_ref[...], 0.0)                   # (B, 128)
    es1 = jnp.sum(he * ew2_ref[0:1, :], axis=-1, keepdims=True) + eb2_ref[0]  # (B, 1)
    es2 = jnp.sum(he * ew2_ref[1:2, :], axis=-1, keepdims=True) + eb2_ref[1]  # (B, 1)

    # ---- fc2 on this column tile of both stacked halves, gated epilogue -----
    ya = jnp.dot(h1, w2_ref[0], preferred_element_type=jnp.float32) + b2_ref[0]
    yb = jnp.dot(h1, w2_ref[1], preferred_element_type=jnp.float32) + b2_ref[1]
    out_ref[...] = es1 * ya + es2 * yb                                        # (B, TN)


def control_mlp_forward(x, edit_strength, params):
    B = x.shape[0]
    es_col = edit_strength.reshape(B, 1).astype(jnp.float32)   # == unsqueeze(1)
    n_tiles = H1 // TN                                          # = 2

    def full_spec(arr):
        nd = arr.ndim
        return pl.BlockSpec(arr.shape, lambda j, _nd=nd: (0,) * _nd)

    in_specs = [
        full_spec(x),                                            # x          (B, E)
        full_spec(es_col),                                       # edit str   (B, 1)
        full_spec(params["w1_t"]),                               # fc1 W^T    (E, 1024) bf16
        full_spec(params["b1"]),                                 # fc1 b      (1, 1024)
        pl.BlockSpec((2, H1, TN), lambda j: (0, 0, j)),          # fc2 W^T halves, col tile (bf16)
        pl.BlockSpec((2, 1, TN), lambda j: (0, 0, j)),           # fc2 b halves, col tile
        full_spec(params["ew1_t"]),                              # es_fc1 W^T (1, 128)
        full_spec(params["eb1"]),                                # es_fc1 b   (1, 128)
        full_spec(params["ew2"]),                                # es_fc2 W   (2, 128)
        pl.BlockSpec(memory_space=pltpu.MemorySpace.SMEM),       # es_fc2 b   (2,) scalars
    ]

    # Advisory cost estimate: this call is HBM-stream bound, not compute bound.
    bytes_accessed = (
        params["w2_t"].size * 2 + params["w1_t"].size * 2       # bf16 weights
        + (params["b1"].size + params["b2"].size
           + params["ew1_t"].size + params["eb1"].size
           + params["ew2"].size + params["eb2"].size) * 4       # f32 params
        + (x.size + es_col.size + B * H1) * 4                   # activations + out
    )
    flops = 2 * B * (EMBED * H1 + H1 * H2 + 1 * ES_H + ES_H * 2)

    return pl.pallas_call(
        control_mlp_kernel,
        out_shape=jax.ShapeDtypeStruct((B, H1), jnp.float32),
        grid=(n_tiles,),
        in_specs=in_specs,
        out_specs=pl.BlockSpec((B, TN), lambda j: (0, j)),
        compiler_params=pltpu.CompilerParams(
            dimension_semantics=("parallel",)),
        cost_estimate=pl.CostEstimate(
            flops=flops, transcendentals=0, bytes_accessed=bytes_accessed),
    )(x, es_col,
      params["w1_t"], params["b1"],
      params["w2_t"], params["b2"],
      params["ew1_t"], params["eb1"],
      params["ew2"], params["eb2"])


def init_params(key, embed):
    # Deterministic PyTorch-style init: U(-1/sqrt(fan_in), +1/sqrt(fan_in)).
    ks = jax.random.split(key, 8)

    def lin(kw, kb, fan_in, fan_out):
        bound = 1.0 / (fan_in ** 0.5)
        w = jax.random.uniform(kw, (fan_out, fan_in), jnp.float32, -bound, bound)
        b = jax.random.uniform(kb, (fan_out,), jnp.float32, -bound, bound)
        return w, b

    w1, b1 = lin(ks[0], ks[1], embed, H1)
    w2, b2 = lin(ks[2], ks[3], H1, H2)
    ew1, eb1 = lin(ks[4], ks[5], 1, ES_H)
    ew2, eb2 = lin(ks[6], ks[7], ES_H, 2)

    w2_t = w2.T                                   # (1024, 2048)
    return {
        "w1_t": w1.T.astype(jnp.bfloat16),        # (E, 1024) bf16 (streamed)
        "b1": b1.reshape(1, H1),                  # f32
        # fc2 halves stacked -> single weight DMA per grid step.
        "w2_t": jnp.stack([w2_t[:, :H1], w2_t[:, H1:]]).astype(jnp.bfloat16),  # (2,1024,1024)
        "b2": jnp.stack([b2[:H1].reshape(1, H1), b2[H1:].reshape(1, H1)]),      # (2,1,1024)
        "ew1_t": ew1.T,                           # (1, 128) f32
        "eb1": eb1.reshape(1, ES_H),
        "ew2": ew2,                               # (2, 128) f32
        "eb2": eb2,                               # (2,) f32 -> SMEM scalars
    }


def reference_forward(x, edit_strength, p):
    # Pure-JAX reference with the same bf16 weight / f32-accumulate numerics.
    h1 = jnp.maximum(
        jnp.dot(x.astype(jnp.bfloat16), p["w1_t"],
                preferred_element_type=jnp.float32) + p["b1"], 0.0)
    h1b = h1.astype(jnp.bfloat16)
    ya = jnp.dot(h1b, p["w2_t"][0], preferred_element_type=jnp.float32) + p["b2"][0]
    yb = jnp.dot(h1b, p["w2_t"][1], preferred_element_type=jnp.float32) + p["b2"][1]
    he = jnp.maximum(edit_strength.reshape(-1, 1) @ p["ew1_t"] + p["eb1"], 0.0)
    e = he @ p["ew2"].T + p["eb2"]
    return e[:, 0:1] * ya + e[:, 1:2] * yb


if __name__ == "__main__":
    key = jax.random.PRNGKey(0)
    k_params, k_x, k_es = jax.random.split(key, 3)

    B = 8
    params = init_params(k_params, EMBED)
    x = jax.random.normal(k_x, (B, EMBED), jnp.float32)
    edit_strength = jax.random.uniform(k_es, (B,), jnp.float32)

    out = control_mlp_forward(x, edit_strength, params)
    out = jax.block_until_ready(out)

    ref = reference_forward(x, edit_strength, params)
    assert out.shape == (B, H1), out.shape
    assert jnp.allclose(out, ref, atol=2e-3, rtol=2e-3), "mismatch vs reference"
    print("KERNEL_OK")
</pallas_src>

<mosaic_0001>
module attributes {stable_mosaic.version = 11 : i64} {
  func.func @control_mlp_kernel(%arg0: i32, %arg1: memref<8x32xf32, #tpu.memory_space<vmem>>, %arg2: memref<8x1xf32, #tpu.memory_space<vmem>>, %arg3: memref<32x1024xbf16, #tpu.memory_space<vmem>>, %arg4: memref<1x1024xf32, #tpu.memory_space<vmem>>, %arg5: memref<2x1024x512xbf16, #tpu.memory_space<vmem>>, %arg6: memref<2x1x512xf32, #tpu.memory_space<vmem>>, %arg7: memref<1x128xf32, #tpu.memory_space<vmem>>, %arg8: memref<1x128xf32, #tpu.memory_space<vmem>>, %arg9: memref<2x128xf32, #tpu.memory_space<vmem>>, %arg10: memref<2xf32, #tpu.memory_space<smem>>, %arg11: memref<8x512xf32, #tpu.memory_space<vmem>>) attributes {dimension_semantics = [#tpu.dimension_semantics<parallel>], iteration_bounds = array<i64: 2>, scalar_prefetch = 0 : i64, scratch_operands = 0 : i64, tpu.core_type = #tpu.core_type<tc>, window_params = [{pipeline_mode = #tpu.pipeline_mode<synchronous>, transform_indices = @transform_0, window_bounds = array<i64: 8, 32>}, {pipeline_mode = #tpu.pipeline_mode<synchronous>, transform_indices = @transform_1, window_bounds = array<i64: 8, 1>}, {pipeline_mode = #tpu.pipeline_mode<synchronous>, transform_indices = @transform_2, window_bounds = array<i64: 32, 1024>}, {pipeline_mode = #tpu.pipeline_mode<synchronous>, transform_indices = @transform_3, window_bounds = array<i64: 1, 1024>}, {transform_indices = @transform_4, window_bounds = array<i64: 2, 1024, 512>}, {transform_indices = @transform_5, window_bounds = array<i64: 2, 1, 512>}, {pipeline_mode = #tpu.pipeline_mode<synchronous>, transform_indices = @transform_6, window_bounds = array<i64: 1, 128>}, {pipeline_mode = #tpu.pipeline_mode<synchronous>, transform_indices = @transform_7, window_bounds = array<i64: 1, 128>}, {pipeline_mode = #tpu.pipeline_mode<synchronous>, transform_indices = @transform_8, window_bounds = array<i64: 2, 128>}, {transform_indices = @transform_9, window_bounds = array<i64: 2>}, {transform_indices = @transform_10, window_bounds = array<i64: 8, 512>}]} {
    %c0 = arith.constant 0 : index
    %c0_0 = arith.constant 0 : index
    %0 = vector.load %arg1[%c0, %c0_0] : memref<8x32xf32, #tpu.memory_space<vmem>>, vector<8x32xf32>
    %1 = arith.truncf %0 : vector<8x32xf32> to vector<8x32xbf16>
    %c0_1 = arith.constant 0 : index
    %c0_2 = arith.constant 0 : index
    %2 = vector.load %arg3[%c0_1, %c0_2] : memref<32x1024xbf16, #tpu.memory_space<vmem>>, vector<32x1024xbf16>
    %cst = arith.constant dense<0.000000e+00> : vector<8x1024xf32>
    %3 = tpu.matmul %1, %2, %cst {dimension_numbers = #tpu.dot_dimension_numbers<[1], [0], [0], [1], [0, 0, 1, 1], [], []>} : vector<8x32xbf16>, vector<32x1024xbf16>, vector<8x1024xf32> -> vector<8x1024xf32>
    %c0_3 = arith.constant 0 : index
    %c0_4 = arith.constant 0 : index
    %4 = vector.load %arg4[%c0_3, %c0_4] : memref<1x1024xf32, #tpu.memory_space<vmem>>, vector<1x1024xf32>
    %5 = vector.broadcast %4 : vector<1x1024xf32> to vector<8x1024xf32>
    %6 = arith.addf %3, %5 : vector<8x1024xf32>
    %cst_5 = arith.constant 0.000000e+00 : f32
    %7 = vector.broadcast %cst_5 : f32 to vector<8x1024xf32>
    %8 = arith.maximumf %6, %7 : vector<8x1024xf32>
    %9 = arith.truncf %8 : vector<8x1024xf32> to vector<8x1024xbf16>
    %c0_6 = arith.constant 0 : index
    %c0_7 = arith.constant 0 : index
    %10 = vector.load %arg2[%c0_6, %c0_7] : memref<8x1xf32, #tpu.memory_space<vmem>>, vector<8x1xf32>
    %c0_8 = arith.constant 0 : index
    %c0_9 = arith.constant 0 : index
    %11 = vector.load %arg7[%c0_8, %c0_9] : memref<1x128xf32, #tpu.memory_space<vmem>>, vector<1x128xf32>
    %12 = vector.broadcast %10 : vector<8x1xf32> to vector<8x128xf32>
    %13 = vector.broadcast %11 : vector<1x128xf32> to vector<8x128xf32>
    %14 = arith.mulf %12, %13 : vector<8x128xf32>
    %c0_10 = arith.constant 0 : index
    %c0_11 = arith.constant 0 : index
    %15 = vector.load %arg8[%c0_10, %c0_11] : memref<1x128xf32, #tpu.memory_space<vmem>>, vector<1x128xf32>
    %16 = vector.broadcast %15 : vector<1x128xf32> to vector<8x128xf32>
    %17 = arith.addf %14, %16 : vector<8x128xf32>
    %cst_12 = arith.constant 0.000000e+00 : f32
    %18 = vector.broadcast %cst_12 : f32 to vector<8x128xf32>
    %19 = arith.maximumf %17, %18 : vector<8x128xf32>
    %c0_13 = arith.constant 0 : index
    %c0_14 = arith.constant 0 : index
    %20 = vector.load %arg9[%c0_13, %c0_14] : memref<2x128xf32, #tpu.memory_space<vmem>>, vector<1x128xf32>
    %21 = vector.broadcast %20 : vector<1x128xf32> to vector<8x128xf32>
    %22 = arith.mulf %19, %21 : vector<8x128xf32>
    %cst_15 = arith.constant dense<0.000000e+00> : vector<8xf32>
    %23 = vector.multi_reduction <add>, %22, %cst_15 [1] : vector<8x128xf32> to vector<8xf32>
    %24 = vector.shape_cast %23 : vector<8xf32> to vector<8x1xf32>
    %c0_16 = arith.constant 0 : index
    %25 = memref.load %arg10[%c0_16] : memref<2xf32, #tpu.memory_space<smem>>
    %26 = vector.broadcast %25 : f32 to vector<8x1xf32>
    %27 = arith.addf %24, %26 : vector<8x1xf32>
    %c1 = arith.constant 1 : index
    %c0_17 = arith.constant 0 : index
    %28 = vector.load %arg9[%c1, %c0_17] : memref<2x128xf32, #tpu.memory_space<vmem>>, vector<1x128xf32>
    %29 = vector.broadcast %28 : vector<1x128xf32> to vector<8x128xf32>
    %30 = arith.mulf %19, %29 : vector<8x128xf32>
    %cst_18 = arith.constant dense<0.000000e+00> : vector<8xf32>
    %31 = vector.multi_reduction <add>, %30, %cst_18 [1] : vector<8x128xf32> to vector<8xf32>
    %32 = vector.shape_cast %31 : vector<8xf32> to vector<8x1xf32>
    %c1_19 = arith.constant 1 : index
    %33 = memref.load %arg10[%c1_19] : memref<2xf32, #tpu.memory_space<smem>>
    %34 = vector.broadcast %33 : f32 to vector<8x1xf32>
    %35 = arith.addf %32, %34 : vector<8x1xf32>
    %c0_20 = arith.constant 0 : index
    %c0_21 = arith.constant 0 : index
    %c0_22 = arith.constant 0 : index
    %36 = vector.load %arg5[%c0_20, %c0_21, %c0_22] : memref<2x1024x512xbf16, #tpu.memory_space<vmem>>, vector<1x1024x512xbf16>
    %37 = vector.shape_cast %36 : vector<1x1024x512xbf16> to vector<1024x512xbf16>
    %cst_23 = arith.constant dense<0.000000e+00> : vector<8x512xf32>
    %38 = tpu.matmul %9, %37, %cst_23 {dimension_numbers = #tpu.dot_dimension_numbers<[1], [0], [0], [1], [0, 0, 1, 1], [], []>} : vector<8x1024xbf16>, vector<1024x512xbf16>, vector<8x512xf32> -> vector<8x512xf32>
    %c0_24 = arith.constant 0 : index
    %c0_25 = arith.constant 0 : index
    %c0_26 = arith.constant 0 : index
    %39 = vector.load %arg6[%c0_24, %c0_25, %c0_26] : memref<2x1x512xf32, #tpu.memory_space<vmem>>, vector<1x1x512xf32>
    %40 = vector.shape_cast %39 : vector<1x1x512xf32> to vector<1x512xf32>
    %41 = vector.broadcast %40 : vector<1x512xf32> to vector<8x512xf32>
    %42 = arith.addf %38, %41 : vector<8x512xf32>
    %c1_27 = arith.constant 1 : index
    %c0_28 = arith.constant 0 : index
    %c0_29 = arith.constant 0 : index
    %43 = vector.load %arg5[%c1_27, %c0_28, %c0_29] : memref<2x1024x512xbf16, #tpu.memory_space<vmem>>, vector<1x1024x512xbf16>
    %44 = vector.shape_cast %43 : vector<1x1024x512xbf16> to vector<1024x512xbf16>
    %cst_30 = arith.constant dense<0.000000e+00> : vector<8x512xf32>
    %45 = tpu.matmul %9, %44, %cst_30 {dimension_numbers = #tpu.dot_dimension_numbers<[1], [0], [0], [1], [0, 0, 1, 1], [], []>} : vector<8x1024xbf16>, vector<1024x512xbf16>, vector<8x512xf32> -> vector<8x512xf32>
    %c1_31 = arith.constant 1 : index
    %c0_32 = arith.constant 0 : index
    %c0_33 = arith.constant 0 : index
    %46 = vector.load %arg6[%c1_31, %c0_32, %c0_33] : memref<2x1x512xf32, #tpu.memory_space<vmem>>, vector<1x1x512xf32>
    %47 = vector.shape_cast %46 : vector<1x1x512xf32> to vector<1x512xf32>
    %48 = vector.broadcast %47 : vector<1x512xf32> to vector<8x512xf32>
    %49 = arith.addf %45, %48 : vector<8x512xf32>
    %50 = vector.broadcast %27 : vector<8x1xf32> to vector<8x512xf32>
    %51 = arith.mulf %50, %42 : vector<8x512xf32>
    %52 = vector.broadcast %35 : vector<8x1xf32> to vector<8x512xf32>
    %53 = arith.mulf %52, %49 : vector<8x512xf32>
    %54 = arith.addf %51, %53 : vector<8x512xf32>
    %c0_34 = arith.constant 0 : index
    %c0_35 = arith.constant 0 : index
    %55 = vector.load %arg11[%c0_34, %c0_35] : memref<8x512xf32, #tpu.memory_space<vmem>>, vector<8x512xf32>
    tpu.vector_store %arg11[%c0_34, %c0_35], %54 {strides = array<i32>} : memref<8x512xf32, #tpu.memory_space<vmem>>, vector<8x512xf32>,
    return
  }
  func.func @transform_0(%arg0: i32) -> (i32, i32) {
    %c0_i32 = arith.constant 0 : i32
    %c0_i32_0 = arith.constant 0 : i32
    %c0_i32_1 = arith.constant 0 : i32
    return %c0_i32, %c0_i32_0 : i32, i32
  }
  func.func @transform_1(%arg0: i32) -> (i32, i32) {
    %c0_i32 = arith.constant 0 : i32
    %c0_i32_0 = arith.constant 0 : i32
    %c0_i32_1 = arith.constant 0 : i32
    return %c0_i32, %c0_i32_0 : i32, i32
  }
  func.func @transform_2(%arg0: i32) -> (i32, i32) {
    %c0_i32 = arith.constant 0 : i32
    %c0_i32_0 = arith.constant 0 : i32
    %c0_i32_1 = arith.constant 0 : i32
    return %c0_i32, %c0_i32_0 : i32, i32
  }
  func.func @transform_3(%arg0: i32) -> (i32, i32) {
    %c0_i32 = arith.constant 0 : i32
    %c0_i32_0 = arith.constant 0 : i32
    %c0_i32_1 = arith.constant 0 : i32
    return %c0_i32, %c0_i32_0 : i32, i32
  }
  func.func @transform_4(%arg0: i32) -> (i32, i32, i32) {
    %c0_i32 = arith.constant 0 : i32
    %c0_i32_0 = arith.constant 0 : i32
    %c0_i32_1 = arith.constant 0 : i32
    return %c0_i32, %c0_i32_0, %arg0 : i32, i32, i32
  }
  func.func @transform_5(%arg0: i32) -> (i32, i32, i32) {
    %c0_i32 = arith.constant 0 : i32
    %c0_i32_0 = arith.constant 0 : i32
    %c0_i32_1 = arith.constant 0 : i32
    return %c0_i32, %c0_i32_0, %arg0 : i32, i32, i32
  }
  func.func @transform_6(%arg0: i32) -> (i32, i32) {
    %c0_i32 = arith.constant 0 : i32
    %c0_i32_0 = arith.constant 0 : i32
    %c0_i32_1 = arith.constant 0 : i32
    return %c0_i32, %c0_i32_0 : i32, i32
  }
  func.func @transform_7(%arg0: i32) -> (i32, i32) {
    %c0_i32 = arith.constant 0 : i32
    %c0_i32_0 = arith.constant 0 : i32
    %c0_i32_1 = arith.constant 0 : i32
    return %c0_i32, %c0_i32_0 : i32, i32
  }
  func.func @transform_8(%arg0: i32) -> (i32, i32) {
    %c0_i32 = arith.constant 0 : i32
    %c0_i32_0 = arith.constant 0 : i32
    %c0_i32_1 = arith.constant 0 : i32
    return %c0_i32, %c0_i32_0 : i32, i32
  }
  func.func @transform_9(%arg0: i32) -> i32 {
    %c0_i32 = arith.constant 0 : i32
    %c0_i32_0 = arith.constant 0 : i32
    return %c0_i32 : i32
  }
  func.func @transform_10(%arg0: i32) -> (i32, i32) {
    %c0_i32 = arith.constant 0 : i32
    %c0_i32_0 = arith.constant 0 : i32
    return %c0_i32, %arg0 : i32, i32
  }
}

</mosaic_0001>

<bundles_post_ra>
// kernel: tpu_custom_call.1
= control target key start
LH: loop header
LB: loop body
LE: loop exit
PB: predicated region body
PF: predicated region fallthrough
CT: control target
= control target key end

     0   :  { %s9863_s0 = inlined_call_operand.hbm [shape: f32[8,32], index: 0, kind: input, shape index: {}]   ;;  %s9864_s1 = inlined_call_operand.vmem [shape: f32[8,1], index: 1, kind: input, shape index: {}]   ;;  %s9865_s2 = inlined_call_operand.hbm [shape: bf16[32,1024], index: 2, kind: input, shape index: {}]   ;;  %s9866_s3 = inlined_call_operand.hbm [shape: f32[1,1024], index: 3, kind: input, shape index: {}]   ;;  %s9867_s4 = inlined_call_operand.hbm [shape: bf16[2,1024,1024], index: 4, kind: input, shape index: {}]   ;;  %s9868_s5 = inlined_call_operand.hbm [shape: f32[2,1,1024], index: 5, kind: input, shape index: {}]   ;;  %s9869_s6 = inlined_call_operand.hbm [shape: f32[1,128], index: 6, kind: input, shape index: {}]   ;;  %s9870_s7 = inlined_call_operand.hbm [shape: f32[1,128], index: 7, kind: input, shape index: {}]   ;;  %s9871_s8 = inlined_call_operand.hbm [shape: f32[2,128], index: 8, kind: input, shape index: {}]   ;;  %s9872_s9 = inlined_call_operand.hbm [shape: f32[2], index: 9, kind: input, shape index: {}]   ;;  %s9873_s10 = inlined_call_operand.hbm [shape: f32[8,1024], index: 10, kind: output, shape index: {}]  }
   0x1   :  { %9884 = sst [smem:[#allocation32_spill]] %s9865_s2 }
   0x2   :  { %9885 = sst [smem:[#allocation33_spill]] %s9867_s4 }
   0x3   :  { %9886 = sst [smem:[#allocation34_spill]] %s9869_s6 }
   0x4   :  { %9887 = sst [smem:[#allocation35_spill]] %s9873_s10 }
   0x5   :  { %15 = vsyncpa [#allocation3], 0 }
   0x6   :  { %16 = vsyncpa [#allocation7], 0 }
   0x7   :  { %17 = vsyncpa [#allocation10], 0 }
   0x8   :  { %19 = vsyncpa [#allocation10 + $0x1], 0 }
   0x9   :  { %20 = vsyncpa [#allocation13], 0 }
   0xa   :  { %21 = vsyncpa [#allocation16], 0 }
   0xb   :  { %22 = vsyncpa [#allocation5], 0 }
   0xc   :  { %23 = vsyncpa [#allocation4], 0 }
   0xd   :  { %25 = vsyncpa [#allocation4 + $0x1], 0  ;;  %s8408_s13 = smov 0   ;;  %s8410_s14 = smov 0  }
   0xe   :  { %s8412_s15 = smov 0   ;;  %s8414_s16 = smov 0  }
   0xf LB: > { %9888 = sst [smem:[#allocation26_spill]] %s8324_s13  ;;  %s8432_s20 = sadd.s32 4294967295, %s8336_s16   ;;  %s8336_s16 = sphi %s8414_s16, %s9920_s16   ;;  %s8332_s15 = sphi %s8412_s15, %s9922_s15   ;;  %s8328_s14 = sphi %s8410_s14, %s9924_s14   ;;  %s8324_s13 = sphi %s8408_s13, %s9923_s13  }
  0x10   : > { %9889 = sst [smem:[#allocation27_spill]] %s8332_s15  ;;  %p4921_p0 = scmp.ge.s32.totalorder %s8336_s16, 1 }
  0x11   : > { %s9890_s2 = sld [smem:[#allocation32_spill]]  ;;  %p9880_p1 = scmp.eq.s32.totalorder %s8432_s20, 0 }
  0x12   : > { %p282_p2 = scmp.lt.s32.totalorder %s8336_s16, 3  ;;  %s8338_s22 = smov [#allocation6]  }
  0x13   : > { %s310_s23 = sshll.u32 %s8338_s22, 4  ;;  %s9892_s6 = sld [smem:[#allocation34_spill]]  ;;  %s311_s23 = int_to_ptr.vmem [resolvable:$true] %s310_s23 }
  0x14   : > { %p8437_p3 = pnand %p4921_p0, %p282_p2  ;;  %s8339_s28 = smov [#allocation12]  }
  0x15   : > { %s337_s29 = sshll.u32 %s8339_s28, 4  ;;  %s9874_s30 = smov 512   ;;  %s338_s29 = int_to_ptr.vmem [resolvable:$true] %s337_s29 }
  0x16   : > { %p7893_p4 = pneg %p8437_p3  ;;  %s8341_s11 = smov 32  }
  0x17   : > { %s308_s19 = sshll.u32 %s9890_s2, 4  ;;  %s4920_s12 = sadd.s32 4294967294, %s8336_s16   ;;  %s309_s19 = int_to_ptr.hbm [resolvable:$true] %s308_s19 }
  0x18   : > { %p8449_p6 = pnand %p7893_p4, %p9880_p1  ;;  %s8461_s17 = sadd.s32 1, %s8336_s16  }
  0x19   : > { %s335_s26 = sshll.u32 %s9892_s6, 4  ;;  %9894 = sst [smem:[#allocation28_spill]] %s8461_s17  ;;  %s336_s26 = int_to_ptr.hbm [resolvable:$true] %s335_s26 }
  0x1a   : > { %7899 = dma.hbm_to_vmem [thread:$0]  (!%p8449_p6), %s309_s19, 2048, %s311_s23, [#allocation7], %s9874_s30, %s9874_s30, %s8341_s11  }
  0x1b   : > { %7905 = dma.hbm_to_vmem [thread:$0]  (!%p8449_p6), %s336_s26, 16, %s338_s29, [#allocation13]  }
  0x1c   : > { %s119_s18 = ssub.s32 %s8336_s16, %s8461_s17  ;;  %s122_s22 = sadd.s32 1, %s8332_s15 }
  0x1d   : > { %p120_p7 = scmp.eq.s32.totalorder %s119_s18, 0  ;;  %p129_p8 = scmp.ne.s32.totalorder %s8332_s15, %s8328_s14 }
  0x1e   : > { %p130_p9 = scmp.eq.s32.totalorder %s8336_s16, 0  ;;  %p135_p10 = scmp.ne.s32.totalorder %s8328_s14, %s8324_s13 }
  0x1f   : > { %s8472_s24 = scalar_select %p120_p7, %s8332_s15, %s122_s22  }
  0x20   : > { %p8474_p11 = por %p130_p9, %p129_p8  ;;  %p8480_p12 = por %p9880_p1, %p135_p10 }
  0x21   : > { %9895 = sst [smem:[#allocation29_spill]] %s8472_s24  ;;  %p269_p13 = scmp.eq.s32.totalorder %s8432_s20, 1 }
  0x22   : > { %p275_p0 = scmp.eq.s32.totalorder %s4920_s12, 1  ;;  %p7933_p2 = scmp.lt.s32.totalorder %s8336_s16, 2 }
  0x23   : > { %s382_s25 = sand.u32 1, %s8336_s16   ;;  %p8487_p4 = por %p269_p13, %p129_p8 }
  0x24   : > { %p8491_p7 = por %p275_p0, %p135_p10  ;;  %s384_s29 = sand.u32 1, %s8332_s15  }
  0x25   : > { %s9898_s26 = scalar_select %p8487_p4, 1, 0 }
  0x26   : > { %s9900_s28 = scalar_select %p8491_p7, 1, 0 }
  0x27   : > { %9899 = sst [smem:[#allocation30_spill]] %s9898_s26  ;;  %s4930_s11 = sshll.u32 %s384_s29, 12 }
  0x28   : > { %9901 = sst [smem:[#allocation31_spill]] %s9900_s28  ;;  %s7329_s18 = sshll.u32 %s8336_s16, 4 }
  0x29   : > { %s9902_s4 = sld [smem:[#allocation33_spill]]  ;;  %s386_s24 = scalar_lea.vmem [#allocation9], %s4930_s11 }
  0x2a   : > { %s394_s12 = sshll.u32 %s386_s24, 4  ;;  %p8504_p8 = pnand %p7933_p2, %p8474_p11  ;;  %s395_s12 = int_to_ptr.vmem [resolvable:$true] %s394_s12 }
  0x2b   : > { %s4933_s15 = sshll.u32 %s384_s29, 3  ;;  %s8508_s28 = scalar_lea.sflag [#allocation10], %s382_s25 }
  0x2c   : > { %p8059_p10 = pneg %p8504_p8 }
  0x2f   : > { %s391_s2 = scalar_lea.hbm %s9902_s4, %s7329_s18  ;;  %s8062_s19 = scalar_lea.hbm %s9902_s4, 8192 }
  0x30   : > { %s392_s6 = sshll.u32 %s391_s2, 4  ;;  %s393_s6 = int_to_ptr.hbm [resolvable:$true] %s392_s6 }
  0x31   : > { %s8055_s13 = sshra.s32 %s393_s6, 4  ;;  %s8056_s13 = int_to_ptr.hbm [resolvable:$true] %s8055_s13 }
  0x32   : > { %s8057_s30 = scalar_lea.hbm %s8056_s13, 4096  ;;  %p8063_p11 = scmp.lt.s32.totalorder %s8056_s13, %s9902_s4 }
  0x33   : > { %p8058_p9 = scmp.ne.s32.totalorder %s8056_s13, %s8057_s30  ;;  %p8064_p2 = scmp.lt.s32.totalorder %s8062_s19, %s8057_s30 }
  0x35   : > { %p8060_p13 = pnand %p8059_p10, %p8058_p9  ;;  %p8065_p5 = por %p8064_p2, %p8063_p11 }
  0x37   : > { %p8061_p0 = pneg %p8060_p13 }
  0x39   : > { %p8066_p1 = pnand %p8065_p5, %p8061_p0 }
  0x3b   : > { %8069 = shalt.err (!%p8066_p1)
}
  0x3c   : > { %s8342_s25 = smov 256   ;;  %s8343_s29 = smov 16  }
  0x3d   : > { %s9904_s22 = smov 512   ;;  %s408_s26 = scalar_lea.vmem [#allocation11], %s4933_s15 }
  0x3e   : > { %7918 = dma.hbm_to_vmem [thread:$0]  (!%p8504_p8), %s393_s6, 65536, %s395_s12, %s8508_s28, %s9904_s22, %s8342_s25, %s8343_s29  }
  0x3f   : > { %s8525_s2 = sshll.u32 %s408_s26, 4  ;;  %s294_s13 = sshll.u32 %s9863_s0, 4  ;;  %s416_s2 = int_to_ptr.vmem [resolvable:$true] %s8525_s2  ;;  %s295_s13 = int_to_ptr.hbm [resolvable:$true] %s294_s13 }
  0x40   : > { %s323_s11 = sshll.u32 %s9866_s3, 4  ;;  %s8344_s18 = smov [#allocation2]   ;;  %s324_s11 = int_to_ptr.hbm [resolvable:$true] %s323_s11 }
  0x41   : > { %s296_s4 = sshll.u32 %s8344_s18, 4  ;;  %s8345_s6 = smov [#allocation8]   ;;  %s297_s4 = int_to_ptr.vmem [resolvable:$true] %s296_s4 }
  0x42   : > { %7896 = dma.hbm_to_vmem [thread:$0]  (!%p8449_p6), %s295_s13, 128, %s297_s4, [#allocation3]  }
  0x43   : > { %s325_s15 = sshll.u32 %s8345_s6, 4  ;;  %s347_s10 = sshll.u32 %s9870_s7, 4  ;;  %s326_s15 = int_to_ptr.vmem [resolvable:$true] %s325_s15  ;;  %s348_s10 = int_to_ptr.hbm [resolvable:$true] %s347_s10 }
  0x44   : > { %7902 = dma.hbm_to_vmem [thread:$0]  (!%p8449_p6), %s324_s11, 128, %s326_s15, [#allocation7]  }
  0x45   : > { %s359_s22 = sshll.u32 %s9871_s8, 4  ;;  %s8346_s24 = smov [#allocation14]   ;;  %s360_s22 = int_to_ptr.hbm [resolvable:$true] %s359_s22 }
  0x46   : > { %s349_s30 = sshll.u32 %s8346_s24, 4  ;;  %s8347_s4 = smov [#allocation15]   ;;  %s350_s30 = int_to_ptr.vmem [resolvable:$true] %s349_s30 }
  0x47   : > { %7908 = dma.hbm_to_vmem [thread:$0]  (!%p8449_p6), %s348_s10, 16, %s350_s30, [#allocation13]  }
  0x48   : > { %s361_s13 = sshll.u32 %s8347_s4, 4  ;;  %s371_s6 = sshll.u32 %s9872_s9, 4  ;;  %s362_s13 = int_to_ptr.vmem [resolvable:$true] %s361_s13  ;;  %s372_s6 = int_to_ptr.hbm [resolvable:$true] %s371_s6 }
  0x49   : > { %7911 = dma.hbm_to_vmem [thread:$0]  (!%p8449_p6), %s360_s22, 32, %s362_s13, [#allocation16]  }
  0x4a   : > { %s4934_s11 = sshll.u32 %s8336_s16, 2  ;;  %s8348_s15 = smov [#allocation17]  }
  0x4b   : > { %7914 = dma.hbm_to_smem (!%p8449_p6), %s372_s6, 16, %s8348_s15, [#allocation5]  }
  0x4c   : > { %s412_s25 = scalar_lea.hbm %s9868_s5, %s4934_s11  ;;  %s8227_s4 = scalar_lea.hbm %s9868_s5, 16 }
  0x4d   : > { %s413_s10 = sshll.u32 %s412_s25, 4  ;;  %s414_s10 = int_to_ptr.hbm [resolvable:$true] %s413_s10 }
  0x4e   : > { %s8220_s29 = sshra.s32 %s414_s10, 4  ;;  %s8221_s29 = int_to_ptr.hbm [resolvable:$true] %s8220_s29 }
  0x4f   : > { %s8222_s24 = scalar_lea.hbm %s8221_s29, 8  ;;  %p8228_p6 = scmp.lt.s32.totalorder %s8221_s29, %s9868_s5 }
  0x50   : > { %p8223_p1 = scmp.ne.s32.totalorder %s8221_s29, %s8222_s24  ;;  %p8229_p13 = scmp.lt.s32.totalorder %s8227_s4, %s8222_s24 }
  0x52   : > { %p8225_p5 = pnand %p8223_p1, %p8059_p10  ;;  %p8230_p0 = por %p8229_p13, %p8228_p6 }
  0x54   : > { %p8226_p9 = pneg %p8225_p5 }
  0x56   : > { %p8231_p11 = pnand %p8230_p0, %p8226_p9 }
  0x58   : > { %8234 = shalt.err (!%p8231_p11)
}
  0x59   : > { %s8349_s19 = smov 128   ;;  %s8350_s18 = smov 64  }
  0x5a   : > { %s8351_s6 = smov 4   ;;  %427 = sbr.rel (%p8437_p3) target bundleno = 858 (0x35a), region = 60 }
  0x5b   : > { %7921 = dma.hbm_to_vmem [thread:$0]  (!%p8504_p8), %s414_s10, 128, %s416_s2, %s8508_s28, %s8349_s19, %s8350_s18, %s8351_s6  }
  0x5c   : > { %p9905_p10 = scmp.eq.s32.totalorder (!%p8437_p3), %s8432_s20, 0 }
  0x5f   : > { %8295 = dma.done.wait (%p9905_p10), [#allocation3], 128   ;;  %p9906_p2 = pmov %p9905_p10 }
  0x61   : > { %8297 = vsyncadd (%p9906_p2), [#allocation3], 4294967168  ;;  %p9907_p1 = pmov %p9906_p2 }
  0x63   : > { %8299 = dma.done.wait (%p9907_p1), [#allocation7], 2176   ;;  %p9908_p5 = pmov %p9907_p1 }
  0x64   : > { %s444_s17 = sand.u32 1, %s8432_s20   ;;  %s8583_s28 = sand.u32 1, %s8328_s14  }
  0x65   : > { %8301 = vsyncadd (%p9908_p5), [#allocation7], 4294965120  ;;  %s4939_s21 = sshll.u32 %s8583_s28, 12  ;;  %s445_s2 = scalar_lea.sflag [#allocation10], %s444_s17 }
  0x66   : > { %s8586_s11 = scalar_lea.vmem [#allocation9], %s4939_s21 }
  0x67   : > { %8303 = dma.done.wait (%p8480_p12), %s445_s2, 65664  }
  0x68   : > { %8305 = vsyncadd (%p8480_p12), %s445_s2, 4294901632  ;;  %s4940_s15 = sshll.u32 %s8583_s28, 3  ;;  %p9909_p3 = pmov %p9907_p1 }
  0x69   : > { %s8593_s26 = scalar_lea.vmem [#allocation11], %s4940_s15 }
  0x6a   : > { %8307 = dma.done.wait (%p9909_p3), [#allocation13], 32   ;;  %p9910_p8 = pmov %p9907_p1 }
  0x6b   : > { %p9911_p9 = pmov %p9907_p1 }
  0x6c   : > { %8309 = vsyncadd (%p9910_p8), [#allocation13], 4294967264 }
  0x6d   : > { %8311 = dma.done.wait (%p9911_p9), [#allocation16], 32   ;;  %p9912_p6 = pmov %p9907_p1 }
  0x6e   : > { %p9913_p13 = pmov %p9907_p1 }
  0x6f   : > { %8313 = vsyncadd (%p9912_p6), [#allocation16], 4294967264 }
  0x70   : > { %8315 = dma.done.wait (%p9913_p13), [#allocation5], 16   ;;  %p9914_p12 = pmov %p9907_p1 }
  0x72   : > { %8317 = vsyncadd (%p9914_p12), [#allocation5], 4294967280 }
  0x73   : > { %484 = sfence }
  0x74   : > { %v4980_v0 = vld [vmem:[#allocation6 + $0x40] sm:$0xf]  ;;  %v7338_v2 = vld [vmem:[#allocation6 + $0x44] sm:$0xf]  ;;  %v4988_v5 = vld [vmem:[#allocation6 + $0x48] sm:$0xf] }
  0x75   : > { %v7342_v1 = vld [vmem:[#allocation6 + $0x5c] sm:$0xf0]  ;;  %v4982_v4 = vld [vmem:[#allocation6 + $0x60] sm:$0xf0]  ;;  %v7343_v6 = vld [vmem:[#allocation6 + $0x64] sm:$0xf0] }
  0x76   : > { %v4981_v3 = vor.u32 %v7342_v1, %v4980_v0  ;;  %v4985_v7 = vor.u32 %v7338_v2, %v4982_v4  ;;  %v4989_v8 = vor.u32 %v7343_v6, %v4988_v5  ;;  %v7339_v9 = vld [vmem:[#allocation6 + $0x4c] sm:$0xf]  ;;  %v4948_v11 = vld [vmem:[#allocation6] sm:$0xf]  ;;  %v7330_v14 = vld [vmem:[#allocation6 + $0x4] sm:$0xf] }
  0x77   : > { %v4990_v10 = vld [vmem:[#allocation6 + $0x68] sm:$0xf0]  ;;  %v7334_v13 = vld [vmem:[#allocation6 + $0x1c] sm:$0xf0]  ;;  %v4950_v15 = vld [vmem:[#allocation6 + $0x20] sm:$0xf0] }
  0x78   : > { %652 = vmatpush.bf16.msra.mxu0 %v4981_v3  ;;  %v4993_v12 = vor.u32 %v7339_v9, %v4990_v10  ;;  %665 = vmatpush.bf16.msra.mxu1 %v4985_v7  ;;  %v4949_v16 = vor.u32 %v7334_v13, %v4948_v11  ;;  %v4953_v17 = vor.u32 %v7330_v14, %v4950_v15  ;;  %v4956_v18 = vld [vmem:[#allocation6 + $0x8] sm:$0xf]  ;;  %v7331_v20 = vld [vmem:[#allocation6 + $0xc] sm:$0xf]  ;;  %v526_v23 = vld [vmem:[#allocation2] sm:$0xff]  ;;  %vm642_vm0 = vcmask 261120  }
  0x79   : > { %678 = vmatpush.bf16.msra.mxu2 %v4989_v8  ;;  %v7335_v19 = vld [vmem:[#allocation6 + $0x24] sm:$0xf0]  ;;  %v4958_v22 = vld [vmem:[#allocation6 + $0x28] sm:$0xf0]  ;;  %v4996_v24 = vld [vmem:[#allocation6 + $0x50] sm:$0xf]  ;;  %v8607_v26 = vpack.c.bf16 %v526_v23, %v526_v23 }
  0x7a   : > { %691 = vmatpush.bf16.msra.mxu3 %v4993_v12  ;;  %v4957_v21 = vor.u32 %v7335_v19, %v4956_v18  ;;  %v4961_v25 = vor.u32 %v7331_v20, %v4958_v22  ;;  %v7344_v27 = vld [vmem:[#allocation6 + $0x6c] sm:$0xf0]  ;;  %v7340_v28 = vld [vmem:[#allocation6 + $0x54] sm:$0xf]  ;;  %v5004_v32 = vld [vmem:[#allocation6 + $0x58] sm:$0xf] }
  0x7b   : > { %v4998_v29 = vld [vmem:[#allocation6 + $0x70] sm:$0xf0]  ;;  %v4997_v30 = vor.u32 %v7344_v27, %v4996_v24  ;;  %v7345_v33 = vld [vmem:[#allocation6 + $0x74] sm:$0xf0]  ;;  %v7341_v34 = vld [vmem:[#allocation6 + $0x5c] sm:$0xf] }
  0x7c   : > { %653 = vmatpush.bf16.msra.mxu0 %v4949_v16  ;;  %v5001_v31 = vor.u32 %v7340_v28, %v4998_v29  ;;  %666 = vmatpush.bf16.msra.mxu1 %v4953_v17  ;;  %v5005_v35 = vor.u32 %v7345_v33, %v5004_v32  ;;  %v5006_v36 = vld [vmem:[#allocation6 + $0x78] sm:$0xf0]  ;;  %v4964_v37 = vld [vmem:[#allocation6 + $0x10] sm:$0xf]  ;;  %v7332_v41 = vld [vmem:[#allocation6 + $0x14] sm:$0xf] }
  0x7d   : > { %679 = vmatpush.bf16.msra.mxu2 %v4957_v21  ;;  %v7336_v38 = vld [vmem:[#allocation6 + $0x2c] sm:$0xf0]  ;;  %v5009_v39 = vor.u32 %v7341_v34, %v5006_v36  ;;  %v4966_v42 = vld [vmem:[#allocation6 + $0x30] sm:$0xf0]  ;;  %v4972_v43 = vld [vmem:[#allocation6 + $0x18] sm:$0xf] }
  0x7e   : > { %692 = vmatpush.bf16.msra.mxu3 %v4961_v25  ;;  %v4965_v40 = vor.u32 %v7336_v38, %v4964_v37  ;;  %v4969_v44 = vor.u32 %v7332_v41, %v4966_v42  ;;  %v7337_v45 = vld [vmem:[#allocation6 + $0x34] sm:$0xf0]  ;;  %v7333_v46 = vld [vmem:[#allocation6 + $0x1c] sm:$0xf]  ;;  %v5133_v49 = vld [vmem:[%s8586_s11 + $0xe0] sm:$0xf] }
  0x7f   : > { %5010 = vmatmul.msk.bf16.vlgmr.msra.gmra.mxu0 %vm642_vm0, %v8607_v26  ;;  %v4974_v47 = vld [vmem:[#allocation6 + $0x38] sm:$0xf0]  ;;  %5011 = vmatmul.msk.bf16.vlgmr.msra.gmra.mxu1 %vm642_vm0, %v8607_v26  ;;  %v7376_v50 = vld [vmem:[%s8586_s11 + $0xec] sm:$0xf0]  ;;  %v4973_v51 = vor.u32 %v7337_v45, %v4972_v43  ;;  %v5261_v53 = vld [vmem:[%s8586_s11 + $0x1e0] sm:$0xf] }
  0x80   : > { %704 = vmatpush.bf16.msrb.mxu0 %v4997_v30  ;;  %717 = vmatpush.bf16.msrb.mxu1 %v5001_v31  ;;  %v766_v48 = vld [vmem:[%s9864_s1] sm:$0xff]  ;;  %v5134_v52 = vor.u32 %v7376_v50, %v5133_v49  ;;  %v5117_v55 = vld [vmem:[%s8586_s11 + $0xc0] sm:$0xf]  ;;  %v4977_v56 = vor.u32 %v7333_v46, %v4974_v47  ;;  %v8352_v61 = vmov 0   ;;  %s9685_s25 = sld [smem:[#allocation17]]  ;;  %s4945_s29 = sshll.u32 %s8583_s28, 5 }
  0x81   : > { %5012 = vmatmul.msk.bf16.vlgmr.msra.gmra.mxu2 %vm642_vm0, %v8607_v26  ;;  %5013 = vmatmul.msk.bf16.vlgmr.msra.gmra.mxu3 %vm642_vm0, %v8607_v26  ;;  %v7408_v54 = vld [vmem:[%s8586_s11 + $0x1ec] sm:$0xf0]  ;;  %v5245_v59 = vld [vmem:[%s8586_s11 + $0x1c0] sm:$0xf]  ;;  %s9692_s10 = sld [smem:[#allocation17 + $0x1]]  ;;  %s9753_s24 = scalar_lea.vmem [#allocation18], %s4945_s29 }
  0x82   : > { %730 = vmatpush.bf16.msrb.mxu2 %v5005_v35  ;;  %743 = vmatpush.bf16.msrb.mxu3 %v5009_v39  ;;  %v5262_v57 = vor.u32 %v7408_v54, %v5261_v53  ;;  %v7372_v58 = vld [vmem:[%s8586_s11 + $0xcc] sm:$0xf0]  ;;  %v5389_v62 = vld [vmem:[%s8586_s11 + $0x2e0] sm:$0xf]  ;;  %s7858_s30 = sshll.u32 %s8432_s20, 5  ;;  %s9915_s27 = sld [smem:[#allocation35_spill]] }
  0x83   : > { %v7404_v60 = vld [vmem:[%s8586_s11 + $0x1cc] sm:$0xf0]  ;;  %7989 = vset.pattern.permute.xlu0 %v8352_v61  ;;  %v5517_v0 = vld [vmem:[%s8586_s11 + $0x3e0] sm:$0xf]  ;;  %v5118_v1 = vor.u32 %v7372_v58, %v5117_v55  ;;  %s4755_s18 = sshll.u32 %s9753_s24, 4  ;;  %s4742_s20 = scalar_lea.sflag [#allocation4], %s8583_s28  ;;  %s4756_s18 = int_to_ptr.vmem [resolvable:$true] %s4755_s18 }
  0x84   : > { %705 = vmatpush.bf16.msrb.mxu0 %v4965_v40  ;;  %718 = vmatpush.bf16.msrb.mxu1 %v4969_v44  ;;  %v7440_v63 = vld [vmem:[%s8586_s11 + $0x2ec] sm:$0xf0]  ;;  %v5101_v4 = vld [vmem:[%s8586_s11 + $0xa0] sm:$0xf]  ;;  %v5246_v6 = vor.u32 %v7404_v60, %v5245_v59 }
  0x85   : > { %770 = vperm.xlu0 %7989, %v766_v48   ;;  %v5390_v2 = vor.u32 %v7440_v63, %v5389_v62  ;;  %v7472_v3 = vld [vmem:[%s8586_s11 + $0x3ec] sm:$0xf0]  ;;  %v5229_v8 = vld [vmem:[%s8586_s11 + $0x1a0] sm:$0xf] }
  0x86   : > { %v7368_v5 = vld [vmem:[%s8586_s11 + $0xac] sm:$0xf0]  ;;  %731 = vmatpush.bf16.msrb.mxu2 %v4973_v51  ;;  %v5518_v7 = vor.u32 %v7472_v3, %v5517_v0  ;;  %v5373_v10 = vld [vmem:[%s8586_s11 + $0x2c0] sm:$0xf]  ;;  %744 = vmatpush.bf16.msrb.mxu3 %v4977_v56 }
  0x87   : > { %v7400_v9 = vld [vmem:[%s8586_s11 + $0x1ac] sm:$0xf0]  ;;  %v5501_v12 = vld [vmem:[%s8586_s11 + $0x3c0] sm:$0xf]  ;;  %v5102_v16 = vor.u32 %v7368_v5, %v5101_v4 }
  0x88   : > { %2345 = vmatpush.bf16.msra.mxu0 %v5134_v52  ;;  %2358 = vmatpush.bf16.msra.mxu1 %v5262_v57  ;;  %v7436_v11 = vld [vmem:[%s8586_s11 + $0x2cc] sm:$0xf0]  ;;  %v5357_v17 = vld [vmem:[%s8586_s11 + $0x2a0] sm:$0xf]  ;;  %v5230_v19 = vor.u32 %v7400_v9, %v5229_v8  ;;  %s4753_s13 = scalar_lea.hbm %s9915_s27, %s7858_s30  ;;  %s8270_s15 = scalar_lea.hbm %s9915_s27, 64 }
  0x89   : > { %v7468_v13 = vld [vmem:[%s8586_s11 + $0x3cc] sm:$0xf0]  ;;  %v5374_v14 = vor.u32 %v7436_v11, %v5373_v10  ;;  %v5485_v20 = vld [vmem:[%s8586_s11 + $0x3a0] sm:$0xf]  ;;  %s4757_s6 = sshll.u32 %s4753_s13, 4  ;;  %s4758_s6 = int_to_ptr.hbm [resolvable:$true] %s4757_s6 }
  0x8a   : > { %2371 = vmatpush.bf16.msra.mxu2 %v5390_v2  ;;  %2384 = vmatpush.bf16.msra.mxu3 %v5518_v7  ;;  %v5502_v15 = vor.u32 %v7468_v13, %v5501_v12  ;;  %v7432_v18 = vld [vmem:[%s8586_s11 + $0x2ac] sm:$0xf0]  ;;  %v5085_v22 = vld [vmem:[%s8586_s11 + $0x80] sm:$0xf]  ;;  %s8264_s17 = sshra.s32 %s4758_s6, 4  ;;  %s8265_s17 = int_to_ptr.hbm [resolvable:$true] %s8264_s17 }
  0x8b   : > { %v7464_v21 = vld [vmem:[%s8586_s11 + $0x3ac] sm:$0xf0]  ;;  %v5213_v24 = vld [vmem:[%s8586_s11 + $0x180] sm:$0xf]  ;;  %v5358_v25 = vor.u32 %v7432_v18, %v5357_v17  ;;  %s8266_s21 = scalar_lea.hbm %s8265_s17, 32  ;;  %p8271_p2 = scmp.lt.s32.totalorder %s8265_s17, %s9915_s27 }
  0x8c   : > { %2346 = vmatpush.bf16.msra.mxu0 %v5118_v1  ;;  %2359 = vmatpush.bf16.msra.mxu1 %v5246_v6  ;;  %v7364_v23 = vld [vmem:[%s8586_s11 + $0x8c] sm:$0xf0]  ;;  %v5486_v28 = vor.u32 %v7464_v21, %v5485_v20  ;;  %v5341_v29 = vld [vmem:[%s8586_s11 + $0x280] sm:$0xf]  ;;  %p8267_p0 = scmp.ne.s32.totalorder %s8265_s17, %s8266_s21  ;;  %p8272_p1 = scmp.lt.s32.totalorder %s8270_s15, %s8266_s21 }
  0x8d   : > { %v7396_v27 = vld [vmem:[%s8586_s11 + $0x18c] sm:$0xf0]  ;;  %v5469_v31 = vld [vmem:[%s8586_s11 + $0x380] sm:$0xf]  ;;  %v5086_v33 = vor.u32 %v7364_v23, %v5085_v22 }
  0x8e   : > { %2372 = vmatpush.bf16.msra.mxu2 %v5374_v14  ;;  %2385 = vmatpush.bf16.msra.mxu3 %v5502_v15  ;;  %v7428_v30 = vld [vmem:[%s8586_s11 + $0x28c] sm:$0xf0]  ;;  %v5214_v34 = vor.u32 %v7396_v27, %v5213_v24  ;;  %v5069_v35 = vld [vmem:[%s8586_s11 + $0x60] sm:$0xf]  ;;  %p8268_p11 = pnand %p8267_p0, %p8487_p4  ;;  %p8273_p5 = por %p8272_p1, %p8271_p2 }
  0x8f   : > { %v7460_v32 = vld [vmem:[%s8586_s11 + $0x38c] sm:$0xf0]  ;;  %v5197_v37 = vld [vmem:[%s8586_s11 + $0x160] sm:$0xf]  ;;  %v5342_v38 = vor.u32 %v7428_v30, %v5341_v29  ;;  %5014 = vmatmul.msk.bf16.vlgmr.msrb.gmra.mxu0 %vm642_vm0, %v8607_v26  ;;  %5015 = vmatmul.msk.bf16.vlgmr.msrb.gmra.mxu1 %vm642_vm0, %v8607_v26 }
  0x90   : > { %2347 = vmatpush.bf16.msra.mxu0 %v5102_v16  ;;  %2360 = vmatpush.bf16.msra.mxu1 %v5230_v19  ;;  %v7360_v36 = vld [vmem:[%s8586_s11 + $0x6c] sm:$0xf0]  ;;  %v5470_v40 = vor.u32 %v7460_v32, %v5469_v31  ;;  %v5325_v41 = vld [vmem:[%s8586_s11 + $0x260] sm:$0xf]  ;;  %p8269_p10 = pneg %p8268_p11 }
  0x91   : > { %v7392_v39 = vld [vmem:[%s8586_s11 + $0x16c] sm:$0xf0]  ;;  %5016 = vmatmul.msk.bf16.vlgmr.msrb.gmra.mxu2 %vm642_vm0, %v8607_v26  ;;  %v5453_v43 = vld [vmem:[%s8586_s11 + $0x360] sm:$0xf]  ;;  %5017 = vmatmul.msk.bf16.vlgmr.msrb.gmra.mxu3 %vm642_vm0, %v8607_v26  ;;  %v5070_v45 = vor.u32 %v7360_v36, %v5069_v35 }
  0x92   : > { %2373 = vmatpush.bf16.msra.mxu2 %v5358_v25  ;;  %2386 = vmatpush.bf16.msra.mxu3 %v5486_v28  ;;  %v7424_v42 = vld [vmem:[%s8586_s11 + $0x26c] sm:$0xf0]  ;;  %v5198_v46 = vor.u32 %v7392_v39, %v5197_v37  ;;  %v5053_v47 = vld [vmem:[%s8586_s11 + $0x40] sm:$0xf]  ;;  %p8274_p3 = pnand %p8273_p5, %p8269_p10 }
  0x93   : > { %v7456_v44 = vld [vmem:[%s8586_s11 + $0x36c] sm:$0xf0]  ;;  %v5181_v49 = vld [vmem:[%s8586_s11 + $0x140] sm:$0xf]  ;;  %v5326_v50 = vor.u32 %v7424_v42, %v5325_v41 }
  0x94   : > { %2348 = vmatpush.bf16.msra.mxu0 %v5086_v33  ;;  %2361 = vmatpush.bf16.msra.mxu1 %v5214_v34  ;;  %v7356_v48 = vld [vmem:[%s8586_s11 + $0x4c] sm:$0xf0]  ;;  %v5454_v52 = vor.u32 %v7456_v44, %v5453_v43  ;;  %v5309_v53 = vld [vmem:[%s8586_s11 + $0x240] sm:$0xf] }
  0x95   : > { %v7388_v51 = vld [vmem:[%s8586_s11 + $0x14c] sm:$0xf0]  ;;  %v5437_v54 = vld [vmem:[%s8586_s11 + $0x340] sm:$0xf]  ;;  %v5054_v56 = vor.u32 %v7356_v48, %v5053_v47 }
  0x96   : > { %2374 = vmatpush.bf16.msra.mxu2 %v5342_v38  ;;  %2387 = vmatpush.bf16.msra.mxu3 %v5470_v40  ;;  %v7420_v26 = vld [vmem:[%s8586_s11 + $0x24c] sm:$0xf0]  ;;  %v5182_v57 = vor.u32 %v7388_v51, %v5181_v49  ;;  %v5037_v58 = vld [vmem:[%s8586_s11 + $0x20] sm:$0xf] }
  0x97   : > { %v7452_v55 = vld [vmem:[%s8586_s11 + $0x34c] sm:$0xf0]  ;;  %v5165_v60 = vld [vmem:[%s8586_s11 + $0x120] sm:$0xf]  ;;  %v5310_v61 = vor.u32 %v7420_v26, %v5309_v53 }
  0x98   : > { %2349 = vmatpush.bf16.msra.mxu0 %v5070_v45  ;;  %2362 = vmatpush.bf16.msra.mxu1 %v5198_v46  ;;  %v7352_v59 = vld [vmem:[%s8586_s11 + $0x2c] sm:$0xf0]  ;;  %v5438_v63 = vor.u32 %v7452_v55, %v5437_v54  ;;  %v5293_v0 = vld [vmem:[%s8586_s11 + $0x220] sm:$0xf] }
  0x99   : > { %v7384_v62 = vld [vmem:[%s8586_s11 + $0x12c] sm:$0xf0]  ;;  %v5421_v2 = vld [vmem:[%s8586_s11 + $0x320] sm:$0xf]  ;;  %v5038_v4 = vor.u32 %v7352_v59, %v5037_v58 }
  0x9a   : > { %2375 = vmatpush.bf16.msra.mxu2 %v5326_v50  ;;  %2388 = vmatpush.bf16.msra.mxu3 %v5454_v52  ;;  %v7416_v1 = vld [vmem:[%s8586_s11 + $0x22c] sm:$0xf0]  ;;  %v5021_v5 = vld [vmem:[%s8586_s11] sm:$0xf]  ;;  %v5166_v7 = vor.u32 %v7384_v62, %v5165_v60 }
  0x9b   : > { %v7448_v3 = vld [vmem:[%s8586_s11 + $0x32c] sm:$0xf0]  ;;  %v5149_v8 = vld [vmem:[%s8586_s11 + $0x100] sm:$0xf]  ;;  %v5294_v11 = vor.u32 %v7416_v1, %v5293_v0 }
  0x9c   : > { %2350 = vmatpush.bf16.msra.mxu0 %v5054_v56  ;;  %v7348_v6 = vld [vmem:[%s8586_s11 + $0xc] sm:$0xf0]  ;;  %2363 = vmatpush.bf16.msra.mxu1 %v5182_v57  ;;  %v5645_v10 = vld [vmem:[%s8586_s11 + $0x4e0] sm:$0xf]  ;;  %v5422_v15 = vor.u32 %v7448_v3, %v5421_v2 }
  0x9d   : > { %v7380_v9 = vld [vmem:[%s8586_s11 + $0x10c] sm:$0xf0]  ;;  %v5773_v13 = vld [vmem:[%s8586_s11 + $0x5e0] sm:$0xf]  ;;  %v5022_v19 = vor.u32 %v7348_v6, %v5021_v5 }
  0x9e   : > { %2376 = vmatpush.bf16.msra.mxu2 %v5310_v61  ;;  %2389 = vmatpush.bf16.msra.mxu3 %v5438_v63  ;;  %v7504_v12 = vld [vmem:[%s8586_s11 + $0x4ec] sm:$0xf0]  ;;  %v5277_v16 = vld [vmem:[%s8586_s11 + $0x200] sm:$0xf]  ;;  %v5150_v23 = vor.u32 %v7380_v9, %v5149_v8 }
  0x9f   : > { %v7536_v14 = vld [vmem:[%s8586_s11 + $0x5ec] sm:$0xf0]  ;;  %v5405_v18 = vld [vmem:[%s8586_s11 + $0x300] sm:$0xf]  ;;  %v5646_v24 = vor.u32 %v7504_v12, %v5645_v10 }
  0xa0   : > { %v7412_v17 = vld [vmem:[%s8586_s11 + $0x20c] sm:$0xf0]  ;;  %2351 = vmatpush.bf16.msra.mxu0 %v5038_v4  ;;  %v5901_v21 = vld [vmem:[%s8586_s11 + $0x6e0] sm:$0xf]  ;;  %2364 = vmatpush.bf16.msra.mxu1 %v5166_v7  ;;  %v5774_v28 = vor.u32 %v7536_v14, %v5773_v13 }
  0xa1   : > { %v7444_v20 = vld [vmem:[%s8586_s11 + $0x30c] sm:$0xf0]  ;;  %v6029_v25 = vld [vmem:[%s8586_s11 + $0x7e0] sm:$0xf]  ;;  %v5278_v31 = vor.u32 %v7412_v17, %v5277_v16 }
  0xa2   : > { %v7568_v22 = vld [vmem:[%s8586_s11 + $0x6ec] sm:$0xf0]  ;;  %2377 = vmatpush.bf16.msra.mxu2 %v5294_v11  ;;  %2390 = vmatpush.bf16.msra.mxu3 %v5422_v15  ;;  %v5629_v29 = vld [vmem:[%s8586_s11 + $0x4c0] sm:$0xf]  ;;  %v5406_v34 = vor.u32 %v7444_v20, %v5405_v18 }
  0xa3   : > { %v7600_v27 = vld [vmem:[%s8586_s11 + $0x7ec] sm:$0xf0]  ;;  %v5757_v32 = vld [vmem:[%s8586_s11 + $0x5c0] sm:$0xf]  ;;  %v5902_v35 = vor.u32 %v7568_v22, %v5901_v21 }
  0xa4   : > { %v7500_v30 = vld [vmem:[%s8586_s11 + $0x4cc] sm:$0xf0]  ;;  %2352 = vmatpush.bf16.msra.mxu0 %v5022_v19  ;;  %v6030_v36 = vor.u32 %v7600_v27, %v6029_v25  ;;  %v5613_v37 = vld [vmem:[%s8586_s11 + $0x4a0] sm:$0xf]  ;;  %2365 = vmatpush.bf16.msra.mxu1 %v5150_v23 }
  0xa5   : > { %v7532_v33 = vld [vmem:[%s8586_s11 + $0x5cc] sm:$0xf0]  ;;  %v5885_v38 = vld [vmem:[%s8586_s11 + $0x6c0] sm:$0xf]  ;;  %v5630_v40 = vor.u32 %v7500_v30, %v5629_v29 }
  0xa6   : > { %v7564_v39 = vld [vmem:[%s8586_s11 + $0x6cc] sm:$0xf0]  ;;  %v6013_v42 = vld [vmem:[%s8586_s11 + $0x7c0] sm:$0xf]  ;;  %v5758_v44 = vor.u32 %v7532_v33, %v5757_v32  ;;  %2378 = vmatpush.bf16.msra.mxu2 %v5278_v31  ;;  %2391 = vmatpush.bf16.msra.mxu3 %v5406_v34 }
  0xa7   : > { %v7496_v41 = vld [vmem:[%s8586_s11 + $0x4ac] sm:$0xf0]  ;;  %v5741_v45 = vld [vmem:[%s8586_s11 + $0x5a0] sm:$0xf]  ;;  %v5886_v47 = vor.u32 %v7564_v39, %v5885_v38 }
  0xa8   : > { %2397 = vmatpush.bf16.msrb.mxu0 %v5646_v24  ;;  %v7596_v43 = vld [vmem:[%s8586_s11 + $0x7cc] sm:$0xf0]  ;;  %2410 = vmatpush.bf16.msrb.mxu1 %v5774_v28  ;;  %v5869_v49 = vld [vmem:[%s8586_s11 + $0x6a0] sm:$0xf]  ;;  %v5614_v51 = vor.u32 %v7496_v41, %v5613_v37 }
  0xa9   : > { %v7528_v46 = vld [vmem:[%s8586_s11 + $0x5ac] sm:$0xf0]  ;;  %v6014_v48 = vor.u32 %v7596_v43, %v6013_v42  ;;  %v5997_v52 = vld [vmem:[%s8586_s11 + $0x7a0] sm:$0xf] }
  0xaa   : > { %2423 = vmatpush.bf16.msrb.mxu2 %v5902_v35  ;;  %2436 = vmatpush.bf16.msrb.mxu3 %v6030_v36  ;;  %v7560_v50 = vld [vmem:[%s8586_s11 + $0x6ac] sm:$0xf0]  ;;  %v5742_v26 = vor.u32 %v7528_v46, %v5741_v45  ;;  %v5597_v54 = vld [vmem:[%s8586_s11 + $0x480] sm:$0xf] }
  0xab   : > { %v7592_v53 = vld [vmem:[%s8586_s11 + $0x7ac] sm:$0xf0]  ;;  %v5725_v56 = vld [vmem:[%s8586_s11 + $0x580] sm:$0xf]  ;;  %v5870_v58 = vor.u32 %v7560_v50, %v5869_v49 }
  0xac   : > { %2398 = vmatpush.bf16.msrb.mxu0 %v5630_v40  ;;  %2411 = vmatpush.bf16.msrb.mxu1 %v5758_v44  ;;  %v7492_v55 = vld [vmem:[%s8586_s11 + $0x48c] sm:$0xf0]  ;;  %v5998_v59 = vor.u32 %v7592_v53, %v5997_v52  ;;  %v5853_v60 = vld [vmem:[%s8586_s11 + $0x680] sm:$0xf]  ;;  %v8756_v53 = vld [vmem:[#allocation8] sm:$0xff] }
  0xad   : > { %v7524_v57 = vld [vmem:[%s8586_s11 + $0x58c] sm:$0xf0]  ;;  %v5598_v62 = vor.u32 %v7492_v55, %v5597_v54  ;;  %v5981_v63 = vld [vmem:[%s8586_s11 + $0x780] sm:$0xf]  ;;  %v547_v54 = vperm.slane %v8756_v53, 1 }
  0xae   : > { %2424 = vmatpush.bf16.msrb.mxu2 %v5886_v47  ;;  %2437 = vmatpush.bf16.msrb.mxu3 %v6014_v48  ;;  %v7556_v61 = vld [vmem:[%s8586_s11 + $0x68c] sm:$0xf0]  ;;  %v5726_v1 = vor.u32 %v7524_v57, %v5725_v56  ;;  %v5581_v2 = vld [vmem:[%s8586_s11 + $0x460] sm:$0xf] }
  0xaf   : > { %v7588_v0 = vld [vmem:[%s8586_s11 + $0x78c] sm:$0xf0]  ;;  %v5709_v4 = vld [vmem:[%s8586_s11 + $0x560] sm:$0xf]  ;;  %v5854_v6 = vor.u32 %v7556_v61, %v5853_v60  ;;  %v7406_v61 = vld [vmem:[%s8586_s11 + $0x1e4] sm:$0xf] }
  0xb0   : > { %2399 = vmatpush.bf16.msrb.mxu0 %v5614_v51  ;;  %2412 = vmatpush.bf16.msrb.mxu1 %v5742_v26  ;;  %v7488_v3 = vld [vmem:[%s8586_s11 + $0x46c] sm:$0xf0]  ;;  %v5982_v7 = vor.u32 %v7588_v0, %v5981_v63  ;;  %v5565_v10 = vld [vmem:[%s8586_s11 + $0x440] sm:$0xf]  ;;  %v546_v26 = vperm.slane %v8756_v53, 0 }
  0xb1   : > { %v7520_v5 = vld [vmem:[%s8586_s11 + $0x56c] sm:$0xf0]  ;;  %v5582_v8 = vor.u32 %v7488_v3, %v5581_v2  ;;  %v5693_v12 = vld [vmem:[%s8586_s11 + $0x540] sm:$0xf] }
  0xb2   : > { %2425 = vmatpush.bf16.msrb.mxu2 %v5870_v58  ;;  %2438 = vmatpush.bf16.msrb.mxu3 %v5998_v59  ;;  %v5710_v9 = vor.u32 %v7520_v5, %v5709_v4  ;;  %v7484_v11 = vld [vmem:[%s8586_s11 + $0x44c] sm:$0xf0]  ;;  %v5837_v16 = vld [vmem:[%s8586_s11 + $0x660] sm:$0xf]  ;;  %v7374_v58 = vld [vmem:[%s8586_s11 + $0xe4] sm:$0xf] }
  0xb3   : > { %v7516_v13 = vld [vmem:[%s8586_s11 + $0x54c] sm:$0xf0]  ;;  %v5566_v14 = vor.u32 %v7484_v11, %v5565_v10  ;;  %v5965_v18 = vld [vmem:[%s8586_s11 + $0x760] sm:$0xf]  ;;  %v5135_v59 = vld [vmem:[%s8586_s11 + $0xf0] sm:$0xf0] }
  0xb4   : > { %2400 = vmatpush.bf16.msrb.mxu0 %v5598_v62  ;;  %2413 = vmatpush.bf16.msrb.mxu1 %v5726_v1  ;;  %v5694_v15 = vor.u32 %v7516_v13, %v5693_v12  ;;  %v7552_v17 = vld [vmem:[%s8586_s11 + $0x66c] sm:$0xf0]  ;;  %v5549_v22 = vld [vmem:[%s8586_s11 + $0x420] sm:$0xf]  ;;  %v5263_v62 = vld [vmem:[%s8586_s11 + $0x1f0] sm:$0xf0]  ;;  %v5138_v2 = vor.u32 %v7374_v58, %v5135_v59 }
  0xb5   : > { %v5838_v19 = vor.u32 %v7552_v17, %v5837_v16  ;;  %v7584_v20 = vld [vmem:[%s8586_s11 + $0x76c] sm:$0xf0]  ;;  %v5677_v25 = vld [vmem:[%s8586_s11 + $0x520] sm:$0xf]  ;;  %v548_v1 = vperm.slane %v8756_v53, 2  ;;  %v549_v4 = vperm.slane %v8756_v53, 3  ;;  %v5266_v5 = vor.u32 %v7406_v61, %v5263_v62 }
  0xb6   : > { %2426 = vmatpush.bf16.msrb.mxu2 %v5854_v6  ;;  %2439 = vmatpush.bf16.msrb.mxu3 %v5982_v7  ;;  %v5966_v21 = vor.u32 %v7584_v20, %v5965_v18  ;;  %v7480_v23 = vld [vmem:[%s8586_s11 + $0x42c] sm:$0xf0]  ;;  %v5821_v29 = vld [vmem:[%s8586_s11 + $0x640] sm:$0xf]  ;;  %v7370_v6 = vld [vmem:[%s8586_s11 + $0xc4] sm:$0xf] }
  0xb7   : > { %v5550_v24 = vor.u32 %v7480_v23, %v5549_v22  ;;  %v7512_v27 = vld [vmem:[%s8586_s11 + $0x52c] sm:$0xf0]  ;;  %v5949_v31 = vld [vmem:[%s8586_s11 + $0x740] sm:$0xf]  ;;  %v5119_v7 = vld [vmem:[%s8586_s11 + $0xd0] sm:$0xf0] }
  0xb8   : > { %2401 = vmatpush.bf16.msrb.mxu0 %v5582_v8  ;;  %2414 = vmatpush.bf16.msrb.mxu1 %v5710_v9  ;;  %v5678_v28 = vor.u32 %v7512_v27, %v5677_v25  ;;  %v7548_v30 = vld [vmem:[%s8586_s11 + $0x64c] sm:$0xf0]  ;;  %v5533_v35 = vld [vmem:[%s8586_s11 + $0x400] sm:$0xf]  ;;  %v7402_v9 = vld [vmem:[%s8586_s11 + $0x1c4] sm:$0xf]  ;;  %v5122_v17 = vor.u32 %v7370_v6, %v5119_v7 }
  0xb9   : > { %v5822_v32 = vor.u32 %v7548_v30, %v5821_v29  ;;  %v7580_v33 = vld [vmem:[%s8586_s11 + $0x74c] sm:$0xf0]  ;;  %v5661_v37 = vld [vmem:[%s8586_s11 + $0x500] sm:$0xf]  ;;  %v5247_v10 = vld [vmem:[%s8586_s11 + $0x1d0] sm:$0xf0] }
  0xba   : > { %2427 = vmatpush.bf16.msrb.mxu2 %v5838_v19  ;;  %2440 = vmatpush.bf16.msrb.mxu3 %v5966_v21  ;;  %v5950_v34 = vor.u32 %v7580_v33, %v5949_v31  ;;  %v7476_v36 = vld [vmem:[%s8586_s11 + $0x40c] sm:$0xf0]  ;;  %v5805_v41 = vld [vmem:[%s8586_s11 + $0x620] sm:$0xf]  ;;  %v7438_v12 = vld [vmem:[%s8586_s11 + $0x2e4] sm:$0xf]  ;;  %v5250_v23 = vor.u32 %v7402_v9, %v5247_v10 }
  0xbb   : > { %v5534_v38 = vor.u32 %v7476_v36, %v5533_v35  ;;  %v7508_v39 = vld [vmem:[%s8586_s11 + $0x50c] sm:$0xf0]  ;;  %v5933_v44 = vld [vmem:[%s8586_s11 + $0x720] sm:$0xf]  ;;  %v5391_v13 = vld [vmem:[%s8586_s11 + $0x2f0] sm:$0xf0] }
  0xbc   : > { %2402 = vmatpush.bf16.msrb.mxu0 %v5566_v14  ;;  %2415 = vmatpush.bf16.msrb.mxu1 %v5694_v15  ;;  %v5662_v40 = vor.u32 %v7508_v39, %v5661_v37  ;;  %v7544_v42 = vld [vmem:[%s8586_s11 + $0x62c] sm:$0xf0]  ;;  %v5789_v47 = vld [vmem:[%s8586_s11 + $0x600] sm:$0xf]  ;;  %v7470_v18 = vld [vmem:[%s8586_s11 + $0x3e4] sm:$0xf] }
  0xbd   : > { %v5806_v43 = vor.u32 %v7544_v42, %v5805_v41  ;;  %v7576_v45 = vld [vmem:[%s8586_s11 + $0x72c] sm:$0xf0]  ;;  %v5917_v50 = vld [vmem:[%s8586_s11 + $0x700] sm:$0xf]  ;;  %v7366_v25 = vld [vmem:[%s8586_s11 + $0xa4] sm:$0xf] }
  0xbe   : > { %2428 = vmatpush.bf16.msrb.mxu2 %v5822_v32  ;;  %2441 = vmatpush.bf16.msrb.mxu3 %v5950_v34  ;;  %v5934_v46 = vor.u32 %v7576_v45, %v5933_v44  ;;  %v7540_v48 = vld [vmem:[%s8586_s11 + $0x60c] sm:$0xf0]  ;;  %v5103_v27 = vld [vmem:[%s8586_s11 + $0xb0] sm:$0xf0]  ;;  %v7398_v30 = vld [vmem:[%s8586_s11 + $0x1a4] sm:$0xf]  ;;  %v5394_v34 = vor.u32 %v7438_v12, %v5391_v13 }
  0xbf   : > { %v5790_v49 = vor.u32 %v7540_v48, %v5789_v47  ;;  %v7572_v51 = vld [vmem:[%s8586_s11 + $0x70c] sm:$0xf0]  ;;  %v5231_v31 = vld [vmem:[%s8586_s11 + $0x1b0] sm:$0xf0]  ;;  %v550_v35 = vperm.slane %v8756_v53, 4  ;;  %v551_v48 = vperm.slane %v8756_v53, 5 }
  0xc0   : > { %2403 = vmatpush.bf16.msrb.mxu0 %v5550_v24  ;;  %2416 = vmatpush.bf16.msrb.mxu1 %v5678_v28  ;;  %v5918_v52 = vor.u32 %v7572_v51, %v5917_v50  ;;  %v7990_v19 = vld [vmem:[#allocation12] ss:$0 sm:$0xff]  ;;  %v7991_v20 = vld [vmem:[#allocation14] ss:$0 sm:$0xff]  ;;  %v5519_v24 = vld [vmem:[%s8586_s11 + $0x3f0] sm:$0xf0]  ;;  %v5234_v44 = vor.u32 %v7398_v30, %v5231_v31 }
  0xc1   : > { %v5522_v37 = vor.u32 %v7470_v18, %v5519_v24  ;;  %v7434_v39 = vld [vmem:[%s8586_s11 + $0x2c4] sm:$0xf]  ;;  %v5503_v45 = vld [vmem:[%s8586_s11 + $0x3d0] sm:$0xf0]  ;;  %v552_v12 = vperm.slane %v8756_v53, 6 }
  0xc2   : > { %2429 = vmatpush.bf16.msrb.mxu2 %v5806_v43  ;;  %2442 = vmatpush.bf16.msrb.mxu3 %v5934_v46  ;;  %v7466_v41 = vld [vmem:[%s8586_s11 + $0x3c4] sm:$0xf]  ;;  %v5087_v47 = vld [vmem:[%s8586_s11 + $0x90] sm:$0xf0] }
  0xc3   : > { %v7362_v46 = vld [vmem:[%s8586_s11 + $0x84] sm:$0xf]  ;;  %v5215_v50 = vld [vmem:[%s8586_s11 + $0x190] sm:$0xf0] }
  0xc4   : > { %2404 = vmatpush.bf16.msrb.mxu0 %v5534_v38  ;;  %2417 = vmatpush.bf16.msrb.mxu1 %v5662_v40  ;;  %v5106_v38 = vor.u32 %v7366_v25, %v5103_v27  ;;  %v5375_v40 = vld [vmem:[%s8586_s11 + $0x2d0] sm:$0xf0]  ;;  %v7430_v58 = vld [vmem:[%s8586_s11 + $0x2a4] sm:$0xf] }
  0xc5   : > { %v5359_v59 = vld [vmem:[%s8586_s11 + $0x2b0] sm:$0xf0]  ;;  %v7390_v6 = vld [vmem:[%s8586_s11 + $0x164] sm:$0xf] }
  0xc6   : > { %2430 = vmatpush.bf16.msrb.mxu2 %v5790_v49  ;;  %2443 = vmatpush.bf16.msrb.mxu3 %v5918_v52  ;;  %v7394_v49 = vld [vmem:[%s8586_s11 + $0x184] sm:$0xf]  ;;  %v5199_v7 = vld [vmem:[%s8586_s11 + $0x170] sm:$0xf0] }
  0xc7   : > { %v5055_v25 = vld [vmem:[%s8586_s11 + $0x50] sm:$0xf0]  ;;  %v7386_v27 = vld [vmem:[%s8586_s11 + $0x144] sm:$0xf] }
  0xf7   : > { %v771_v28 = vpop.permute.xlu0 %770 }
  0xf8   : > { %v776_v32 = vmul.f32 %v7990_v19, %v771_v28  ;;  %v5183_v28 = vld [vmem:[%s8586_s11 + $0x150] sm:$0xf0] }
  0xfa   : > { %v8790_v42 = vadd.f32 %v7991_v20, %v776_v32  ;;  %v5202_v20 = vor.u32 %v7390_v6, %v5199_v7  ;;  %v5647_v6 = vld [vmem:[%s8586_s11 + $0x4f0] sm:$0xf0]  ;;  %v7534_v7 = vld [vmem:[%s8586_s11 + $0x5e4] sm:$0xf] }
  0xfc   : > { %v655_v55 = vpop.f32.mrf.mxu0  ;;  %v668_v57 = vpop.f32.mrf.mxu1  ;;  %v782_v51 = vmax.f32 %v8790_v42, 0.0 }
  0xfd   : > { %v656_v56 = vadd.f32 %v655_v55, %v546_v26  ;;  %v669_v60 = vadd.f32 %v668_v57, %v547_v54  ;;  %v5378_v26 = vor.u32 %v7434_v39, %v5375_v40  ;;  %v5090_v57 = vor.u32 %v7362_v46, %v5087_v47 }
  0xfe   : > { %v5186_v40 = vor.u32 %v7386_v27, %v5183_v28  ;;  %v5759_v27 = vld [vmem:[%s8586_s11 + $0x5d0] sm:$0xf0] }
  0xff   : > { %v750_v63 = vmax.f32 %v656_v56, 0.0  ;;  %v751_v0 = vmax.f32 %v669_v60, 0.0  ;;  %v5506_v56 = vor.u32 %v7466_v41, %v5503_v45  ;;  %v7992_v60 = vld [vmem:[#allocation15] ss:$0 sm:$0xff] }
 0x100   : > { %v785_v9 = vmul.f32 %v7992_v60, %v782_v51  ;;  %v5455_v41 = vld [vmem:[%s8586_s11 + $0x370] sm:$0xf0] }
 0x101   : > { %v8765_v3 = vpack.c.bf16 %v750_v63, %v750_v63  ;;  %v8770_v8 = vpack.c.bf16 %v751_v0, %v751_v0  ;;  %v5218_v63 = vor.u32 %v7394_v49, %v5215_v50  ;;  %v7462_v0 = vld [vmem:[%s8586_s11 + $0x3a4] sm:$0xf]  ;;  %v5039_v45 = vld [vmem:[%s8586_s11 + $0x30] sm:$0xf0] }
 0x102   : > { %786 = vadd.xlane.f32.xlu0 %v785_v9  ;;  %v5167_v49 = vld [vmem:[%s8586_s11 + $0x130] sm:$0xf0] }
 0x103   : > { %2353 = vmatmul.bf16.vlgmr.msra.gmra.mxu0 %v8765_v3  ;;  %2366 = vmatmul.bf16.vlgmr.msra.gmra.mxu1 %v8770_v8  ;;  %v5775_v9 = vld [vmem:[%s8586_s11 + $0x5f0] sm:$0xf0] }
 0x104   : > { %v681_v11 = vpop.f32.mrf.mxu2  ;;  %v694_v15 = vpop.f32.mrf.mxu3  ;;  %2449 = vmatpush.bf16.msra.mxu0 %v5138_v2  ;;  %2462 = vmatpush.bf16.msra.mxu1 %v5266_v5  ;;  %v7358_v2 = vld [vmem:[%s8586_s11 + $0x64] sm:$0xf]  ;;  %v5071_v5 = vld [vmem:[%s8586_s11 + $0x70] sm:$0xf0] }
 0x105   : > { %v682_v14 = vadd.f32 %v681_v11, %v548_v1  ;;  %v657_v16 = vpop.f32.mrf.mxu0  ;;  %v695_v21 = vadd.f32 %v694_v15, %v549_v4  ;;  %v670_v22 = vpop.f32.mrf.mxu1  ;;  %v5487_v1 = vld [vmem:[%s8586_s11 + $0x3b0] sm:$0xf0]  ;;  %v5362_v11 = vor.u32 %v7430_v58, %v5359_v59  ;;  %v553_v15 = vperm.slane %v8756_v53, 7 }
 0x106   : > { %v7426_v16 = vld [vmem:[%s8586_s11 + $0x284] sm:$0xf]  ;;  %v5074_v19 = vor.u32 %v7358_v2, %v5071_v5  ;;  %v5471_v22 = vld [vmem:[%s8586_s11 + $0x390] sm:$0xf0] }
 0x107   : > { %v752_v29 = vmax.f32 %v682_v14, 0.0  ;;  %v753_v33 = vmax.f32 %v695_v21, 0.0  ;;  %v5490_v14 = vor.u32 %v7462_v0, %v5487_v1  ;;  %v7458_v21 = vld [vmem:[%s8586_s11 + $0x384] sm:$0xf]  ;;  %v5151_v1 = vld [vmem:[%s8586_s11 + $0x110] sm:$0xf0] }
 0x108   : > { %2450 = vmatpush.bf16.msra.mxu0 %v5122_v17  ;;  %2463 = vmatpush.bf16.msra.mxu1 %v5250_v23  ;;  %v5343_v17 = vld [vmem:[%s8586_s11 + $0x290] sm:$0xf0]  ;;  %v7354_v23 = vld [vmem:[%s8586_s11 + $0x44] sm:$0xf]  ;;  %v5474_v32 = vor.u32 %v7458_v21, %v5471_v22 }
 0x109   : > { %v8785_v36 = vpack.c.bf16 %v752_v29, %v752_v29  ;;  %v8792_v43 = vpack.c.bf16 %v753_v33, %v753_v33  ;;  %v5346_v29 = vor.u32 %v7426_v16, %v5343_v17  ;;  %v7422_v33 = vld [vmem:[%s8586_s11 + $0x264] sm:$0xf]  ;;  %v5058_v39 = vor.u32 %v7354_v23, %v5055_v25  ;;  %v5423_v17 = vld [vmem:[%s8586_s11 + $0x330] sm:$0xf0] }
 0x10a   : > { %v7378_v0 = vld [vmem:[%s8586_s11 + $0x104] sm:$0xf]  ;;  %v5631_v23 = vld [vmem:[%s8586_s11 + $0x4d0] sm:$0xf0] }
 0x10b   : > { %2379 = vmatmul.bf16.vlgmr.msra.gmra.mxu2 %v8785_v36  ;;  %2392 = vmatmul.bf16.vlgmr.msra.gmra.mxu3 %v8792_v43  ;;  %v7502_v2 = vld [vmem:[%s8586_s11 + $0x4e4] sm:$0xf] }
 0x10c   : > { %2475 = vmatpush.bf16.msra.mxu2 %v5394_v34  ;;  %v683_v52 = vpop.f32.mrf.mxu2  ;;  %2488 = vmatpush.bf16.msra.mxu3 %v5522_v37  ;;  %v696_v54 = vpop.f32.mrf.mxu3  ;;  %v5327_v34 = vld [vmem:[%s8586_s11 + $0x270] sm:$0xf0]  ;;  %v7446_v16 = vld [vmem:[%s8586_s11 + $0x324] sm:$0xf] }
 0x10d   : > { %2451 = vmatpush.bf16.msra.mxu0 %v5106_v38  ;;  %v707_v55 = vpop.f32.mrf.mxu0  ;;  %2464 = vmatpush.bf16.msra.mxu1 %v5234_v44  ;;  %v720_v62 = vpop.f32.mrf.mxu1  ;;  %v7350_v44 = vld [vmem:[%s8586_s11 + $0x24] sm:$0xf]  ;;  %v5330_v52 = vor.u32 %v7422_v33, %v5327_v34  ;;  %v5426_v28 = vor.u32 %v7446_v16, %v5423_v17  ;;  %v5903_v33 = vld [vmem:[%s8586_s11 + $0x6f0] sm:$0xf0] }
 0x10e   : > { %v708_v61 = vadd.f32 %v707_v55, %v550_v35  ;;  %v721_v4 = vadd.f32 %v720_v62, %v551_v48  ;;  %v7454_v35 = vld [vmem:[%s8586_s11 + $0x364] sm:$0xf]  ;;  %v5042_v59 = vor.u32 %v7350_v44, %v5039_v45  ;;  %v5743_v45 = vld [vmem:[%s8586_s11 + $0x5b0] sm:$0xf0] }
 0x10f   : > { %v7382_v48 = vld [vmem:[%s8586_s11 + $0x124] sm:$0xf]  ;;  %v5458_v54 = vor.u32 %v7454_v35, %v5455_v41  ;;  %v5615_v41 = vld [vmem:[%s8586_s11 + $0x4b0] sm:$0xf0] }
 0x110   : > { %v754_v10 = vmax.f32 %v708_v61, 0.0  ;;  %2476 = vmatpush.bf16.msra.mxu2 %v5378_v26  ;;  %v755_v13 = vmax.f32 %v721_v4, 0.0  ;;  %2489 = vmatpush.bf16.msra.mxu3 %v5506_v56  ;;  %v7418_v55 = vld [vmem:[%s8586_s11 + $0x244] sm:$0xf]  ;;  %v5311_v56 = vld [vmem:[%s8586_s11 + $0x250] sm:$0xf0]  ;;  %v5170_v60 = vor.u32 %v7382_v48, %v5167_v49 }
 0x111   : > { %2452 = vmatpush.bf16.msra.mxu0 %v5090_v57  ;;  %2465 = vmatpush.bf16.msra.mxu1 %v5218_v63  ;;  %v7450_v57 = vld [vmem:[%s8586_s11 + $0x344] sm:$0xf]  ;;  %v5439_v61 = vld [vmem:[%s8586_s11 + $0x350] sm:$0xf0]  ;;  %v5314_v4 = vor.u32 %v7418_v55, %v5311_v56 }
 0x112   : > { %v8817_v18 = vpack.c.bf16 %v754_v10, %v754_v10  ;;  %v8822_v24 = vpack.c.bf16 %v755_v13, %v755_v13  ;;  %v7346_v62 = vld [vmem:[%s8586_s11 + $0x4] sm:$0xf]  ;;  %v5023_v63 = vld [vmem:[%s8586_s11 + $0x10] sm:$0xf0]  ;;  %v5442_v10 = vor.u32 %v7450_v57, %v5439_v61 }
 0x113   : > { %v5295_v13 = vld [vmem:[%s8586_s11 + $0x230] sm:$0xf0]  ;;  %v7498_v21 = vld [vmem:[%s8586_s11 + $0x4c4] sm:$0xf] }
 0x114   : > { %2477 = vmatpush.bf16.msra.mxu2 %v5362_v11  ;;  %v733_v53 = vpop.f32.mrf.mxu2  ;;  %2405 = vmatmul.bf16.vlgmr.msrb.gmra.mxu0 %v8817_v18  ;;  %v746_v31 = vpop.f32.mrf.mxu3  ;;  %v7530_v25 = vld [vmem:[%s8586_s11 + $0x5c4] sm:$0xf]  ;;  %v5634_v34 = vor.u32 %v7498_v21, %v5631_v23  ;;  %v6015_v56 = vld [vmem:[%s8586_s11 + $0x7d0] sm:$0xf0] }
 0x115   : > { %2490 = vmatpush.bf16.msra.mxu3 %v5490_v14  ;;  %v734_v30 = vadd.f32 %v733_v53, %v552_v12  ;;  %2418 = vmatmul.bf16.vlgmr.msrb.gmra.mxu1 %v8822_v24  ;;  %v709_v37 = vpop.f32.mrf.mxu0  ;;  %v747_v38 = vadd.f32 %v746_v31, %v553_v15  ;;  %v722_v46 = vpop.f32.mrf.mxu1  ;;  %v7414_v12 = vld [vmem:[%s8586_s11 + $0x224] sm:$0xf]  ;;  %v5026_v14 = vor.u32 %v7346_v62, %v5023_v63  ;;  %v5407_v31 = vld [vmem:[%s8586_s11 + $0x310] sm:$0xf0] }
 0x116   : > { %2453 = vmatpush.bf16.msra.mxu0 %v5074_v19  ;;  %2466 = vmatpush.bf16.msra.mxu1 %v5202_v20  ;;  %v5154_v15 = vor.u32 %v7378_v0, %v5151_v1  ;;  %v5650_v19 = vor.u32 %v7502_v2, %v5647_v6  ;;  %v5778_v20 = vor.u32 %v7534_v7, %v5775_v9  ;;  %v7410_v53 = vld [vmem:[%s8586_s11 + $0x204] sm:$0xf]  ;;  %v5727_v61 = vld [vmem:[%s8586_s11 + $0x590] sm:$0xf0] }
 0x117   : > { %v756_v47 = vmax.f32 %v734_v30, 0.0  ;;  %v757_v50 = vmax.f32 %v747_v38, 0.0  ;;  %v5298_v22 = vor.u32 %v7414_v12, %v5295_v13  ;;  %v7442_v30 = vld [vmem:[%s8586_s11 + $0x304] sm:$0xf]  ;;  %v5762_v35 = vor.u32 %v7530_v25, %v5759_v27  ;;  %v6031_v38 = vld [vmem:[%s8586_s11 + $0x7f0] sm:$0xf0] }
 0x118   : > { %2478 = vmatpush.bf16.msra.mxu2 %v5346_v29  ;;  %v5279_v29 = vld [vmem:[%s8586_s11 + $0x210] sm:$0xf0]  ;;  %v7598_v37 = vld [vmem:[%s8586_s11 + $0x7e4] sm:$0xf]  ;;  %v5410_v46 = vor.u32 %v7442_v30, %v5407_v31 }
 0x119   : > { %v8837_v26 = vpack.c.bf16 %v756_v47, %v756_v47  ;;  %2491 = vmatpush.bf16.msra.mxu3 %v5474_v32  ;;  %v8842_v58 = vpack.c.bf16 %v757_v50, %v757_v50  ;;  %v7566_v32 = vld [vmem:[%s8586_s11 + $0x6e4] sm:$0xf]  ;;  %v6034_v48 = vor.u32 %v7598_v37, %v6031_v38  ;;  %v5887_v50 = vld [vmem:[%s8586_s11 + $0x6d0] sm:$0xf0] }
 0x11a   : > { %2454 = vmatpush.bf16.msra.mxu0 %v5058_v39  ;;  %2467 = vmatpush.bf16.msra.mxu1 %v5186_v40  ;;  %v7494_v39 = vld [vmem:[%s8586_s11 + $0x4a4] sm:$0xf]  ;;  %v5282_v40 = vor.u32 %v7410_v53, %v5279_v29  ;;  %v5906_v47 = vor.u32 %v7566_v32, %v5903_v33  ;;  %v5871_v1 = vld [vmem:[%s8586_s11 + $0x6b0] sm:$0xf0] }
 0x11b   : > { %2431 = vmatmul.bf16.vlgmr.msrb.gmra.mxu2 %v8837_v26  ;;  %2444 = vmatmul.bf16.vlgmr.msrb.gmra.mxu3 %v8842_v58  ;;  %v7526_v44 = vld [vmem:[%s8586_s11 + $0x5a4] sm:$0xf]  ;;  %v5999_v6 = vld [vmem:[%s8586_s11 + $0x7b0] sm:$0xf0] }
 0x11c   : > { %2479 = vmatpush.bf16.msra.mxu2 %v5330_v52  ;;  %v735_v5 = vpop.f32.mrf.mxu2  ;;  %v748_v11 = vpop.f32.mrf.mxu3  ;;  %v7562_v49 = vld [vmem:[%s8586_s11 + $0x6c4] sm:$0xf]  ;;  %v5618_v52 = vor.u32 %v7494_v39, %v5615_v41  ;;  %v5583_v9 = vld [vmem:[%s8586_s11 + $0x470] sm:$0xf0] }
 0x11d   : > { %2492 = vmatpush.bf16.msra.mxu3 %v5458_v54  ;;  %v5746_v54 = vor.u32 %v7526_v44, %v5743_v45  ;;  %v7594_v55 = vld [vmem:[%s8586_s11 + $0x7c4] sm:$0xf]  ;;  %v5890_v62 = vor.u32 %v7562_v49, %v5887_v50  ;;  %v5711_v11 = vld [vmem:[%s8586_s11 + $0x570] sm:$0xf0] }
 0x11e   : > { %2455 = vmatpush.bf16.msra.mxu0 %v5042_v59  ;;  %2468 = vmatpush.bf16.msra.mxu1 %v5170_v60  ;;  %v7490_v57 = vld [vmem:[%s8586_s11 + $0x484] sm:$0xf]  ;;  %v5599_v59 = vld [vmem:[%s8586_s11 + $0x490] sm:$0xf0]  ;;  %v6018_v63 = vor.u32 %v7594_v55, %v6015_v56  ;;  %v5141_v55 = vld [vmem:[%s8586_s11 + $0xe8] sm:$0xf] }
 0x11f   : > { %v7522_v60 = vld [vmem:[%s8586_s11 + $0x584] sm:$0xf]  ;;  %v5602_v2 = vor.u32 %v7490_v57, %v5599_v59  ;;  %v5695_v25 = vld [vmem:[%s8586_s11 + $0x550] sm:$0xf0]  ;;  %v7377_v57 = vld [vmem:[%s8586_s11 + $0xf4] sm:$0xf0] }
 0x120   : > { %2480 = vmatpush.bf16.msra.mxu2 %v5314_v4  ;;  %v7558_v0 = vld [vmem:[%s8586_s11 + $0x6a4] sm:$0xf]  ;;  %v5730_v4 = vor.u32 %v7522_v60, %v5727_v61  ;;  %v5839_v29 = vld [vmem:[%s8586_s11 + $0x670] sm:$0xf0]  ;;  %v5269_v59 = vld [vmem:[%s8586_s11 + $0x1e8] sm:$0xf] }
 0x121   : > { %2493 = vmatpush.bf16.msra.mxu3 %v5442_v10  ;;  %v7590_v5 = vld [vmem:[%s8586_s11 + $0x7a4] sm:$0xf]  ;;  %v5874_v12 = vor.u32 %v7558_v0, %v5871_v1  ;;  %v5967_v33 = vld [vmem:[%s8586_s11 + $0x770] sm:$0xf0]  ;;  %v7409_v60 = vld [vmem:[%s8586_s11 + $0x1f4] sm:$0xf0] }
 0x122   : > { %2456 = vmatpush.bf16.msra.mxu0 %v5026_v14  ;;  %2469 = vmatpush.bf16.msra.mxu1 %v5154_v15  ;;  %v7486_v7 = vld [vmem:[%s8586_s11 + $0x464] sm:$0xf]  ;;  %v6002_v13 = vor.u32 %v7590_v5, %v5999_v6  ;;  %v5855_v15 = vld [vmem:[%s8586_s11 + $0x690] sm:$0xf0]  ;;  %v5142_v5 = vor.u32 %v7377_v57, %v5141_v55  ;;  %v5270_v6 = vor.u32 %v7409_v60, %v5269_v59  ;;  %v7465_v55 = vld [vmem:[%s8586_s11 + $0x3b4] sm:$0xf0] }
 0x123   : > { %v7518_v10 = vld [vmem:[%s8586_s11 + $0x564] sm:$0xf]  ;;  %v5586_v16 = vor.u32 %v7486_v7, %v5583_v9  ;;  %v5679_v38 = vld [vmem:[%s8586_s11 + $0x530] sm:$0xf0]  ;;  %v5125_v7 = vld [vmem:[%s8586_s11 + $0xc8] sm:$0xf] }
 0x124   : > { %2481 = vmatpush.bf16.msra.mxu2 %v5298_v22  ;;  %v7554_v14 = vld [vmem:[%s8586_s11 + $0x684] sm:$0xf]  ;;  %v5714_v17 = vor.u32 %v7518_v10, %v5711_v11  ;;  %v5567_v22 = vld [vmem:[%s8586_s11 + $0x450] sm:$0xf0]  ;;  %v7373_v10 = vld [vmem:[%s8586_s11 + $0xd4] sm:$0xf0] }
 0x125   : > { %2494 = vmatpush.bf16.msra.mxu3 %v5426_v28  ;;  %2457 = vmatmul.bf16.vlgmr.msra.gmra.mxu0 %v8765_v3  ;;  %v7482_v21 = vld [vmem:[%s8586_s11 + $0x444] sm:$0xf]  ;;  %v5858_v27 = vor.u32 %v7554_v14, %v5855_v15  ;;  %v5823_v44 = vld [vmem:[%s8586_s11 + $0x650] sm:$0xf0]  ;;  %v5253_v11 = vld [vmem:[%s8586_s11 + $0x1c8] sm:$0xf] }
 0x126   : > { %2501 = vmatpush.bf16.msrb.mxu0 %v5650_v19  ;;  %2514 = vmatpush.bf16.msrb.mxu1 %v5778_v20  ;;  %v7586_v19 = vld [vmem:[%s8586_s11 + $0x784] sm:$0xf]  ;;  %v5983_v20 = vld [vmem:[%s8586_s11 + $0x790] sm:$0xf0]  ;;  %v5570_v30 = vor.u32 %v7482_v21, %v5567_v22  ;;  %v5126_v21 = vor.u32 %v7373_v10, %v5125_v7  ;;  %v5077_v57 = vld [vmem:[%s8586_s11 + $0x68] sm:$0xf] }
 0x127   : > { %2470 = vmatmul.bf16.vlgmr.msra.gmra.mxu1 %v8770_v8  ;;  %v7514_v23 = vld [vmem:[%s8586_s11 + $0x544] sm:$0xf]  ;;  %v5986_v28 = vor.u32 %v7586_v19, %v5983_v20  ;;  %v5535_v50 = vld [vmem:[%s8586_s11 + $0x410] sm:$0xf0]  ;;  %v5397_v19 = vld [vmem:[%s8586_s11 + $0x2e8] sm:$0xf] }
 0x128   : > { %2482 = vmatpush.bf16.msra.mxu2 %v5282_v40  ;;  %v7550_v53 = vld [vmem:[%s8586_s11 + $0x664] sm:$0xf]  ;;  %v5698_v31 = vor.u32 %v7514_v23, %v5695_v25  ;;  %v5791_v15 = vld [vmem:[%s8586_s11 + $0x610] sm:$0xf0]  ;;  %v7441_v20 = vld [vmem:[%s8586_s11 + $0x2f4] sm:$0xf0] }
 0x129   : > { %2495 = vmatpush.bf16.msra.mxu3 %v5410_v46  ;;  %v7582_v32 = vld [vmem:[%s8586_s11 + $0x764] sm:$0xf]  ;;  %v5842_v39 = vor.u32 %v7550_v53, %v5839_v29  ;;  %v5525_v23 = vld [vmem:[%s8586_s11 + $0x3e8] sm:$0xf]  ;;  %v7473_v25 = vld [vmem:[%s8586_s11 + $0x3f4] sm:$0xf0] }
 0x12a   : > { %2502 = vmatpush.bf16.msrb.mxu0 %v5634_v34  ;;  %2515 = vmatpush.bf16.msrb.mxu1 %v5762_v35  ;;  %v7478_v34 = vld [vmem:[%s8586_s11 + $0x424] sm:$0xf]  ;;  %v5551_v35 = vld [vmem:[%s8586_s11 + $0x430] sm:$0xf0]  ;;  %v5970_v40 = vor.u32 %v7582_v32, %v5967_v33  ;;  %v7369_v53 = vld [vmem:[%s8586_s11 + $0xb4] sm:$0xf0]  ;;  %v5526_v33 = vor.u32 %v7473_v25, %v5525_v23 }
 0x12b   : > { %2483 = vmatmul.bf16.vlgmr.msra.gmra.mxu2 %v8785_v36  ;;  %v7510_v37 = vld [vmem:[%s8586_s11 + $0x524] sm:$0xf]  ;;  %v5554_v46 = vor.u32 %v7478_v34, %v5551_v35  ;;  %v7401_v32 = vld [vmem:[%s8586_s11 + $0x1b4] sm:$0xf0]  ;;  %v5381_v34 = vld [vmem:[%s8586_s11 + $0x2c8] sm:$0xf] }
 0x12c   : > { %2527 = vmatpush.bf16.msrb.mxu2 %v5906_v47  ;;  %2496 = vmatmul.bf16.vlgmr.msra.gmra.mxu3 %v8792_v43  ;;  %v7546_v41 = vld [vmem:[%s8586_s11 + $0x644] sm:$0xf]  ;;  %v5682_v47 = vor.u32 %v7510_v37, %v5679_v38  ;;  %v7437_v35 = vld [vmem:[%s8586_s11 + $0x2d4] sm:$0xf0]  ;;  %v5509_v38 = vld [vmem:[%s8586_s11 + $0x3c8] sm:$0xf] }
 0x12d   : > { %2540 = vmatpush.bf16.msrb.mxu3 %v6034_v48  ;;  %v7578_v45 = vld [vmem:[%s8586_s11 + $0x744] sm:$0xf]  ;;  %v5951_v48 = vld [vmem:[%s8586_s11 + $0x750] sm:$0xf0]  ;;  %v5826_v56 = vor.u32 %v7546_v41, %v5823_v44  ;;  %v5093_v41 = vld [vmem:[%s8586_s11 + $0x88] sm:$0xf] }
 0x12e   : > { %2503 = vmatpush.bf16.msrb.mxu0 %v5618_v52  ;;  %2516 = vmatpush.bf16.msrb.mxu1 %v5746_v54  ;;  %v7474_v49 = vld [vmem:[%s8586_s11 + $0x404] sm:$0xf]  ;;  %v5663_v54 = vld [vmem:[%s8586_s11 + $0x510] sm:$0xf0]  ;;  %v5954_v61 = vor.u32 %v7578_v45, %v5951_v48  ;;  %v7365_v44 = vld [vmem:[%s8586_s11 + $0x94] sm:$0xf0]  ;;  %v5382_v45 = vor.u32 %v7437_v35, %v5381_v34 }
 0x12f   : > { %v7506_v52 = vld [vmem:[%s8586_s11 + $0x504] sm:$0xf]  ;;  %v5538_v0 = vor.u32 %v7474_v49, %v5535_v50  ;;  %v5365_v49 = vld [vmem:[%s8586_s11 + $0x2a8] sm:$0xf]  ;;  %v7433_v50 = vld [vmem:[%s8586_s11 + $0x2b4] sm:$0xf0] }
 0x130   : > { %2528 = vmatpush.bf16.msrb.mxu2 %v5890_v62  ;;  %v7542_v62 = vld [vmem:[%s8586_s11 + $0x624] sm:$0xf]  ;;  %v5666_v1 = vor.u32 %v7506_v52, %v5663_v54  ;;  %v5094_v52 = vor.u32 %v7365_v44, %v5093_v41  ;;  %v5493_v54 = vld [vmem:[%s8586_s11 + $0x3a8] sm:$0xf]  ;;  %v7361_v59 = vld [vmem:[%s8586_s11 + $0x74] sm:$0xf0]  ;;  %v5366_v60 = vor.u32 %v7433_v50, %v5365_v49 }
 0x131   : > { %2541 = vmatpush.bf16.msrb.mxu3 %v6018_v63  ;;  %v5807_v63 = vld [vmem:[%s8586_s11 + $0x630] sm:$0xf0]  ;;  %v7538_v14 = vld [vmem:[%s8586_s11 + $0x604] sm:$0xf]  ;;  %v5061_v7 = vld [vmem:[%s8586_s11 + $0x48] sm:$0xf] }
 0x132   : > { %2504 = vmatpush.bf16.msrb.mxu0 %v5602_v2  ;;  %2517 = vmatpush.bf16.msrb.mxu1 %v5730_v4  ;;  %v7574_v2 = vld [vmem:[%s8586_s11 + $0x724] sm:$0xf]  ;;  %v5935_v4 = vld [vmem:[%s8586_s11 + $0x730] sm:$0xf0]  ;;  %v5810_v9 = vor.u32 %v7542_v62, %v5807_v63  ;;  %v7393_v62 = vld [vmem:[%s8586_s11 + $0x174] sm:$0xf0]  ;;  %v5494_v63 = vor.u32 %v7465_v55, %v5493_v54 }
 0x133   : > { %v5173_v25 = vld [vmem:[%s8586_s11 + $0x128] sm:$0xf]  ;;  %v7349_v35 = vld [vmem:[%s8586_s11 + $0x14] sm:$0xf0] }
 0x134   : > { %2529 = vmatpush.bf16.msrb.mxu2 %v5874_v12  ;;  %v7405_v12 = vld [vmem:[%s8586_s11 + $0x1d4] sm:$0xf0]  ;;  %v5781_v44 = vld [vmem:[%s8586_s11 + $0x5e8] sm:$0xf] }
 0x135   : > { %2542 = vmatpush.bf16.msrb.mxu3 %v6002_v13  ;;  %v5938_v13 = vor.u32 %v7574_v2, %v5935_v4  ;;  %v5254_v22 = vor.u32 %v7405_v12, %v5253_v11  ;;  %v5078_v2 = vor.u32 %v7361_v59, %v5077_v57  ;;  %v5477_v4 = vld [vmem:[%s8586_s11 + $0x388] sm:$0xf]  ;;  %v7389_v12 = vld [vmem:[%s8586_s11 + $0x154] sm:$0xf0] }
 0x136   : > { %2505 = vmatpush.bf16.msrb.mxu0 %v5586_v16  ;;  %2518 = vmatpush.bf16.msrb.mxu1 %v5714_v17  ;;  %v7570_v16 = vld [vmem:[%s8586_s11 + $0x704] sm:$0xf]  ;;  %v5919_v17 = vld [vmem:[%s8586_s11 + $0x710] sm:$0xf0]  ;;  %v5189_v11 = vld [vmem:[%s8586_s11 + $0x148] sm:$0xf] }
 0x137   : > { %v5922_v29 = vor.u32 %v7570_v16, %v5919_v17  ;;  %v5461_v17 = vld [vmem:[%s8586_s11 + $0x368] sm:$0xf]  ;;  %v7505_v41 = vld [vmem:[%s8586_s11 + $0x4f4] sm:$0xf0] }
 0x138   : > { %2530 = vmatpush.bf16.msrb.mxu2 %v5858_v27  ;;  %v5794_v27 = vor.u32 %v7538_v14, %v5791_v15  ;;  %v5333_v14 = vld [vmem:[%s8586_s11 + $0x268] sm:$0xf]  ;;  %v7425_v15 = vld [vmem:[%s8586_s11 + $0x274] sm:$0xf0] }
 0x139   : > { %2543 = vmatpush.bf16.msrb.mxu3 %v5986_v28  ;;  %v5109_v28 = vld [vmem:[%s8586_s11 + $0xa8] sm:$0xf]  ;;  %v5334_v23 = vor.u32 %v7425_v15, %v5333_v14  ;;  %v7497_v14 = vld [vmem:[%s8586_s11 + $0x4b4] sm:$0xf0] }
 0x13a   : > { %2506 = vmatpush.bf16.msrb.mxu0 %v5570_v30  ;;  %2519 = vmatpush.bf16.msrb.mxu1 %v5698_v31  ;;  %v5398_v30 = vor.u32 %v7441_v20, %v5397_v19  ;;  %v5237_v31 = vld [vmem:[%s8586_s11 + $0x1a8] sm:$0xf]  ;;  %v5110_v37 = vor.u32 %v7369_v53, %v5109_v28  ;;  %v7457_v19 = vld [vmem:[%s8586_s11 + $0x374] sm:$0xf0]  ;;  %v5190_v20 = vor.u32 %v7389_v12, %v5189_v11 }
 0x13b   : > { %v5462_v28 = vor.u32 %v7457_v19, %v5461_v17  ;;  %v5317_v53 = vld [vmem:[%s8586_s11 + $0x248] sm:$0xf]  ;;  %v7529_v19 = vld [vmem:[%s8586_s11 + $0x5b4] sm:$0xf0] }
 0x13c   : > { %2531 = vmatpush.bf16.msrb.mxu2 %v5842_v39  ;;  %v7469_v39 = vld [vmem:[%s8586_s11 + $0x3d4] sm:$0xf0]  ;;  %v5429_v50 = vld [vmem:[%s8586_s11 + $0x328] sm:$0xf] }
 0x13d   : > { %2544 = vmatpush.bf16.msrb.mxu3 %v5970_v40  ;;  %v5238_v40 = vor.u32 %v7401_v32, %v5237_v31  ;;  %v5510_v48 = vor.u32 %v7469_v39, %v5509_v38  ;;  %v5445_v31 = vld [vmem:[%s8586_s11 + $0x348] sm:$0xf]  ;;  %v7453_v32 = vld [vmem:[%s8586_s11 + $0x354] sm:$0xf0] }
 0x13e   : > { %2507 = vmatpush.bf16.msrb.mxu0 %v5554_v46  ;;  %2520 = vmatpush.bf16.msrb.mxu1 %v5682_v47  ;;  %v5221_v46 = vld [vmem:[%s8586_s11 + $0x188] sm:$0xf]  ;;  %v7397_v47 = vld [vmem:[%s8586_s11 + $0x194] sm:$0xf0] }
 0x13f   : > { %v7381_v38 = vld [vmem:[%s8586_s11 + $0x114] sm:$0xf0]  ;;  %v5749_v17 = vld [vmem:[%s8586_s11 + $0x5a8] sm:$0xf] }
 0x140   : > { %2532 = vmatpush.bf16.msrb.mxu2 %v5826_v56  ;;  %v5222_v56 = vor.u32 %v7397_v47, %v5221_v46  ;;  %v7537_v46 = vld [vmem:[%s8586_s11 + $0x5f4] sm:$0xf0]  ;;  %v5301_v47 = vld [vmem:[%s8586_s11 + $0x228] sm:$0xf] }
 0x141   : > { %2545 = vmatpush.bf16.msrb.mxu3 %v5954_v61  ;;  %v5205_v61 = vld [vmem:[%s8586_s11 + $0x168] sm:$0xf]  ;;  %v5782_v57 = vor.u32 %v7537_v46, %v5781_v44  ;;  %v7489_v44 = vld [vmem:[%s8586_s11 + $0x474] sm:$0xf0] }
 0x142   : > { %2508 = vmatpush.bf16.msrb.mxu0 %v5538_v0  ;;  %2521 = vmatpush.bf16.msrb.mxu1 %v5666_v1  ;;  %v5349_v0 = vld [vmem:[%s8586_s11 + $0x288] sm:$0xf]  ;;  %v7429_v1 = vld [vmem:[%s8586_s11 + $0x294] sm:$0xf0] }
 0x143   : > { %v5350_v10 = vor.u32 %v7429_v1, %v5349_v0  ;;  %v5285_v0 = vld [vmem:[%s8586_s11 + $0x208] sm:$0xf]  ;;  %v7413_v1 = vld [vmem:[%s8586_s11 + $0x214] sm:$0xf0] }
 0x144   : > { %2533 = vmatpush.bf16.msrb.mxu2 %v5810_v9  ;;  %v7357_v9 = vld [vmem:[%s8586_s11 + $0x54] sm:$0xf0]  ;;  %v5286_v12 = vor.u32 %v7413_v1, %v5285_v0  ;;  %v5717_v46 = vld [vmem:[%s8586_s11 + $0x568] sm:$0xf] }
 0x145   : > { %2546 = vmatpush.bf16.msrb.mxu3 %v5938_v13  ;;  %2509 = vmatmul.bf16.vlgmr.msrb.gmra.mxu0 %v8817_v18  ;;  %v5062_v16 = vor.u32 %v7357_v9, %v5061_v7  ;;  %v6037_v9 = vld [vmem:[%s8586_s11 + $0x7e8] sm:$0xf]  ;;  %v7553_v1 = vld [vmem:[%s8586_s11 + $0x674] sm:$0xf0] }
 0x146   : > { %2553 = vmatpush.bf16.msra.mxu0 %v5142_v5  ;;  %2566 = vmatpush.bf16.msra.mxu1 %v5270_v6  ;;  %v7461_v5 = vld [vmem:[%s8586_s11 + $0x394] sm:$0xf0]  ;;  %v5206_v6 = vor.u32 %v7393_v62, %v5205_v61  ;;  %v5765_v61 = vld [vmem:[%s8586_s11 + $0x5c8] sm:$0xf] }
 0x147   : > { %2522 = vmatmul.bf16.vlgmr.msrb.gmra.mxu1 %v8822_v24  ;;  %v5478_v13 = vor.u32 %v7461_v5, %v5477_v4  ;;  %v7533_v62 = vld [vmem:[%s8586_s11 + $0x5d4] sm:$0xf0]  ;;  %v5909_v5 = vld [vmem:[%s8586_s11 + $0x6e8] sm:$0xf] }
 0x148   : > { %2534 = vmatpush.bf16.msrb.mxu2 %v5794_v27  ;;  %v7385_v27 = vld [vmem:[%s8586_s11 + $0x134] sm:$0xf0]  ;;  %v5766_v11 = vor.u32 %v7533_v62, %v5765_v61  ;;  %v5701_v61 = vld [vmem:[%s8586_s11 + $0x548] sm:$0xf] }
 0x149   : > { %2547 = vmatpush.bf16.msrb.mxu3 %v5922_v29  ;;  %v7421_v29 = vld [vmem:[%s8586_s11 + $0x254] sm:$0xf0]  ;;  %v5174_v34 = vor.u32 %v7385_v27, %v5173_v25  ;;  %v6021_v25 = vld [vmem:[%s8586_s11 + $0x7c8] sm:$0xf] }
 0x14a   : > { %2554 = vmatpush.bf16.msra.mxu0 %v5126_v21  ;;  %2567 = vmatpush.bf16.msra.mxu1 %v5254_v22  ;;  %v5045_v21 = vld [vmem:[%s8586_s11 + $0x28] sm:$0xf]  ;;  %v7353_v22 = vld [vmem:[%s8586_s11 + $0x34] sm:$0xf0]  ;;  %v5318_v39 = vor.u32 %v7421_v29, %v5317_v53 }
 0x14b   : > { %2535 = vmatmul.bf16.vlgmr.msrb.gmra.mxu2 %v8837_v26  ;;  %v7445_v4 = vld [vmem:[%s8586_s11 + $0x314] sm:$0xf0]  ;;  %v5605_v53 = vld [vmem:[%s8586_s11 + $0x488] sm:$0xf] }
 0x14c   : > { %2579 = vmatpush.bf16.msra.mxu2 %v5398_v30  ;;  %2548 = vmatmul.bf16.vlgmr.msrb.gmra.mxu3 %v8842_v58  ;;  %v5046_v30 = vor.u32 %v7353_v22, %v5045_v21  ;;  %v5893_v21 = vld [vmem:[%s8586_s11 + $0x6c8] sm:$0xf]  ;;  %v7565_v22 = vld [vmem:[%s8586_s11 + $0x6d4] sm:$0xf0] }
 0x14d   : > { %2592 = vmatpush.bf16.msra.mxu3 %v5526_v33  ;;  %v5029_v33 = vld [vmem:[%s8586_s11 + $0x8] sm:$0xf]  ;;  %v7597_v27 = vld [vmem:[%s8586_s11 + $0x7d4] sm:$0xf0] }
 0x14e   : > { %2555 = vmatpush.bf16.msra.mxu0 %v5110_v37  ;;  %2568 = vmatpush.bf16.msra.mxu1 %v5238_v40  ;;  %v5157_v37 = vld [vmem:[%s8586_s11 + $0x108] sm:$0xf]  ;;  %v5030_v49 = vor.u32 %v7349_v35, %v5029_v33  ;;  %v7493_v29 = vld [vmem:[%s8586_s11 + $0x494] sm:$0xf0]  ;;  %v6022_v33 = vor.u32 %v7597_v27, %v6021_v25 }
 0x14f   : > { %v5653_v40 = vld [vmem:[%s8586_s11 + $0x4e8] sm:$0xf]  ;;  %v5158_v54 = vor.u32 %v7381_v38, %v5157_v37  ;;  %v7561_v35 = vld [vmem:[%s8586_s11 + $0x6b4] sm:$0xf0]  ;;  %v5606_v37 = vor.u32 %v7493_v29, %v5605_v53  ;;  %v5143_v53 = vld [vmem:[%s8586_s11 + $0xf8] sm:$0xf0] }
 0x150   : > { %2580 = vmatpush.bf16.msra.mxu2 %v5382_v45  ;;  %v5446_v45 = vor.u32 %v7453_v32, %v5445_v31  ;;  %v5654_v55 = vor.u32 %v7505_v41, %v5653_v40  ;;  %v5733_v31 = vld [vmem:[%s8586_s11 + $0x588] sm:$0xf]  ;;  %v7525_v32 = vld [vmem:[%s8586_s11 + $0x594] sm:$0xf0]  ;;  %v7407_v29 = vld [vmem:[%s8586_s11 + $0x1ec] sm:$0xf] }
 0x151   : > { %2593 = vmatpush.bf16.msra.mxu3 %v5510_v48  ;;  %v7417_v48 = vld [vmem:[%s8586_s11 + $0x234] sm:$0xf0]  ;;  %v6005_v38 = vld [vmem:[%s8586_s11 + $0x7a8] sm:$0xf]  ;;  %v5734_v40 = vor.u32 %v7525_v32, %v5733_v31  ;;  %v5271_v31 = vld [vmem:[%s8586_s11 + $0x1f8] sm:$0xf0] }
 0x152   : > { %2556 = vmatpush.bf16.msra.mxu0 %v5094_v52  ;;  %2569 = vmatpush.bf16.msra.mxu1 %v5222_v56  ;;  %v7449_v52 = vld [vmem:[%s8586_s11 + $0x334] sm:$0xf0]  ;;  %v5637_v56 = vld [vmem:[%s8586_s11 + $0x4c8] sm:$0xf]  ;;  %v5302_v59 = vor.u32 %v7417_v48, %v5301_v47 }
 0x153   : > { %v5589_v41 = vld [vmem:[%s8586_s11 + $0x468] sm:$0xf]  ;;  %v7521_v47 = vld [vmem:[%s8586_s11 + $0x574] sm:$0xf0] }
 0x154   : > { %2581 = vmatpush.bf16.msra.mxu2 %v5366_v60  ;;  %v7501_v60 = vld [vmem:[%s8586_s11 + $0x4d4] sm:$0xf0]  ;;  %v5845_v0 = vld [vmem:[%s8586_s11 + $0x668] sm:$0xf] }
 0x155   : > { %2594 = vmatpush.bf16.msra.mxu3 %v5494_v63  ;;  %v5430_v63 = vor.u32 %v7449_v52, %v5429_v50  ;;  %v5638_v7 = vor.u32 %v7501_v60, %v5637_v56  ;;  %v7557_v50 = vld [vmem:[%s8586_s11 + $0x694] sm:$0xf0]  ;;  %v5590_v52 = vor.u32 %v7489_v44, %v5589_v41  ;;  %v5718_v56 = vor.u32 %v7521_v47, %v5717_v46  ;;  %v5813_v32 = vld [vmem:[%s8586_s11 + $0x628] sm:$0xf]  ;;  %v7403_v46 = vld [vmem:[%s8586_s11 + $0x1cc] sm:$0xf] }
 0x156   : > { %2557 = vmatpush.bf16.msra.mxu0 %v5078_v2  ;;  %2570 = vmatpush.bf16.msra.mxu1 %v5206_v6  ;;  %v5413_v2 = vld [vmem:[%s8586_s11 + $0x308] sm:$0xf]  ;;  %v7569_v6 = vld [vmem:[%s8586_s11 + $0x6f4] sm:$0xf0]  ;;  %v5274_v41 = vor.u32 %v7407_v29, %v5271_v31  ;;  %v5255_v47 = vld [vmem:[%s8586_s11 + $0x1d8] sm:$0xf0] }
 0x157   : > { %v5414_v15 = vor.u32 %v7445_v4, %v5413_v2  ;;  %v7517_v62 = vld [vmem:[%s8586_s11 + $0x554] sm:$0xf0]  ;;  %v5973_v4 = vld [vmem:[%s8586_s11 + $0x768] sm:$0xf]  ;;  %v5495_v31 = vld [vmem:[%s8586_s11 + $0x3b8] sm:$0xf0] }
 0x158   : > { %2582 = vmatpush.bf16.msra.mxu2 %v5350_v10  ;;  %v7601_v10 = vld [vmem:[%s8586_s11 + $0x7f4] sm:$0xf0] }
 0x159   : > { %2595 = vmatpush.bf16.msra.mxu3 %v5478_v13  ;;  %v5621_v13 = vld [vmem:[%s8586_s11 + $0x4a8] sm:$0xf]  ;;  %v7509_v25 = vld [vmem:[%s8586_s11 + $0x514] sm:$0xf0] }
 0x15a   : > { %2558 = vmatpush.bf16.msra.mxu0 %v5062_v16  ;;  %2571 = vmatpush.bf16.msra.mxu1 %v5190_v20  ;;  %v5910_v16 = vor.u32 %v7569_v6, %v5909_v5  ;;  %v6038_v20 = vor.u32 %v7601_v10, %v6037_v9  ;;  %v7585_v5 = vld [vmem:[%s8586_s11 + $0x774] sm:$0xf0]  ;;  %v5702_v6 = vor.u32 %v7517_v62, %v5701_v61 }
 0x15b   : > { %v7481_v9 = vld [vmem:[%s8586_s11 + $0x434] sm:$0xf0]  ;;  %v5846_v10 = vor.u32 %v7553_v1, %v5845_v0  ;;  %v5258_v61 = vor.u32 %v7403_v46, %v5255_v47  ;;  %v5111_v0 = vld [vmem:[%s8586_s11 + $0xb8] sm:$0xf0]  ;;  %v9078_v1 = vld [vmem:[%s8593_s26] sm:$0xf] }
 0x15c   : > { %2583 = vmatpush.bf16.msra.mxu2 %v5334_v23  ;;  %v5622_v23 = vor.u32 %v7497_v14, %v5621_v13  ;;  %v5974_v13 = vor.u32 %v7585_v5, %v5973_v4  ;;  %v5829_v14 = vld [vmem:[%s8586_s11 + $0x648] sm:$0xf]  ;;  %v7399_v5 = vld [vmem:[%s8586_s11 + $0x1ac] sm:$0xf]  ;;  %v5479_v47 = vld [vmem:[%s8586_s11 + $0x398] sm:$0xf0] }
 0x15d   : > { %2596 = vmatpush.bf16.msra.mxu3 %v5462_v28  ;;  %v5750_v28 = vor.u32 %v7529_v19, %v5749_v17  ;;  %v5957_v17 = vld [vmem:[%s8586_s11 + $0x748] sm:$0xf]  ;;  %v7581_v19 = vld [vmem:[%s8586_s11 + $0x754] sm:$0xf0]  ;;  %v7459_v46 = vld [vmem:[%s8586_s11 + $0x38c] sm:$0xf] }
 0x15e   : > { %2559 = vmatpush.bf16.msra.mxu0 %v5046_v30  ;;  %2572 = vmatpush.bf16.msra.mxu1 %v5174_v34  ;;  %v5894_v30 = vor.u32 %v7565_v22, %v5893_v21  ;;  %v5877_v34 = vld [vmem:[%s8586_s11 + $0x6a8] sm:$0xf]  ;;  %v7477_v22 = vld [vmem:[%s8586_s11 + $0x414] sm:$0xf0] }
 0x160   : > { %2584 = vmatpush.bf16.msra.mxu2 %v5318_v39  ;;  %v7593_v39 = vld [vmem:[%s8586_s11 + $0x7b4] sm:$0xf0] }
 0x161   : > { %2597 = vmatpush.bf16.msra.mxu3 %v5446_v45  ;;  %v5878_v45 = vor.u32 %v7561_v35, %v5877_v34  ;;  %v6006_v48 = vor.u32 %v7593_v39, %v6005_v38  ;;  %v5941_v35 = vld [vmem:[%s8586_s11 + $0x728] sm:$0xf] }
 0x162   : > { %2560 = vmatpush.bf16.msra.mxu0 %v5030_v49  ;;  %2573 = vmatpush.bf16.msra.mxu1 %v5158_v54  ;;  %v5861_v49 = vld [vmem:[%s8586_s11 + $0x688] sm:$0xf] }
 0x163   : > { %v5989_v54 = vld [vmem:[%s8586_s11 + $0x788] sm:$0xf]  ;;  %v5862_v60 = vor.u32 %v7557_v50, %v5861_v49  ;;  %v7541_v50 = vld [vmem:[%s8586_s11 + $0x614] sm:$0xf0] }
 0x164   : > { %2585 = vmatpush.bf16.msra.mxu2 %v5302_v59  ;;  %v7485_v59 = vld [vmem:[%s8586_s11 + $0x454] sm:$0xf0]  ;;  %v5797_v49 = vld [vmem:[%s8586_s11 + $0x608] sm:$0xf] }
 0x165   : > { %2598 = vmatpush.bf16.msra.mxu3 %v5430_v63  ;;  %2561 = vmatmul.bf16.vlgmr.msra.gmra.mxu0 %v8765_v3  ;;  %v5798_v62 = vor.u32 %v7541_v50, %v5797_v49  ;;  %v7355_v49 = vld [vmem:[%s8586_s11 + $0x4c] sm:$0xf]  ;;  %v5063_v50 = vld [vmem:[%s8586_s11 + $0x58] sm:$0xf0] }
 0x166   : > { %2605 = vmatpush.bf16.msrb.mxu0 %v5654_v55  ;;  %2618 = vmatpush.bf16.msrb.mxu1 %v5782_v57  ;;  %v7589_v55 = vld [vmem:[%s8586_s11 + $0x794] sm:$0xf0]  ;;  %v5573_v57 = vld [vmem:[%s8586_s11 + $0x448] sm:$0xf] }
 0x167   : > { %2574 = vmatmul.bf16.vlgmr.msra.gmra.mxu1 %v8770_v8  ;;  %v5990_v63 = vor.u32 %v7589_v55, %v5989_v54  ;;  %v5574_v2 = vor.u32 %v7485_v59, %v5573_v57  ;;  %v7573_v54 = vld [vmem:[%s8586_s11 + $0x714] sm:$0xf0]  ;;  %v7439_v55 = vld [vmem:[%s8586_s11 + $0x2ec] sm:$0xf] }
 0x168   : > { %2586 = vmatpush.bf16.msra.mxu2 %v5286_v12  ;;  %v7513_v12 = vld [vmem:[%s8586_s11 + $0x534] sm:$0xf0]  ;;  %v7471_v59 = vld [vmem:[%s8586_s11 + $0x3ec] sm:$0xf] }
 0x169   : > { %2599 = vmatpush.bf16.msra.mxu3 %v5414_v15  ;;  %v7549_v15 = vld [vmem:[%s8586_s11 + $0x654] sm:$0xf0] }
 0x16a   : > { %2606 = vmatpush.bf16.msrb.mxu0 %v5638_v7  ;;  %2619 = vmatpush.bf16.msrb.mxu1 %v5766_v11  ;;  %v5557_v7 = vld [vmem:[%s8586_s11 + $0x428] sm:$0xf]  ;;  %v5830_v27 = vor.u32 %v7549_v15, %v5829_v14  ;;  %v5511_v14 = vld [vmem:[%s8586_s11 + $0x3d8] sm:$0xf0] }
 0x16b   : > { %2587 = vmatmul.bf16.vlgmr.msra.gmra.mxu2 %v8785_v36  ;;  %v5685_v11 = vld [vmem:[%s8586_s11 + $0x528] sm:$0xf] }
 0x16c   : > { %2631 = vmatpush.bf16.msrb.mxu2 %v5910_v16  ;;  %2600 = vmatmul.bf16.vlgmr.msra.gmra.mxu3 %v8792_v43  ;;  %v5558_v16 = vor.u32 %v7481_v9, %v5557_v7  ;;  %v5686_v21 = vor.u32 %v7513_v12, %v5685_v11  ;;  %v7435_v9 = vld [vmem:[%s8586_s11 + $0x2cc] sm:$0xf]  ;;  %v1057_v12 = vperm.slane %v9078_v1, 0 }
 0x16d   : > { %2644 = vmatpush.bf16.msrb.mxu3 %v6038_v20  ;;  %v5541_v20 = vld [vmem:[%s8586_s11 + $0x408] sm:$0xf] }
 0x16e   : > { %2607 = vmatpush.bf16.msrb.mxu0 %v5622_v23  ;;  %2620 = vmatpush.bf16.msrb.mxu1 %v5750_v28  ;;  %v5669_v23 = vld [vmem:[%s8586_s11 + $0x508] sm:$0xf]  ;;  %v7375_v28 = vld [vmem:[%s8586_s11 + $0xec] sm:$0xf]  ;;  %v5542_v34 = vor.u32 %v7477_v22, %v5541_v20 }
 0x16f   : > { %v5670_v38 = vor.u32 %v7509_v25, %v5669_v23  ;;  %v5146_v39 = vor.u32 %v7375_v28, %v5143_v53  ;;  %v7395_v20 = vld [vmem:[%s8586_s11 + $0x18c] sm:$0xf] }
 0x170   : > { %2632 = vmatpush.bf16.msrb.mxu2 %v5894_v30  ;;  %v5958_v30 = vor.u32 %v7581_v19, %v5957_v17  ;;  %v5095_v17 = vld [vmem:[%s8586_s11 + $0x98] sm:$0xf0]  ;;  %v7431_v25 = vld [vmem:[%s8586_s11 + $0x2ac] sm:$0xf] }
 0x171   : > { %2645 = vmatpush.bf16.msrb.mxu3 %v6022_v33  ;;  %v7545_v33 = vld [vmem:[%s8586_s11 + $0x634] sm:$0xf0] }
 0x172   : > { %2608 = vmatpush.bf16.msrb.mxu0 %v5606_v37  ;;  %2621 = vmatpush.bf16.msrb.mxu1 %v5734_v40  ;;  %v7577_v37 = vld [vmem:[%s8586_s11 + $0x734] sm:$0xf0]  ;;  %v7371_v40 = vld [vmem:[%s8586_s11 + $0xcc] sm:$0xf]  ;;  %v5814_v44 = vor.u32 %v7545_v33, %v5813_v32 }
 0x173   : > { %v7359_v33 = vld [vmem:[%s8586_s11 + $0x6c] sm:$0xf] }
 0x174   : > { %2633 = vmatpush.bf16.msrb.mxu2 %v5878_v45  ;;  %v5127_v45 = vld [vmem:[%s8586_s11 + $0xd8] sm:$0xf0] }
 0x175   : > { %2646 = vmatpush.bf16.msrb.mxu3 %v6006_v48  ;;  %v5942_v48 = vor.u32 %v7577_v37, %v5941_v35  ;;  %v5130_v57 = vor.u32 %v7371_v40, %v5127_v45 }
 0x176   : > { %2609 = vmatpush.bf16.msrb.mxu0 %v5590_v52  ;;  %2622 = vmatpush.bf16.msrb.mxu1 %v5718_v56  ;;  %v5925_v52 = vld [vmem:[%s8586_s11 + $0x708] sm:$0xf]  ;;  %v5399_v56 = vld [vmem:[%s8586_s11 + $0x2f8] sm:$0xf0] }
 0x177   : > { %v5402_v4 = vor.u32 %v7439_v55, %v5399_v56  ;;  %v5191_v55 = vld [vmem:[%s8586_s11 + $0x158] sm:$0xf0] }
 0x178   : > { %2634 = vmatpush.bf16.msrb.mxu2 %v5862_v60  ;;  %v5527_v60 = vld [vmem:[%s8586_s11 + $0x3f8] sm:$0xf0] }
 0x179   : > { %2647 = vmatpush.bf16.msrb.mxu3 %v5990_v63  ;;  %v7367_v63 = vld [vmem:[%s8586_s11 + $0xac] sm:$0xf]  ;;  %v5530_v7 = vor.u32 %v7471_v59, %v5527_v60  ;;  %v5335_v60 = vld [vmem:[%s8586_s11 + $0x278] sm:$0xf0] }
 0x17a   : > { %2610 = vmatpush.bf16.msrb.mxu0 %v5574_v2  ;;  %2623 = vmatpush.bf16.msrb.mxu1 %v5702_v6  ;;  %v5926_v2 = vor.u32 %v7573_v54, %v5925_v52  ;;  %v5239_v6 = vld [vmem:[%s8586_s11 + $0x1b8] sm:$0xf0]  ;;  %v5114_v11 = vor.u32 %v7367_v63, %v5111_v0  ;;  %v7387_v54 = vld [vmem:[%s8586_s11 + $0x14c] sm:$0xf] }
 0x17b   : > { %v5242_v15 = vor.u32 %v7399_v5, %v5239_v6  ;;  %v7423_v59 = vld [vmem:[%s8586_s11 + $0x26c] sm:$0xf]  ;;  %v5463_v0 = vld [vmem:[%s8586_s11 + $0x378] sm:$0xf0] }
 0x17c   : > { %2635 = vmatpush.bf16.msrb.mxu2 %v5846_v10  ;;  %v5383_v10 = vld [vmem:[%s8586_s11 + $0x2d8] sm:$0xf0]  ;;  %v7455_v63 = vld [vmem:[%s8586_s11 + $0x36c] sm:$0xf]  ;;  %v5338_v6 = vor.u32 %v7423_v59, %v5335_v60 }
 0x17d   : > { %2648 = vmatpush.bf16.msrb.mxu3 %v5974_v13  ;;  %v7467_v13 = vld [vmem:[%s8586_s11 + $0x3cc] sm:$0xf]  ;;  %v5386_v19 = vor.u32 %v7435_v9, %v5383_v10  ;;  %v5047_v5 = vld [vmem:[%s8586_s11 + $0x38] sm:$0xf0]  ;;  %v5466_v10 = vor.u32 %v7455_v63, %v5463_v0 }
 0x17e   : > { %2611 = vmatpush.bf16.msrb.mxu0 %v5558_v16  ;;  %2624 = vmatpush.bf16.msrb.mxu1 %v5686_v21  ;;  %v7363_v16 = vld [vmem:[%s8586_s11 + $0x8c] sm:$0xf]  ;;  %v5223_v21 = vld [vmem:[%s8586_s11 + $0x198] sm:$0xf0]  ;;  %v5514_v23 = vor.u32 %v7467_v13, %v5511_v14 }
 0x17f   : > { %v5098_v29 = vor.u32 %v7363_v16, %v5095_v17  ;;  %v5226_v32 = vor.u32 %v7395_v20, %v5223_v21  ;;  %v5175_v9 = vld [vmem:[%s8586_s11 + $0x138] sm:$0xf0]  ;;  %v7347_v17 = vld [vmem:[%s8586_s11 + $0xc] sm:$0xf] }
 0x180   : > { %2636 = vmatpush.bf16.msrb.mxu2 %v5830_v27  ;;  %v2354_v22 = vpop.f32.mrf.mxu0  ;;  %v5367_v27 = vld [vmem:[%s8586_s11 + $0x2b8] sm:$0xf0]  ;;  %v2367_v53 = vpop.f32.mrf.mxu1  ;;  %v7443_v59 = vld [vmem:[%s8586_s11 + $0x30c] sm:$0xf] }
 0x181   : > { %2649 = vmatpush.bf16.msrb.mxu3 %v5958_v30  ;;  %v2355_v28 = vadd.f32 %v2354_v22, %v1057_v12  ;;  %v7463_v30 = vld [vmem:[%s8586_s11 + $0x3ac] sm:$0xf]  ;;  %v5370_v37 = vor.u32 %v7431_v25, %v5367_v27  ;;  %v5319_v12 = vld [vmem:[%s8586_s11 + $0x258] sm:$0xf0] }
 0x182   : > { %2612 = vmatpush.bf16.msrb.mxu0 %v5542_v34  ;;  %2625 = vmatpush.bf16.msrb.mxu1 %v5670_v38  ;;  %v5079_v34 = vld [vmem:[%s8586_s11 + $0x78] sm:$0xf0]  ;;  %v7391_v38 = vld [vmem:[%s8586_s11 + $0x16c] sm:$0xf]  ;;  %v5498_v40 = vor.u32 %v7463_v30, %v5495_v31 }
 0x183   : > { %v2368_v35 = vadd.f32 %v2367_v53, %v2355_v28  ;;  %v5082_v45 = vor.u32 %v7359_v33, %v5079_v34  ;;  %v5447_v16 = vld [vmem:[%s8586_s11 + $0x358] sm:$0xf0]  ;;  %v7503_v28 = vld [vmem:[%s8586_s11 + $0x4ec] sm:$0xf] }
 0x184   : > { %2637 = vmatpush.bf16.msrb.mxu2 %v5814_v44  ;;  %v5351_v44 = vld [vmem:[%s8586_s11 + $0x298] sm:$0xf0]  ;;  %v7415_v34 = vld [vmem:[%s8586_s11 + $0x22c] sm:$0xf] }
 0x185   : > { %2650 = vmatpush.bf16.msrb.mxu3 %v5942_v48  ;;  %2613 = vmatmul.bf16.vlgmr.msrb.gmra.mxu0 %v8817_v18  ;;  %v5031_v22 = vld [vmem:[%s8586_s11 + $0x18] sm:$0xf0] }
 0x186   : > { %2657 = vmatpush.bf16.msra.mxu0 %v5146_v39  ;;  %2670 = vmatpush.bf16.msra.mxu1 %v5274_v41  ;;  %v5207_v39 = vld [vmem:[%s8586_s11 + $0x178] sm:$0xf0]  ;;  %v7427_v41 = vld [vmem:[%s8586_s11 + $0x28c] sm:$0xf] }
 0x187   : > { %2626 = vmatmul.bf16.vlgmr.msrb.gmra.mxu1 %v8822_v24  ;;  %v5210_v48 = vor.u32 %v7391_v38, %v5207_v39  ;;  %v5354_v52 = vor.u32 %v7427_v41, %v5351_v44  ;;  %v5159_v25 = vld [vmem:[%s8586_s11 + $0x118] sm:$0xf0]  ;;  %v5034_v38 = vor.u32 %v7347_v17, %v5031_v22  ;;  %v7447_v39 = vld [vmem:[%s8586_s11 + $0x32c] sm:$0xf] }
 0x188   : > { %2638 = vmatpush.bf16.msrb.mxu2 %v5798_v62  ;;  %v2356_v56 = vpop.f32.mrf.mxu0  ;;  %v5066_v62 = vor.u32 %v7355_v49, %v5063_v50  ;;  %v5655_v53 = vld [vmem:[%s8586_s11 + $0x4f8] sm:$0xf0]  ;;  %v7531_v50 = vld [vmem:[%s8586_s11 + $0x5cc] sm:$0xf] }
 0x189   : > { %2651 = vmatpush.bf16.msrb.mxu3 %v5926_v2  ;;  %v5194_v2 = vor.u32 %v7387_v54, %v5191_v55  ;;  %v5783_v33 = vld [vmem:[%s8586_s11 + $0x5f8] sm:$0xf0]  ;;  %v7411_v56 = vld [vmem:[%s8586_s11 + $0x20c] sm:$0xf] }
 0x18a   : > { %2658 = vmatpush.bf16.msra.mxu0 %v5130_v57  ;;  %2671 = vmatpush.bf16.msra.mxu1 %v5258_v61  ;;  %v5482_v57 = vor.u32 %v7459_v46, %v5479_v47  ;;  %v2369_v61 = vpop.f32.mrf.mxu1  ;;  %v7499_v46 = vld [vmem:[%s8586_s11 + $0x4cc] sm:$0xf]  ;;  %v5639_v49 = vld [vmem:[%s8586_s11 + $0x4d8] sm:$0xf0] }
 0x18b   : > { %2639 = vmatmul.bf16.vlgmr.msrb.gmra.mxu2 %v8837_v26  ;;  %v5415_v61 = vld [vmem:[%s8586_s11 + $0x318] sm:$0xf0]  ;;  %v7595_v22 = vld [vmem:[%s8586_s11 + $0x7cc] sm:$0xf] }
 0x18c   : > { %2683 = vmatpush.bf16.msra.mxu2 %v5402_v4  ;;  %2652 = vmatmul.bf16.vlgmr.msrb.gmra.mxu3 %v8842_v58  ;;  %v7351_v4 = vld [vmem:[%s8586_s11 + $0x2c] sm:$0xf]  ;;  %v5911_v63 = vld [vmem:[%s8586_s11 + $0x6f8] sm:$0xf0] }
 0x18d   : > { %2696 = vmatpush.bf16.msra.mxu3 %v5530_v7  ;;  %v7383_v7 = vld [vmem:[%s8586_s11 + $0x12c] sm:$0xf]  ;;  %v5050_v14 = vor.u32 %v7351_v4, %v5047_v5  ;;  %v6039_v5 = vld [vmem:[%s8586_s11 + $0x7f8] sm:$0xf0] }
 0x18e   : > { %2659 = vmatpush.bf16.msra.mxu0 %v5114_v11  ;;  %2672 = vmatpush.bf16.msra.mxu1 %v5242_v15  ;;  %v7419_v11 = vld [vmem:[%s8586_s11 + $0x24c] sm:$0xf]  ;;  %v2380_v13 = vpop.f32.mrf.mxu2  ;;  %v2393_v20 = vpop.f32.mrf.mxu3  ;;  %v5178_v21 = vor.u32 %v7383_v7, %v5175_v9 }
 0x18f   : > { %v7451_v15 = vld [vmem:[%s8586_s11 + $0x34c] sm:$0xf]  ;;  %v5322_v27 = vor.u32 %v7419_v11, %v5319_v12  ;;  %v5418_v12 = vor.u32 %v7443_v59, %v5415_v61 }
 0x190   : > { %2684 = vmatpush.bf16.msra.mxu2 %v5386_v19  ;;  %v2381_v19 = vadd.f32 %v2380_v13, %v2368_v35  ;;  %v5303_v35 = vld [vmem:[%s8586_s11 + $0x238] sm:$0xf0]  ;;  %v7599_v4 = vld [vmem:[%s8586_s11 + $0x7ec] sm:$0xf] }
 0x191   : > { %2697 = vmatpush.bf16.msra.mxu3 %v5514_v23  ;;  %v7379_v23 = vld [vmem:[%s8586_s11 + $0x10c] sm:$0xf]  ;;  %v2406_v31 = vpop.f32.mrf.mxu0  ;;  %v6042_v17 = vor.u32 %v7599_v4, %v6039_v5 }
 0x192   : > { %2660 = vmatpush.bf16.msra.mxu0 %v5098_v29  ;;  %2673 = vmatpush.bf16.msra.mxu1 %v5226_v32  ;;  %v7535_v29 = vld [vmem:[%s8586_s11 + $0x5ec] sm:$0xf]  ;;  %v2394_v30 = vadd.f32 %v2393_v20, %v2381_v19  ;;  %v5450_v32 = vor.u32 %v7451_v15, %v5447_v16  ;;  %v5162_v44 = vor.u32 %v7379_v23, %v5159_v25  ;;  %v5751_v15 = vld [vmem:[%s8586_s11 + $0x5b8] sm:$0xf0] }
 0x193   : > { %v5786_v47 = vor.u32 %v7535_v29, %v5783_v33  ;;  %v7495_v9 = vld [vmem:[%s8586_s11 + $0x4ac] sm:$0xf]  ;;  %v5895_v20 = vld [vmem:[%s8586_s11 + $0x6d8] sm:$0xf0] }
 0x194   : > { %2685 = vmatpush.bf16.msra.mxu2 %v5370_v37  ;;  %v2419_v37 = vpop.f32.mrf.mxu1  ;;  %v2407_v41 = vadd.f32 %v2406_v31, %v2394_v30  ;;  %v7563_v19 = vld [vmem:[%s8586_s11 + $0x6cc] sm:$0xf]  ;;  %v6023_v23 = vld [vmem:[%s8586_s11 + $0x7d8] sm:$0xf0] }
 0x195   : > { %2698 = vmatpush.bf16.msra.mxu3 %v5498_v40  ;;  %v5431_v40 = vld [vmem:[%s8586_s11 + $0x338] sm:$0xf0]  ;;  %v7523_v29 = vld [vmem:[%s8586_s11 + $0x58c] sm:$0xf] }
 0x196   : > { %2661 = vmatpush.bf16.msra.mxu0 %v5082_v45  ;;  %2674 = vmatpush.bf16.msra.mxu1 %v5210_v48  ;;  %v5658_v45 = vor.u32 %v7503_v28, %v5655_v53  ;;  %v5306_v48 = vor.u32 %v7415_v34, %v5303_v35  ;;  %v2420_v54 = vadd.f32 %v2419_v37, %v2407_v41  ;;  %v2382_v60 = vpop.f32.mrf.mxu2  ;;  %v2395_v0 = vpop.f32.mrf.mxu3  ;;  %v5607_v28 = vld [vmem:[%s8586_s11 + $0x498] sm:$0xf0]  ;;  %v7559_v33 = vld [vmem:[%s8586_s11 + $0x6ac] sm:$0xf] }
 0x197   : > { %v5434_v55 = vor.u32 %v7447_v39, %v5431_v40  ;;  %v5898_v53 = vor.u32 %v7563_v19, %v5895_v20  ;;  %v5735_v30 = vld [vmem:[%s8586_s11 + $0x598] sm:$0xf0]  ;;  %v7591_v40 = vld [vmem:[%s8586_s11 + $0x7ac] sm:$0xf] }
 0x198   : > { %2686 = vmatpush.bf16.msra.mxu2 %v5354_v52  ;;  %v5767_v52 = vld [vmem:[%s8586_s11 + $0x5d8] sm:$0xf0]  ;;  %v7587_v61 = vld [vmem:[%s8586_s11 + $0x78c] sm:$0xf] }
 0x199   : > { %2699 = vmatpush.bf16.msra.mxu3 %v5482_v57  ;;  %v5287_v57 = vld [vmem:[%s8586_s11 + $0x218] sm:$0xf0]  ;;  %v2408_v11 = vpop.f32.mrf.mxu0  ;;  %v7483_v0 = vld [vmem:[%s8586_s11 + $0x44c] sm:$0xf] }
 0x19a   : > { %2662 = vmatpush.bf16.msra.mxu0 %v5066_v62  ;;  %2675 = vmatpush.bf16.msra.mxu1 %v5194_v2  ;;  %v7567_v62 = vld [vmem:[%s8586_s11 + $0x6ec] sm:$0xf]  ;;  %v5642_v2 = vor.u32 %v7499_v46, %v5639_v49  ;;  %v5290_v7 = vor.u32 %v7411_v56, %v5287_v57  ;;  %v5879_v34 = vld [vmem:[%s8586_s11 + $0x6b8] sm:$0xf0] }
 0x19b   : > { %v5914_v13 = vor.u32 %v7567_v62, %v5911_v63  ;;  %v6007_v41 = vld [vmem:[%s8586_s11 + $0x7b8] sm:$0xf0]  ;;  %v7519_v49 = vld [vmem:[%s8586_s11 + $0x56c] sm:$0xf] }
 0x19c   : > { %2687 = vmatpush.bf16.msra.mxu2 %v5338_v6  ;;  %v5770_v6 = vor.u32 %v7531_v50, %v5767_v52  ;;  %v2421_v16 = vpop.f32.mrf.mxu1  ;;  %v5591_v46 = vld [vmem:[%s8586_s11 + $0x478] sm:$0xf0]  ;;  %v7551_v11 = vld [vmem:[%s8586_s11 + $0x66c] sm:$0xf] }
 0x19d   : > { %2700 = vmatpush.bf16.msra.mxu3 %v5466_v10  ;;  %v5623_v10 = vld [vmem:[%s8586_s11 + $0x4b8] sm:$0xf0]  ;;  %v7479_v19 = vld [vmem:[%s8586_s11 + $0x42c] sm:$0xf] }
 0x19e   : > { %2663 = vmatpush.bf16.msra.mxu0 %v5050_v14  ;;  %2676 = vmatpush.bf16.msra.mxu1 %v5178_v21  ;;  %v7527_v14 = vld [vmem:[%s8586_s11 + $0x5ac] sm:$0xf]  ;;  %v5626_v21 = vor.u32 %v7495_v9, %v5623_v10  ;;  %v2432_v31 = vpop.f32.mrf.mxu2  ;;  %v2445_v37 = vpop.f32.mrf.mxu3  ;;  %v5719_v50 = vld [vmem:[%s8586_s11 + $0x578] sm:$0xf0] }
 0x19f   : > { %v5754_v25 = vor.u32 %v7527_v14, %v5751_v15  ;;  %v2433_v35 = vadd.f32 %v2432_v31, %v2420_v54  ;;  %v6010_v54 = vor.u32 %v7591_v40, %v6007_v41  ;;  %v5863_v56 = vld [vmem:[%s8586_s11 + $0x698] sm:$0xf0]  ;;  %v5722_v63 = vor.u32 %v7519_v49, %v5719_v50  ;;  %v7583_v15 = vld [vmem:[%s8586_s11 + $0x76c] sm:$0xf]  ;;  %v6414_v40 = vld [vmem:[%s8586_s11 + $0x8e0] sm:$0xf] }
 0x1a0   : > { %2688 = vmatpush.bf16.msra.mxu2 %v5322_v27  ;;  %v7491_v27 = vld [vmem:[%s8586_s11 + $0x48c] sm:$0xf]  ;;  %v5991_v62 = vld [vmem:[%s8586_s11 + $0x798] sm:$0xf0]  ;;  %v7632_v41 = vld [vmem:[%s8586_s11 + $0x8ec] sm:$0xf0] }
 0x1a1   : > { %2701 = vmatpush.bf16.msra.mxu3 %v5450_v32  ;;  %v6026_v32 = vor.u32 %v7595_v22, %v6023_v23  ;;  %v5610_v39 = vor.u32 %v7491_v27, %v5607_v28  ;;  %v5994_v10 = vor.u32 %v7587_v61, %v5991_v62  ;;  %v5975_v16 = vld [vmem:[%s8586_s11 + $0x778] sm:$0xf0]  ;;  %v7511_v22 = vld [vmem:[%s8586_s11 + $0x52c] sm:$0xf]  ;;  %v6398_v61 = vld [vmem:[%s8586_s11 + $0x8c0] sm:$0xf] }
 0x1a2   : > { %2664 = vmatpush.bf16.msra.mxu0 %v5034_v38  ;;  %2677 = vmatpush.bf16.msra.mxu1 %v5162_v44  ;;  %v1058_v38 = vperm.slane %v9078_v1, 1  ;;  %v5738_v44 = vor.u32 %v7523_v29, %v5735_v30  ;;  %v2458_v52 = vpop.f32.mrf.mxu0  ;;  %v5559_v20 = vld [vmem:[%s8586_s11 + $0x438] sm:$0xf0]  ;;  %v5978_v27 = vor.u32 %v7583_v15, %v5975_v16  ;;  %v7547_v28 = vld [vmem:[%s8586_s11 + $0x64c] sm:$0xf] }
 0x1a3   : > { %v5687_v23 = vld [vmem:[%s8586_s11 + $0x538] sm:$0xf0]  ;;  %v5562_v30 = vor.u32 %v7479_v19, %v5559_v20  ;;  %v7579_v31 = vld [vmem:[%s8586_s11 + $0x74c] sm:$0xf]  ;;  %v6798_v15 = vld [vmem:[%s8586_s11 + $0xbe0] sm:$0xf] }
 0x1a4   : > { %2689 = vmatpush.bf16.msra.mxu2 %v5306_v48  ;;  %v5882_v48 = vor.u32 %v7559_v33, %v5879_v34  ;;  %v2459_v57 = vadd.f32 %v2458_v52, %v1058_v38  ;;  %v2471_v59 = vpop.f32.mrf.mxu1  ;;  %v7475_v33 = vld [vmem:[%s8586_s11 + $0x40c] sm:$0xf]  ;;  %v5690_v34 = vor.u32 %v7511_v22, %v5687_v23  ;;  %v5671_v38 = vld [vmem:[%s8586_s11 + $0x518] sm:$0xf0]  ;;  %v7728_v16 = vld [vmem:[%s8586_s11 + $0xbec] sm:$0xf0] }
 0x1a5   : > { %2702 = vmatpush.bf16.msra.mxu3 %v5434_v55  ;;  %2665 = vmatmul.bf16.vlgmr.msra.gmra.mxu0 %v8765_v3  ;;  %v7555_v55 = vld [vmem:[%s8586_s11 + $0x68c] sm:$0xf]  ;;  %v5815_v49 = vld [vmem:[%s8586_s11 + $0x638] sm:$0xf0]  ;;  %v6382_v20 = vld [vmem:[%s8586_s11 + $0x8a0] sm:$0xf] }
 0x1a6   : > { %2709 = vmatpush.bf16.msrb.mxu0 %v5658_v45  ;;  %2722 = vmatpush.bf16.msrb.mxu1 %v5786_v47  ;;  %v7487_v45 = vld [vmem:[%s8586_s11 + $0x46c] sm:$0xf]  ;;  %v9170_v47 = vadd.f32 %v2445_v37, %v2433_v35  ;;  %v2472_v4 = vadd.f32 %v2471_v59, %v2459_v57  ;;  %v5866_v5 = vor.u32 %v7555_v55, %v5863_v56  ;;  %v2434_v9 = vpop.f32.mrf.mxu2  ;;  %v5543_v35 = vld [vmem:[%s8586_s11 + $0x418] sm:$0xf0] }
 0x1a7   : > { %2678 = vmatmul.bf16.vlgmr.msra.gmra.mxu1 %v8770_v8  ;;  %v5594_v60 = vor.u32 %v7487_v45, %v5591_v46  ;;  %v7507_v37 = vld [vmem:[%s8586_s11 + $0x50c] sm:$0xf]  ;;  %v7664_v46 = vld [vmem:[%s8586_s11 + $0x9ec] sm:$0xf0]  ;;  %v5943_v56 = vld [vmem:[%s8586_s11 + $0x738] sm:$0xf0] }
 0x1a8   : > { %2690 = vmatpush.bf16.msra.mxu2 %v5290_v7  ;;  %v5703_v7 = vld [vmem:[%s8586_s11 + $0x558] sm:$0xf0]  ;;  %v7575_v55 = vld [vmem:[%s8586_s11 + $0x72c] sm:$0xf]  ;;  %v5674_v59 = vor.u32 %v7507_v37, %v5671_v38  ;;  %v6366_v37 = vld [vmem:[%s8586_s11 + $0x880] sm:$0xf] }
 0x1a9   : > { %2703 = vmatpush.bf16.msra.mxu3 %v5418_v12  ;;  %v5847_v12 = vld [vmem:[%s8586_s11 + $0x678] sm:$0xf0]  ;;  %v7620_v38 = vld [vmem:[%s8586_s11 + $0x88c] sm:$0xf0] }
 0x1aa   : > { %2710 = vmatpush.bf16.msrb.mxu0 %v5642_v2  ;;  %2723 = vmatpush.bf16.msrb.mxu1 %v5770_v6  ;;  %v5575_v2 = vld [vmem:[%s8586_s11 + $0x458] sm:$0xf0]  ;;  %v7515_v6 = vld [vmem:[%s8586_s11 + $0x54c] sm:$0xf] }
 0x1ab   : > { %2691 = vmatmul.bf16.vlgmr.msra.gmra.mxu2 %v8785_v36  ;;  %v5578_v14 = vor.u32 %v7483_v0, %v5575_v2  ;;  %v7628_v0 = vld [vmem:[%s8586_s11 + $0x8cc] sm:$0xf0]  ;;  %v6526_v2 = vld [vmem:[%s8586_s11 + $0x9c0] sm:$0xf]  ;;  %v5799_v9 = vld [vmem:[%s8586_s11 + $0x618] sm:$0xf0] }
 0x1ac   : > { %2735 = vmatpush.bf16.msrb.mxu2 %v5914_v13  ;;  %2704 = vmatmul.bf16.vlgmr.msra.gmra.mxu3 %v8792_v43  ;;  %v2447_v13 = vpop.f32.mrf.mxu3  ;;  %v2473_v29 = vpop.f32.mrf.mxu1 }
 0x1ad   : > { %2748 = vmatpush.bf16.msrb.mxu3 %v6042_v17  ;;  %v5706_v17 = vor.u32 %v7515_v6, %v5703_v7  ;;  %v7539_v7 = vld [vmem:[%s8586_s11 + $0x60c] sm:$0xf]  ;;  %v7696_v13 = vld [vmem:[%s8586_s11 + $0xaec] sm:$0xf0]  ;;  %v6799_v29 = vor.u32 %v7728_v16, %v6798_v15  ;;  %v6606_v16 = vld [vmem:[%s8586_s11 + $0xa60] sm:$0xf] }
 0x1ae   : > { %2711 = vmatpush.bf16.msrb.mxu0 %v5626_v21  ;;  %2724 = vmatpush.bf16.msrb.mxu1 %v5754_v25  ;;  %v5850_v21 = vor.u32 %v7551_v11, %v5847_v12  ;;  %v2460_v25 = vpop.f32.mrf.mxu0  ;;  %v2484_v50 = vpop.f32.mrf.mxu2  ;;  %v5927_v11 = vld [vmem:[%s8586_s11 + $0x718] sm:$0xf0]  ;;  %v6670_v12 = vld [vmem:[%s8586_s11 + $0xae0] sm:$0xf]  ;;  %v5802_v19 = vor.u32 %v7539_v7, %v5799_v9  ;;  %v7716_v7 = vld [vmem:[%s8586_s11 + $0xb8c] sm:$0xf0] }
 0x1af   : > { %v2485_v57 = vadd.f32 %v2484_v50, %v2472_v4  ;;  %v5946_v4 = vor.u32 %v7575_v55, %v5943_v56  ;;  %v6671_v23 = vor.u32 %v7696_v13, %v6670_v12  ;;  %v6510_v25 = vld [vmem:[%s8586_s11 + $0x9a0] sm:$0xf]  ;;  %v7720_v50 = vld [vmem:[%s8586_s11 + $0xbac] sm:$0xf0] }
 0x1b0   : > { %2736 = vmatpush.bf16.msrb.mxu2 %v5898_v53  ;;  %v5831_v53 = vld [vmem:[%s8586_s11 + $0x658] sm:$0xf0]  ;;  %v7616_v55 = vld [vmem:[%s8586_s11 + $0x86c] sm:$0xf0] }
 0x1b1   : > { %2749 = vmatpush.bf16.msrb.mxu3 %v6026_v32  ;;  %v5959_v32 = vld [vmem:[%s8586_s11 + $0x758] sm:$0xf0] }
 0x1b2   : > { %2712 = vmatpush.bf16.msrb.mxu0 %v5610_v39  ;;  %2725 = vmatpush.bf16.msrb.mxu1 %v5738_v44  ;;  %v5834_v39 = vor.u32 %v7547_v28, %v5831_v53  ;;  %v6542_v44 = vld [vmem:[%s8586_s11 + $0x9e0] sm:$0xf]  ;;  %v5962_v45 = vor.u32 %v7579_v31, %v5959_v32  ;;  %v7692_v31 = vld [vmem:[%s8586_s11 + $0xacc] sm:$0xf0] }
 0x1b3   : > { %v6543_v62 = vor.u32 %v7664_v46, %v6542_v44  ;;  %v7688_v46 = vld [vmem:[%s8586_s11 + $0xaac] sm:$0xf0] }
 0x1b4   : > { %2737 = vmatpush.bf16.msrb.mxu2 %v5882_v48  ;;  %v7543_v48 = vld [vmem:[%s8586_s11 + $0x62c] sm:$0xf]  ;;  %v2497_v52 = vpop.f32.mrf.mxu3 }
 0x1b5   : > { %2750 = vmatpush.bf16.msrb.mxu3 %v6010_v54  ;;  %v5546_v54 = vor.u32 %v7475_v33, %v5543_v35  ;;  %v9210_v6 = vadd.f32 %v2497_v52, %v2485_v57  ;;  %v6782_v33 = vld [vmem:[%s8586_s11 + $0xbc0] sm:$0xf] }
 0x1b6   : > { %2713 = vmatpush.bf16.msrb.mxu0 %v5594_v60  ;;  %2726 = vmatpush.bf16.msrb.mxu1 %v5722_v63  ;;  %v6415_v60 = vor.u32 %v7632_v41, %v6414_v40  ;;  %v5818_v63 = vor.u32 %v7543_v48, %v5815_v49  ;;  %v2486_v28 = vpop.f32.mrf.mxu2  ;;  %v6494_v40 = vld [vmem:[%s8586_s11 + $0x980] sm:$0xf]  ;;  %v7652_v41 = vld [vmem:[%s8586_s11 + $0x98c] sm:$0xf0]  ;;  %v6367_v48 = vor.u32 %v7620_v38, %v6366_v37 }
 0x1b7   : > { %v6766_v49 = vld [vmem:[%s8586_s11 + $0xba0] sm:$0xf]  ;;  %v6495_v52 = vor.u32 %v7652_v41, %v6494_v40  ;;  %v7708_v37 = vld [vmem:[%s8586_s11 + $0xb4c] sm:$0xf0] }
 0x1b8   : > { %2738 = vmatpush.bf16.msrb.mxu2 %v5866_v5  ;;  %v7660_v5 = vld [vmem:[%s8586_s11 + $0x9cc] sm:$0xf0]  ;;  %v6478_v57 = vld [vmem:[%s8586_s11 + $0x960] sm:$0xf] }
 0x1b9   : > { %2751 = vmatpush.bf16.msrb.mxu3 %v5994_v10  ;;  %v7571_v10 = vld [vmem:[%s8586_s11 + $0x70c] sm:$0xf]  ;;  %v6446_v28 = vld [vmem:[%s8586_s11 + $0x920] sm:$0xf]  ;;  %v7604_v40 = vld [vmem:[%s8586_s11 + $0x80c] sm:$0xf0] }
 0x1ba   : > { %2714 = vmatpush.bf16.msrb.mxu0 %v5578_v14  ;;  %2727 = vmatpush.bf16.msrb.mxu1 %v5706_v17  ;;  %v6399_v14 = vor.u32 %v7628_v0, %v6398_v61  ;;  %v6527_v17 = vor.u32 %v7660_v5, %v6526_v2  ;;  %v5930_v22 = vor.u32 %v7571_v10, %v5927_v11  ;;  %v6334_v10 = vld [vmem:[%s8586_s11 + $0x840] sm:$0xf]  ;;  %v7612_v11 = vld [vmem:[%s8586_s11 + $0x84c] sm:$0xf0] }
 0x1bb   : > { %v6767_v61 = vor.u32 %v7720_v50, %v6766_v49  ;;  %v6302_v38 = vld [vmem:[%s8586_s11 + $0x800] sm:$0xf] }
 0x1bc   : > { %2739 = vmatpush.bf16.msrb.mxu2 %v5850_v21  ;;  %v7624_v21 = vld [vmem:[%s8586_s11 + $0x8ac] sm:$0xf0]  ;;  %v2499_v53 = vpop.f32.mrf.mxu3  ;;  %v6430_v41 = vld [vmem:[%s8586_s11 + $0x900] sm:$0xf] }
 0x1bd   : > { %2752 = vmatpush.bf16.msrb.mxu3 %v5978_v27  ;;  %v7656_v27 = vld [vmem:[%s8586_s11 + $0x9ac] sm:$0xf0]  ;;  %v6383_v32 = vor.u32 %v7624_v21, %v6382_v20  ;;  %v6734_v20 = vld [vmem:[%s8586_s11 + $0xb60] sm:$0xf] }
 0x1be   : > { %2715 = vmatpush.bf16.msrb.mxu0 %v5562_v30  ;;  %2728 = vmatpush.bf16.msrb.mxu1 %v5690_v34  ;;  %v6654_v30 = vld [vmem:[%s8586_s11 + $0xac0] sm:$0xf]  ;;  %v7724_v34 = vld [vmem:[%s8586_s11 + $0xbcc] sm:$0xf0]  ;;  %v6511_v35 = vor.u32 %v7656_v27, %v6510_v25 }
 0x1bf   : > { %v6783_v44 = vor.u32 %v7724_v34, %v6782_v33  ;;  %v7712_v21 = vld [vmem:[%s8586_s11 + $0xb6c] sm:$0xf0]  ;;  %v7054_v49 = vld [vmem:[%s8586_s11 + $0xde0] sm:$0xf] }
 0x1c0   : > { %2740 = vmatpush.bf16.msrb.mxu2 %v5834_v39  ;;  %v6655_v39 = vor.u32 %v7692_v31, %v6654_v30  ;;  %v7608_v25 = vld [vmem:[%s8586_s11 + $0x82c] sm:$0xf0]  ;;  %v6735_v30 = vor.u32 %v7712_v21, %v6734_v20  ;;  %v6590_v31 = vld [vmem:[%s8586_s11 + $0xa40] sm:$0xf] }
 0x1c1   : > { %2753 = vmatpush.bf16.msrb.mxu3 %v5962_v45  ;;  %v6638_v45 = vld [vmem:[%s8586_s11 + $0xaa0] sm:$0xf]  ;;  %v7640_v53 = vld [vmem:[%s8586_s11 + $0x92c] sm:$0xf0] }
 0x1c2   : > { %2716 = vmatpush.bf16.msrb.mxu0 %v5546_v54  ;;  %2729 = vmatpush.bf16.msrb.mxu1 %v5674_v59  ;;  %v6350_v54 = vld [vmem:[%s8586_s11 + $0x860] sm:$0xf]  ;;  %v6639_v56 = vor.u32 %v7688_v46, %v6638_v45  ;;  %v7648_v59 = vld [vmem:[%s8586_s11 + $0x96c] sm:$0xf0] }
 0x1c3   : > { %v6351_v5 = vor.u32 %v7616_v55, %v6350_v54  ;;  %v6479_v9 = vor.u32 %v7648_v59, %v6478_v57  ;;  %v6926_v46 = vld [vmem:[%s8586_s11 + $0xce0] sm:$0xf]  ;;  %v7792_v54 = vld [vmem:[%s8586_s11 + $0xdec] sm:$0xf0] }
 0x1c4   : > { %2741 = vmatpush.bf16.msrb.mxu2 %v5818_v63  ;;  %v7684_v63 = vld [vmem:[%s8586_s11 + $0xa8c] sm:$0xf0]  ;;  %v2523_v2 = vpop.f32.mrf.mxu1  ;;  %v6574_v55 = vld [vmem:[%s8586_s11 + $0xa20] sm:$0xf] }
 0x1c5   : > { %2754 = vmatpush.bf16.msrb.mxu3 %v5946_v4  ;;  %2717 = vmatmul.bf16.vlgmr.msrb.gmra.mxu0 %v8817_v18  ;;  %v6750_v4 = vld [vmem:[%s8586_s11 + $0xb80] sm:$0xf]  ;;  %v7856_v21 = vld [vmem:[%s8586_s11 + $0xfec] sm:$0xf0] }
 0x1c6   : > { %4309 = vmatpush.bf16.msra.mxu0 %v6415_v60  ;;  %4322 = vmatpush.bf16.msra.mxu1 %v6543_v62  ;;  %v2510_v60 = vpop.f32.mrf.mxu0  ;;  %v6622_v62 = vld [vmem:[%s8586_s11 + $0xa80] sm:$0xf]  ;;  %v6751_v15 = vor.u32 %v7716_v7, %v6750_v4  ;;  %v7055_v4 = vor.u32 %v7792_v54, %v7054_v49  ;;  %v1059_v54 = vperm.slane %v9078_v1, 2 }
 0x1c7   : > { %2730 = vmatmul.bf16.vlgmr.msrb.gmra.mxu1 %v8822_v24  ;;  %v2511_v0 = vadd.f32 %v2510_v60, %v9210_v6  ;;  %v6623_v13 = vor.u32 %v7684_v63, %v6622_v62  ;;  %v7644_v6 = vld [vmem:[%s8586_s11 + $0x94c] sm:$0xf0]  ;;  %v6303_v60 = vor.u32 %v7604_v40, %v6302_v38  ;;  %v7310_v20 = vld [vmem:[%s8586_s11 + $0xfe0] sm:$0xf] }
 0x1c8   : > { %2742 = vmatpush.bf16.msrb.mxu2 %v5802_v19  ;;  %v6335_v19 = vor.u32 %v7612_v11, %v6334_v10  ;;  %v7704_v62 = vld [vmem:[%s8586_s11 + $0xb2c] sm:$0xf0]  ;;  %v7038_v10 = vld [vmem:[%s8586_s11 + $0xdc0] sm:$0xf] }
 0x1c9   : > { %2755 = vmatpush.bf16.msrb.mxu3 %v5930_v22  ;;  %v2524_v12 = vadd.f32 %v2523_v2, %v2511_v0  ;;  %v6910_v2 = vld [vmem:[%s8586_s11 + $0xcc0] sm:$0xf]  ;;  %v7788_v11 = vld [vmem:[%s8586_s11 + $0xdcc] sm:$0xf0] }
 0x1ca   : > { %4310 = vmatpush.bf16.msra.mxu0 %v6399_v14  ;;  %4323 = vmatpush.bf16.msra.mxu1 %v6527_v17  ;;  %v6462_v14 = vld [vmem:[%s8586_s11 + $0x940] sm:$0xf]  ;;  %v7680_v17 = vld [vmem:[%s8586_s11 + $0xa6c] sm:$0xf0] }
 0x1cb   : > { %2743 = vmatmul.bf16.vlgmr.msrb.gmra.mxu2 %v8837_v26  ;;  %v6463_v22 = vor.u32 %v7644_v6, %v6462_v14  ;;  %v6607_v27 = vor.u32 %v7680_v17, %v6606_v16  ;;  %v7668_v14 = vld [vmem:[%s8586_s11 + $0xa0c] sm:$0xf0]  ;;  %v6686_v6 = vld [vmem:[%s8586_s11 + $0xb00] sm:$0xf] }
 0x1cc   : > { %4335 = vmatpush.bf16.msra.mxu2 %v6671_v23  ;;  %2756 = vmatmul.bf16.vlgmr.msrb.gmra.mxu3 %v8842_v58  ;;  %v6318_v23 = vld [vmem:[%s8586_s11 + $0x820] sm:$0xf]  ;;  %v2525_v33 = vpop.f32.mrf.mxu1  ;;  %v7824_v17 = vld [vmem:[%s8586_s11 + $0xeec] sm:$0xf0] }
 0x1cd   : > { %4348 = vmatpush.bf16.msra.mxu3 %v6799_v29  ;;  %v6319_v34 = vor.u32 %v7608_v25, %v6318_v23  ;;  %v7182_v16 = vld [vmem:[%s8586_s11 + $0xee0] sm:$0xf]  ;;  %v7311_v33 = vor.u32 %v7856_v21, %v7310_v20  ;;  %v7772_v20 = vld [vmem:[%s8586_s11 + $0xd4c] sm:$0xf0] }
 0x1ce   : > { %4311 = vmatpush.bf16.msra.mxu0 %v6383_v32  ;;  %4324 = vmatpush.bf16.msra.mxu1 %v6511_v35  ;;  %v2512_v29 = vpop.f32.mrf.mxu0  ;;  %v7676_v32 = vld [vmem:[%s8586_s11 + $0xa4c] sm:$0xf0]  ;;  %v6718_v35 = vld [vmem:[%s8586_s11 + $0xb40] sm:$0xf]  ;;  %v2536_v50 = vpop.f32.mrf.mxu2 }
 0x1cf   : > { %v6591_v45 = vor.u32 %v7676_v32, %v6590_v31  ;;  %v2537_v57 = vadd.f32 %v2536_v50, %v2524_v12  ;;  %v2549_v59 = vpop.f32.mrf.mxu3  ;;  %v6894_v25 = vld [vmem:[%s8586_s11 + $0xca0] sm:$0xf]  ;;  %v7183_v29 = vor.u32 %v7824_v17, %v7182_v16  ;;  %v7784_v31 = vld [vmem:[%s8586_s11 + $0xdac] sm:$0xf0] }
 0x1d0   : > { %4336 = vmatpush.bf16.msra.mxu2 %v6655_v39  ;;  %v6447_v39 = vor.u32 %v7640_v53, %v6446_v28  ;;  %v7294_v38 = vld [vmem:[%s8586_s11 + $0xfc0] sm:$0xf] }
 0x1d1   : > { %4349 = vmatpush.bf16.msra.mxu3 %v6783_v44  ;;  %v7636_v44 = vld [vmem:[%s8586_s11 + $0x90c] sm:$0xf0]  ;;  %v7150_v50 = vld [vmem:[%s8586_s11 + $0xea0] sm:$0xf] }
 0x1d2   : > { %4312 = vmatpush.bf16.msra.mxu0 %v6367_v48  ;;  %4325 = vmatpush.bf16.msra.mxu1 %v6495_v52  ;;  %v7760_v48 = vld [vmem:[%s8586_s11 + $0xcec] sm:$0xf0]  ;;  %v6719_v52 = vor.u32 %v7708_v37, %v6718_v35  ;;  %v6431_v63 = vor.u32 %v7636_v44, %v6430_v41  ;;  %v6878_v41 = vld [vmem:[%s8586_s11 + $0xc80] sm:$0xf] }
 0x1d3   : > { %v6927_v0 = vor.u32 %v7760_v48, %v6926_v46  ;;  %v7820_v35 = vld [vmem:[%s8586_s11 + $0xecc] sm:$0xf0]  ;;  %v7006_v46 = vld [vmem:[%s8586_s11 + $0xd80] sm:$0xf] }
 0x1d4   : > { %4337 = vmatpush.bf16.msra.mxu2 %v6639_v56  ;;  %v7672_v56 = vld [vmem:[%s8586_s11 + $0xa2c] sm:$0xf0] }
 0x1d5   : > { %4350 = vmatpush.bf16.msra.mxu3 %v6767_v61  ;;  %v6702_v61 = vld [vmem:[%s8586_s11 + $0xb20] sm:$0xf]  ;;  %v6575_v7 = vor.u32 %v7672_v56, %v6574_v55  ;;  %v7748_v44 = vld [vmem:[%s8586_s11 + $0xc8c] sm:$0xf0] }
 0x1d6   : > { %4313 = vmatpush.bf16.msra.mxu0 %v6351_v5  ;;  %4326 = vmatpush.bf16.msra.mxu1 %v6479_v9  ;;  %v9278_v5 = vadd.f32 %v2549_v59, %v2537_v57  ;;  %v7756_v9 = vld [vmem:[%s8586_s11 + $0xccc] sm:$0xf0]  ;;  %v6703_v12 = vor.u32 %v7704_v62, %v6702_v61  ;;  %v2538_v28 = vpop.f32.mrf.mxu2  ;;  %v6879_v55 = vor.u32 %v7748_v44, %v6878_v41  ;;  %v7278_v56 = vld [vmem:[%s8586_s11 + $0xfa0] sm:$0xf] }
 0x1d7   : > { %v2551_v32 = vpop.f32.mrf.mxu3  ;;  %v7780_v48 = vld [vmem:[%s8586_s11 + $0xd8c] sm:$0xf0] }
 0x1d8   : > { %4338 = vmatpush.bf16.msra.mxu2 %v6623_v13  ;;  %v6558_v13 = vld [vmem:[%s8586_s11 + $0xa00] sm:$0xf]  ;;  %v7848_v57 = vld [vmem:[%s8586_s11 + $0xfac] sm:$0xf0]  ;;  %v7007_v59 = vor.u32 %v7780_v48, %v7006_v46  ;;  %v7993_v46 = vld [vmem:[#allocation15 + $0x1] ss:$0 sm:$0xff] }
 0x1d9   : > { %4351 = vmatpush.bf16.msra.mxu3 %v6751_v15  ;;  %v7700_v15 = vld [vmem:[%s8586_s11 + $0xb0c] sm:$0xf0]  ;;  %v6559_v23 = vor.u32 %v7668_v14, %v6558_v13  ;;  %v6958_v32 = vld [vmem:[%s8586_s11 + $0xd20] sm:$0xf] }
 0x1da   : > { %4314 = vmatpush.bf16.msra.mxu0 %v6335_v19  ;;  %4327 = vmatpush.bf16.msra.mxu1 %v6463_v22  ;;  %v6911_v19 = vor.u32 %v7756_v9, %v6910_v2  ;;  %v7039_v22 = vor.u32 %v7788_v11, %v7038_v10  ;;  %v6687_v53 = vor.u32 %v7700_v15, %v6686_v6  ;;  %v7744_v61 = vld [vmem:[%s8586_s11 + $0xc6c] sm:$0xf0]  ;;  %v6846_v6 = vld [vmem:[%s8586_s11 + $0xc40] sm:$0xf] }
 0x1db   : > { %v7279_v2 = vor.u32 %v7848_v57, %v7278_v56  ;;  %v7844_v13 = vld [vmem:[%s8586_s11 + $0xf8c] sm:$0xf0]  ;;  %v6416_v56 = vld [vmem:[%s8586_s11 + $0x8f0] sm:$0xf0]  ;;  %v7662_v57 = vld [vmem:[%s8586_s11 + $0x9e4] sm:$0xf] }
 0x1dc   : > { %4339 = vmatpush.bf16.msra.mxu2 %v6607_v27  ;;  %v7752_v27 = vld [vmem:[%s8586_s11 + $0xcac] sm:$0xf0] }
 0x1dd   : > { %4352 = vmatpush.bf16.msra.mxu3 %v6735_v30  ;;  %v7022_v30 = vld [vmem:[%s8586_s11 + $0xda0] sm:$0xf]  ;;  %v6895_v37 = vor.u32 %v7752_v27, %v6894_v25  ;;  %v7740_v15 = vld [vmem:[%s8586_s11 + $0xc4c] sm:$0xf0] }
 0x1de   : > { %4315 = vmatpush.bf16.msra.mxu0 %v6319_v34  ;;  %4328 = vmatpush.bf16.msra.mxu1 %v6447_v39  ;;  %v7166_v34 = vld [vmem:[%s8586_s11 + $0xec0] sm:$0xf]  ;;  %v7852_v39 = vld [vmem:[%s8586_s11 + $0xfcc] sm:$0xf0]  ;;  %v7023_v40 = vor.u32 %v7784_v31, %v7022_v30  ;;  %v6847_v25 = vor.u32 %v7740_v15, %v6846_v6  ;;  %v7658_v6 = vld [vmem:[%s8586_s11 + $0x9c4] sm:$0xf] }
 0x1df   : > { %v7295_v49 = vor.u32 %v7852_v39, %v7294_v38  ;;  %v7246_v27 = vld [vmem:[%s8586_s11 + $0xf60] sm:$0xf]  ;;  %v7840_v28 = vld [vmem:[%s8586_s11 + $0xf6c] sm:$0xf0]  ;;  %v6528_v15 = vld [vmem:[%s8586_s11 + $0x9d0] sm:$0xf0] }
 0x1e0   : > { %4340 = vmatpush.bf16.msra.mxu2 %v6591_v45  ;;  %v7167_v45 = vor.u32 %v7820_v35, %v7166_v34  ;;  %v7736_v30 = vld [vmem:[%s8586_s11 + $0xc2c] sm:$0xf0]  ;;  %v7247_v35 = vor.u32 %v7840_v28, %v7246_v27  ;;  %v7230_v39 = vld [vmem:[%s8586_s11 + $0xf40] sm:$0xf]  ;;  %v7726_v27 = vld [vmem:[%s8586_s11 + $0xbe4] sm:$0xf] }
 0x1e1   : > { %4353 = vmatpush.bf16.msra.mxu3 %v6719_v52  ;;  %v7816_v52 = vld [vmem:[%s8586_s11 + $0xeac] sm:$0xf0]  ;;  %v6800_v28 = vld [vmem:[%s8586_s11 + $0xbf0] sm:$0xf0] }
 0x1e2   : > { %4316 = vmatpush.bf16.msra.mxu0 %v6303_v60  ;;  %4329 = vmatpush.bf16.msra.mxu1 %v6431_v63  ;;  %v6862_v60 = vld [vmem:[%s8586_s11 + $0xc60] sm:$0xf]  ;;  %v7151_v62 = vor.u32 %v7816_v52, %v7150_v50  ;;  %v2562_v1 = vpop.f32.mrf.mxu0  ;;  %v7804_v38 = vld [vmem:[%s8586_s11 + $0xe4c] sm:$0xf0] }
 0x1e3   : > { %v6990_v63 = vld [vmem:[%s8586_s11 + $0xd60] sm:$0xf]  ;;  %v2563_v9 = vadd.f32 %v2562_v1, %v1059_v54  ;;  %v6863_v11 = vor.u32 %v7744_v61, %v6862_v60  ;;  %v7836_v44 = vld [vmem:[%s8586_s11 + $0xf4c] sm:$0xf0] }
 0x1e4   : > { %4341 = vmatpush.bf16.msra.mxu2 %v6575_v7  ;;  %v7812_v7 = vld [vmem:[%s8586_s11 + $0xe8c] sm:$0xf0]  ;;  %v2575_v10 = vpop.f32.mrf.mxu1  ;;  %v6942_v50 = vld [vmem:[%s8586_s11 + $0xd00] sm:$0xf]  ;;  %v7231_v61 = vor.u32 %v7836_v44, %v7230_v39  ;;  %v6803_v39 = vor.u32 %v7726_v27, %v6800_v28  ;;  %v6608_v27 = vld [vmem:[%s8586_s11 + $0xa70] sm:$0xf0] }
 0x1e5   : > { %4354 = vmatpush.bf16.msra.mxu3 %v6703_v12  ;;  %4317 = vmatmul.bf16.vlgmr.msra.gmra.mxu0 %v8765_v3  ;;  %v7262_v12 = vld [vmem:[%s8586_s11 + $0xf80] sm:$0xf]  ;;  %v2576_v16 = vadd.f32 %v2575_v10, %v2563_v9  ;;  %v7764_v52 = vld [vmem:[%s8586_s11 + $0xd0c] sm:$0xf0]  ;;  %v7626_v10 = vld [vmem:[%s8586_s11 + $0x8c4] sm:$0xf] }
 0x1e6   : > { %4361 = vmatpush.bf16.msrb.mxu0 %v6927_v0  ;;  %4374 = vmatpush.bf16.msrb.mxu1 %v7055_v4  ;;  %v7776_v0 = vld [vmem:[%s8586_s11 + $0xd6c] sm:$0xf0]  ;;  %v7134_v4 = vld [vmem:[%s8586_s11 + $0xe80] sm:$0xf]  ;;  %v7263_v21 = vor.u32 %v7844_v13, %v7262_v12  ;;  %v6943_v42 = vor.u32 %v7764_v52, %v6942_v50  ;;  %v6368_v50 = vld [vmem:[%s8586_s11 + $0x890] sm:$0xf0] }
 0x1e7   : > { %4330 = vmatmul.bf16.vlgmr.msra.gmra.mxu1 %v8770_v8  ;;  %v6991_v14 = vor.u32 %v7776_v0, %v6990_v63  ;;  %v7135_v17 = vor.u32 %v7812_v7, %v7134_v4  ;;  %v7086_v63 = vld [vmem:[%s8586_s11 + $0xe20] sm:$0xf]  ;;  %v7800_v0 = vld [vmem:[%s8586_s11 + $0xe2c] sm:$0xf0] }
 0x1e8   : > { %4342 = vmatpush.bf16.msra.mxu2 %v6559_v23  ;;  %v7808_v23 = vld [vmem:[%s8586_s11 + $0xe6c] sm:$0xf0]  ;;  %v7214_v7 = vld [vmem:[%s8586_s11 + $0xf20] sm:$0xf]  ;;  %v7087_v13 = vor.u32 %v7800_v0, %v7086_v63  ;;  %v7614_v0 = vld [vmem:[%s8586_s11 + $0x864] sm:$0xf] }
 0x1e9   : > { %4355 = vmatpush.bf16.msra.mxu3 %v6687_v53  ;;  %v7832_v9 = vld [vmem:[%s8586_s11 + $0xf2c] sm:$0xf0] }
 0x1ea   : > { %4362 = vmatpush.bf16.msrb.mxu0 %v6911_v19  ;;  %4375 = vmatpush.bf16.msrb.mxu1 %v7039_v22  ;;  %v6974_v19 = vld [vmem:[%s8586_s11 + $0xd40] sm:$0xf]  ;;  %v2564_v34 = vpop.f32.mrf.mxu0 }
 0x1eb   : > { %4343 = vmatmul.bf16.vlgmr.msra.gmra.mxu2 %v8785_v36  ;;  %v7118_v22 = vld [vmem:[%s8586_s11 + $0xe60] sm:$0xf]  ;;  %v6975_v53 = vor.u32 %v7772_v20, %v6974_v19  ;;  %v7796_v19 = vld [vmem:[%s8586_s11 + $0xe0c] sm:$0xf0] }
 0x1ec   : > { %4387 = vmatpush.bf16.msrb.mxu2 %v7183_v29  ;;  %4356 = vmatmul.bf16.vlgmr.msra.gmra.mxu3 %v8792_v43  ;;  %v6830_v29 = vld [vmem:[%s8586_s11 + $0xc20] sm:$0xf]  ;;  %v7119_v31 = vor.u32 %v7808_v23, %v7118_v22  ;;  %v7694_v22 = vld [vmem:[%s8586_s11 + $0xae4] sm:$0xf]  ;;  %v6672_v23 = vld [vmem:[%s8586_s11 + $0xaf0] sm:$0xf0] }
 0x1ed   : > { %4400 = vmatpush.bf16.msrb.mxu3 %v7311_v33  ;;  %v7768_v33 = vld [vmem:[%s8586_s11 + $0xd2c] sm:$0xf0]  ;;  %v6831_v41 = vor.u32 %v7736_v30, %v6830_v29  ;;  %v7198_v20 = vld [vmem:[%s8586_s11 + $0xf00] sm:$0xf]  ;;  %v7622_v30 = vld [vmem:[%s8586_s11 + $0x8a4] sm:$0xf]  ;;  %v6675_v34 = vor.u32 %v7694_v22, %v6672_v23 }
 0x1ee   : > { %4363 = vmatpush.bf16.msrb.mxu0 %v6895_v37  ;;  %4376 = vmatpush.bf16.msrb.mxu1 %v7023_v40  ;;  %v7102_v37 = vld [vmem:[%s8586_s11 + $0xe40] sm:$0xf]  ;;  %v2577_v40 = vpop.f32.mrf.mxu1  ;;  %v6959_v48 = vor.u32 %v7768_v33, %v6958_v32  ;;  %v2588_v60 = vpop.f32.mrf.mxu2  ;;  %v7642_v22 = vld [vmem:[%s8586_s11 + $0x944] sm:$0xf] }
 0x1ef   : > { %v7103_v54 = vor.u32 %v7804_v38, %v7102_v37  ;;  %v2589_v1 = vadd.f32 %v2588_v60, %v2576_v16  ;;  %v7215_v16 = vor.u32 %v7832_v9, %v7214_v7  ;;  %v6512_v37 = vld [vmem:[%s8586_s11 + $0x9b0] sm:$0xf0]  ;;  %v7690_v40 = vld [vmem:[%s8586_s11 + $0xac4] sm:$0xf] }
 0x1f0   : > { %4388 = vmatpush.bf16.msrb.mxu2 %v7167_v45  ;;  %v6814_v45 = vld [vmem:[%s8586_s11 + $0xc00] sm:$0xf]  ;;  %v6480_v7 = vld [vmem:[%s8586_s11 + $0x970] sm:$0xf0] }
 0x1f1   : > { %4401 = vmatpush.bf16.msrb.mxu3 %v7295_v49  ;;  %v7732_v49 = vld [vmem:[%s8586_s11 + $0xc0c] sm:$0xf0] }
 0x1f2   : > { %4364 = vmatpush.bf16.msrb.mxu0 %v6879_v55  ;;  %4377 = vmatpush.bf16.msrb.mxu1 %v7007_v59  ;;  %v7630_v55 = vld [vmem:[%s8586_s11 + $0x8e4] sm:$0xf]  ;;  %v793_v59 = vmul.f32 %v7993_v46, %v782_v51  ;;  %v6815_v4 = vor.u32 %v7732_v49, %v6814_v45  ;;  %v6784_v46 = vld [vmem:[%s8586_s11 + $0xbd0] sm:$0xf0] }
 0x1f3   : > { %v6419_v51 = vor.u32 %v7630_v55, %v6416_v56  ;;  %v7722_v45 = vld [vmem:[%s8586_s11 + $0xbc4] sm:$0xf]  ;;  %v6496_v55 = vld [vmem:[%s8586_s11 + $0x990] sm:$0xf0] }
 0x1f4   : > { %4389 = vmatpush.bf16.msrb.mxu2 %v7151_v62  ;;  %v6544_v62 = vld [vmem:[%s8586_s11 + $0x9f0] sm:$0xf0]  ;;  %794 = vadd.xlane.f32.xlu1 %v793_v59  ;;  %v7618_v49 = vld [vmem:[%s8586_s11 + $0x884] sm:$0xf]  ;;  %v6787_v56 = vor.u32 %v7722_v45, %v6784_v46 }
 0x1f5   : > { %4402 = vmatpush.bf16.msrb.mxu3 %v7279_v2  ;;  %v2601_v2 = vpop.f32.mrf.mxu3  ;;  %v6547_v12 = vor.u32 %v7662_v57, %v6544_v62  ;;  %v7686_v57 = vld [vmem:[%s8586_s11 + $0xaa4] sm:$0xf]  ;;  %v6640_v59 = vld [vmem:[%s8586_s11 + $0xab0] sm:$0xf0]  ;;  %v6371_v60 = vor.u32 %v7618_v49, %v6368_v50 }
 0x1f6   : > { %4365 = vmatpush.bf16.msrb.mxu0 %v6863_v11  ;;  %4378 = vmatpush.bf16.msrb.mxu1 %v6991_v14  ;;  %v9351_v11 = vadd.f32 %v2601_v2, %v2589_v1  ;;  %v6400_v14 = vld [vmem:[%s8586_s11 + $0x8d0] sm:$0xf0]  ;;  %v2590_v32 = vpop.f32.mrf.mxu2  ;;  %v6643_v2 = vor.u32 %v7686_v57, %v6640_v59  ;;  %v7706_v45 = vld [vmem:[%s8586_s11 + $0xb44] sm:$0xf] }
 0x1f7   : > { %v6768_v62 = vld [vmem:[%s8586_s11 + $0xbb0] sm:$0xf0]  ;;  %v7790_v59 = vld [vmem:[%s8586_s11 + $0xde4] sm:$0xf] }
 0x1f8   : > { %4390 = vmatpush.bf16.msrb.mxu2 %v7135_v17  ;;  %v7070_v17 = vld [vmem:[%s8586_s11 + $0xe00] sm:$0xf]  ;;  %v6352_v1 = vld [vmem:[%s8586_s11 + $0x870] sm:$0xf0] }
 0x1f9   : > { %4403 = vmatpush.bf16.msrb.mxu3 %v7263_v21  ;;  %v7828_v21 = vld [vmem:[%s8586_s11 + $0xf0c] sm:$0xf0]  ;;  %v7071_v29 = vor.u32 %v7796_v19, %v7070_v17  ;;  %v7610_v17 = vld [vmem:[%s8586_s11 + $0x844] sm:$0xf]  ;;  %v6336_v19 = vld [vmem:[%s8586_s11 + $0x850] sm:$0xf0] }
 0x1fa   : > { %4366 = vmatpush.bf16.msrb.mxu0 %v6847_v25  ;;  %4379 = vmatpush.bf16.msrb.mxu1 %v6975_v53  ;;  %v6403_v25 = vor.u32 %v7626_v10, %v6400_v14  ;;  %v6531_v53 = vor.u32 %v7658_v6, %v6528_v15  ;;  %v7199_v33 = vor.u32 %v7828_v21, %v7198_v20  ;;  %v6624_v10 = vld [vmem:[%s8586_s11 + $0xa90] sm:$0xf0]  ;;  %v7714_v6 = vld [vmem:[%s8586_s11 + $0xb84] sm:$0xf] }
 0x1fb   : > { %v6355_v14 = vor.u32 %v7614_v0, %v6352_v1  ;;  %v6752_v15 = vld [vmem:[%s8586_s11 + $0xb90] sm:$0xf0]  ;;  %v6339_v28 = vor.u32 %v7610_v17, %v6336_v19  ;;  %v7666_v19 = vld [vmem:[%s8586_s11 + $0xa04] sm:$0xf] }
 0x1fc   : > { %4391 = vmatpush.bf16.msrb.mxu2 %v7119_v31  ;;  %v6384_v31 = vld [vmem:[%s8586_s11 + $0x8b0] sm:$0xf0]  ;;  %v6755_v23 = vor.u32 %v7714_v6, %v6752_v15  ;;  %v7786_v15 = vld [vmem:[%s8586_s11 + $0xdc4] sm:$0xf] }
 0x1fd   : > { %4404 = vmatpush.bf16.msrb.mxu3 %v7247_v35  ;;  %v7654_v35 = vld [vmem:[%s8586_s11 + $0x9a4] sm:$0xf]  ;;  %v2603_v38 = vpop.f32.mrf.mxu3  ;;  %v6387_v44 = vor.u32 %v7622_v30, %v6384_v31  ;;  %v6320_v32 = vld [vmem:[%s8586_s11 + $0x830] sm:$0xf0] }
 0x1fe   : > { %4367 = vmatpush.bf16.msrb.mxu0 %v6831_v41  ;;  %4380 = vmatpush.bf16.msrb.mxu1 %v6959_v48  ;;  %v6656_v41 = vld [vmem:[%s8586_s11 + $0xad0] sm:$0xf0]  ;;  %v6515_v48 = vor.u32 %v7654_v35, %v6512_v37  ;;  %v7606_v31 = vld [vmem:[%s8586_s11 + $0x824] sm:$0xf] }
 0x1ff   : > { %v6659_v52 = vor.u32 %v7690_v40, %v6656_v41  ;;  %v6448_v35 = vld [vmem:[%s8586_s11 + $0x930] sm:$0xf0] }
 0x200   : > { %4392 = vmatpush.bf16.msrb.mxu2 %v7103_v54  ;;  %v7650_v54 = vld [vmem:[%s8586_s11 + $0x984] sm:$0xf]  ;;  %v6592_v40 = vld [vmem:[%s8586_s11 + $0xa50] sm:$0xf0] }
 0x201   : > { %4405 = vmatpush.bf16.msrb.mxu3 %v7231_v61  ;;  %v7718_v61 = vld [vmem:[%s8586_s11 + $0xba4] sm:$0xf]  ;;  %v6499_v63 = vor.u32 %v7650_v54, %v6496_v55  ;;  %v6720_v46 = vld [vmem:[%s8586_s11 + $0xb50] sm:$0xf0] }
 0x202   : > { %4368 = vmatpush.bf16.msrb.mxu0 %v6815_v4  ;;  %4381 = vmatpush.bf16.msrb.mxu1 %v6943_v42  ;;  %v7646_v4 = vld [vmem:[%s8586_s11 + $0x964] sm:$0xf]  ;;  %v2614_v9 = vpop.f32.mrf.mxu0  ;;  %v6771_v42 = vor.u32 %v7718_v61, %v6768_v62  ;;  %v6304_v50 = vld [vmem:[%s8586_s11 + $0x810] sm:$0xf0]  ;;  %v6723_v61 = vor.u32 %v7706_v45, %v6720_v46 }
 0x203   : > { %v6432_v54 = vld [vmem:[%s8586_s11 + $0x910] sm:$0xf0]  ;;  %v7850_v45 = vld [vmem:[%s8586_s11 + $0xfc4] sm:$0xf] }
 0x204   : > { %4393 = vmatpush.bf16.msrb.mxu2 %v7087_v13  ;;  %v2627_v13 = vpop.f32.mrf.mxu1  ;;  %v6928_v57 = vld [vmem:[%s8586_s11 + $0xcf0] sm:$0xf0] }
 0x205   : > { %4406 = vmatpush.bf16.msrb.mxu3 %v7215_v16  ;;  %4369 = vmatmul.bf16.vlgmr.msrb.gmra.mxu0 %v8817_v18  ;;  %v6483_v16 = vor.u32 %v7646_v4, %v6480_v7  ;;  %v7056_v62 = vld [vmem:[%s8586_s11 + $0xdf0] sm:$0xf0]  ;;  %v7702_v7 = vld [vmem:[%s8586_s11 + $0xb24] sm:$0xf] }
 0x206   : > { %4413 = vmatpush.bf16.msra.mxu0 %v6419_v51  ;;  %4426 = vmatpush.bf16.msra.mxu1 %v6547_v12  ;;  %v7682_v51 = vld [vmem:[%s8586_s11 + $0xa84] sm:$0xf]  ;;  %v2615_v12 = vadd.f32 %v2614_v9, %v9351_v11  ;;  %v6464_v11 = vld [vmem:[%s8586_s11 + $0x950] sm:$0xf0] }
 0x207   : > { %4382 = vmatmul.bf16.vlgmr.msrb.gmra.mxu1 %v8822_v24  ;;  %v6627_v21 = vor.u32 %v7682_v51, %v6624_v10  ;;  %v6467_v30 = vor.u32 %v7642_v22, %v6464_v11  ;;  %v6576_v0 = vld [vmem:[%s8586_s11 + $0xa30] sm:$0xf0]  ;;  %v7754_v10 = vld [vmem:[%s8586_s11 + $0xcc4] sm:$0xf] }
 0x208   : > { %4394 = vmatpush.bf16.msrb.mxu2 %v7071_v29  ;;  %v2628_v20 = vadd.f32 %v2627_v13, %v2615_v12  ;;  %v6736_v29 = vld [vmem:[%s8586_s11 + $0xb70] sm:$0xf0]  ;;  %v7059_v13 = vor.u32 %v7790_v59, %v7056_v62  ;;  %v7822_v11 = vld [vmem:[%s8586_s11 + $0xee4] sm:$0xf] }
 0x209   : > { %4407 = vmatpush.bf16.msrb.mxu3 %v7199_v33  ;;  %v6704_v9 = vld [vmem:[%s8586_s11 + $0xb30] sm:$0xf0] }
 0x20a   : > { %4414 = vmatpush.bf16.msra.mxu0 %v6403_v25  ;;  %4427 = vmatpush.bf16.msra.mxu1 %v6531_v53  ;;  %v7678_v25 = vld [vmem:[%s8586_s11 + $0xa64] sm:$0xf]  ;;  %v2616_v37 = vpop.f32.mrf.mxu0  ;;  %v6912_v6 = vld [vmem:[%s8586_s11 + $0xcd0] sm:$0xf0]  ;;  %v6707_v17 = vor.u32 %v7702_v7, %v6704_v9 }
 0x20b   : > { %4395 = vmatmul.bf16.vlgmr.msrb.gmra.mxu2 %v8837_v26  ;;  %v7710_v53 = vld [vmem:[%s8586_s11 + $0xb64] sm:$0xf]  ;;  %v6611_v33 = vor.u32 %v7678_v25, %v6608_v27  ;;  %v6688_v22 = vld [vmem:[%s8586_s11 + $0xb10] sm:$0xf0]  ;;  %v6915_v25 = vor.u32 %v7754_v10, %v6912_v6 }
 0x20c   : > { %4439 = vmatpush.bf16.msra.mxu2 %v6675_v34  ;;  %4408 = vmatmul.bf16.vlgmr.msrb.gmra.mxu3 %v8842_v58  ;;  %v7638_v34 = vld [vmem:[%s8586_s11 + $0x924] sm:$0xf]  ;;  %v6739_v38 = vor.u32 %v7710_v53, %v6736_v29  ;;  %v2629_v41 = vpop.f32.mrf.mxu1  ;;  %v7024_v37 = vld [vmem:[%s8586_s11 + $0xdb0] sm:$0xf0] }
 0x20d   : > { %4452 = vmatpush.bf16.msra.mxu3 %v6803_v39  ;;  %v7674_v39 = vld [vmem:[%s8586_s11 + $0xa44] sm:$0xf]  ;;  %v6451_v49 = vor.u32 %v7638_v34, %v6448_v35  ;;  %v7168_v41 = vld [vmem:[%s8586_s11 + $0xed0] sm:$0xf0] }
 0x20e   : > { %4415 = vmatpush.bf16.msra.mxu0 %v6387_v44  ;;  %4428 = vmatpush.bf16.msra.mxu1 %v6515_v48  ;;  %v6323_v44 = vor.u32 %v7606_v31, %v6320_v32  ;;  %v7602_v48 = vld [vmem:[%s8586_s11 + $0x804] sm:$0xf]  ;;  %v6595_v55 = vor.u32 %v7674_v39, %v6592_v40  ;;  %v6896_v31 = vld [vmem:[%s8586_s11 + $0xcb0] sm:$0xf0] }
 0x20f   : > { %v6307_v4 = vor.u32 %v7602_v48, %v6304_v50  ;;  %v7854_v27 = vld [vmem:[%s8586_s11 + $0xfe4] sm:$0xf]  ;;  %v7296_v46 = vld [vmem:[%s8586_s11 + $0xfd0] sm:$0xf0] }
 0x210   : > { %4440 = vmatpush.bf16.msra.mxu2 %v6659_v52  ;;  %v7634_v52 = vld [vmem:[%s8586_s11 + $0x904] sm:$0xf]  ;;  %v6880_v50 = vld [vmem:[%s8586_s11 + $0xc90] sm:$0xf0] }
 0x211   : > { %4453 = vmatpush.bf16.msra.mxu3 %v6787_v56  ;;  %v7758_v56 = vld [vmem:[%s8586_s11 + $0xce4] sm:$0xf]  ;;  %v7152_v59 = vld [vmem:[%s8586_s11 + $0xeb0] sm:$0xf0] }
 0x212   : > { %4416 = vmatpush.bf16.msra.mxu0 %v6371_v60  ;;  %4429 = vmatpush.bf16.msra.mxu1 %v6499_v63  ;;  %v2640_v60 = vpop.f32.mrf.mxu2  ;;  %v7670_v63 = vld [vmem:[%s8586_s11 + $0xa24] sm:$0xf]  ;;  %v6931_v51 = vor.u32 %v7758_v56, %v6928_v57  ;;  %v7299_v56 = vor.u32 %v7850_v45, %v7296_v46  ;;  %v7104_v45 = vld [vmem:[%s8586_s11 + $0xe50] sm:$0xf0] }
 0x213   : > { %v2641_v1 = vadd.f32 %v2640_v60, %v2628_v20  ;;  %v6560_v20 = vld [vmem:[%s8586_s11 + $0xa10] sm:$0xf0]  ;;  %v7782_v35 = vld [vmem:[%s8586_s11 + $0xda4] sm:$0xf]  ;;  %v7994_v60 = vld [vmem:[%s8593_s26] sm:$0xf] }
 0x214   : > { %4441 = vmatpush.bf16.msra.mxu2 %v6643_v2  ;;  %v2653_v2 = vpop.f32.mrf.mxu3  ;;  %v6563_v29 = vor.u32 %v7666_v19, %v6560_v20  ;;  %v7818_v40 = vld [vmem:[%s8586_s11 + $0xec4] sm:$0xf]  ;;  %v7027_v48 = vor.u32 %v7782_v35, %v7024_v37  ;;  %v7264_v19 = vld [vmem:[%s8586_s11 + $0xf90] sm:$0xf0] }
 0x215   : > { %4454 = vmatpush.bf16.msra.mxu3 %v6771_v42  ;;  %v6435_v42 = vor.u32 %v7634_v52, %v6432_v54  ;;  %v9422_v12 = vadd.f32 %v2653_v2, %v2641_v1  ;;  %v7171_v52 = vor.u32 %v7818_v40, %v7168_v41  ;;  %v7778_v54 = vld [vmem:[%s8586_s11 + $0xd84] sm:$0xf]  ;;  %v6832_v35 = vld [vmem:[%s8586_s11 + $0xc30] sm:$0xf0] }
 0x216   : > { %4417 = vmatpush.bf16.msra.mxu0 %v6355_v14  ;;  %4430 = vmatpush.bf16.msra.mxu1 %v6483_v16  ;;  %v6579_v14 = vor.u32 %v7670_v63, %v6576_v0  ;;  %v7040_v16 = vld [vmem:[%s8586_s11 + $0xdd0] sm:$0xf0]  ;;  %v7814_v57 = vld [vmem:[%s8586_s11 + $0xea4] sm:$0xf] }
 0x217   : > { %v7043_v53 = vor.u32 %v7786_v15, %v7040_v16  ;;  %v7846_v63 = vld [vmem:[%s8586_s11 + $0xfa4] sm:$0xf]  ;;  %v7280_v0 = vld [vmem:[%s8586_s11 + $0xfb0] sm:$0xf0]  ;;  %v7155_v7 = vor.u32 %v7814_v57, %v7152_v59 }
 0x218   : > { %4442 = vmatpush.bf16.msra.mxu2 %v6627_v21  ;;  %v7698_v21 = vld [vmem:[%s8586_s11 + $0xb04] sm:$0xf]  ;;  %v7283_v10 = vor.u32 %v7846_v63, %v7280_v0  ;;  %v6944_v57 = vld [vmem:[%s8586_s11 + $0xd10] sm:$0xf0] }
 0x219   : > { %4455 = vmatpush.bf16.msra.mxu3 %v6755_v23  ;;  %v7184_v23 = vld [vmem:[%s8586_s11 + $0xef0] sm:$0xf0]  ;;  %v7742_v2 = vld [vmem:[%s8586_s11 + $0xc64] sm:$0xf] }
 0x21a   : > { %4418 = vmatpush.bf16.msra.mxu0 %v6339_v28  ;;  %4431 = vmatpush.bf16.msra.mxu1 %v6467_v30  ;;  %v7312_v28 = vld [vmem:[%s8586_s11 + $0xff0] sm:$0xf0]  ;;  %v7750_v30 = vld [vmem:[%s8586_s11 + $0xca4] sm:$0xf]  ;;  %v2642_v32 = vpop.f32.mrf.mxu2  ;;  %v7187_v34 = vor.u32 %v7822_v11, %v7184_v23 }
 0x21b   : > { %v7315_v39 = vor.u32 %v7854_v27, %v7312_v28  ;;  %v7774_v9 = vld [vmem:[%s8586_s11 + $0xd64] sm:$0xf]  ;;  %v6976_v27 = vld [vmem:[%s8586_s11 + $0xd50] sm:$0xf0] }
 0x21c   : > { %4443 = vmatpush.bf16.msra.mxu2 %v6611_v33  ;;  %v6691_v33 = vor.u32 %v7698_v21, %v6688_v22  ;;  %v7738_v21 = vld [vmem:[%s8586_s11 + $0xc44] sm:$0xf]  ;;  %v6848_v22 = vld [vmem:[%s8586_s11 + $0xc50] sm:$0xf0] }
 0x21d   : > { %4456 = vmatpush.bf16.msra.mxu3 %v6739_v38  ;;  %v2655_v38 = vpop.f32.mrf.mxu3  ;;  %v7248_v32 = vld [vmem:[%s8586_s11 + $0xf70] sm:$0xf0] }
 0x21e   : > { %4419 = vmatpush.bf16.msra.mxu0 %v6323_v44  ;;  %4432 = vmatpush.bf16.msra.mxu1 %v6451_v49  ;;  %v6899_v44 = vor.u32 %v7750_v30, %v6896_v31  ;;  %v7746_v49 = vld [vmem:[%s8586_s11 + $0xc84] sm:$0xf]  ;;  %v6851_v30 = vor.u32 %v7738_v21, %v6848_v22  ;;  %v7661_v21 = vld [vmem:[%s8586_s11 + $0x9d4] sm:$0xf0] }
 0x21f   : > { %v6883_v62 = vor.u32 %v7746_v49, %v6880_v50  ;;  %v7838_v31 = vld [vmem:[%s8586_s11 + $0xf64] sm:$0xf]  ;;  %v7232_v50 = vld [vmem:[%s8586_s11 + $0xf50] sm:$0xf0] }
 0x220   : > { %4444 = vmatpush.bf16.msra.mxu2 %v6595_v55  ;;  %v7008_v55 = vld [vmem:[%s8586_s11 + $0xd90] sm:$0xf0]  ;;  %v7766_v38 = vld [vmem:[%s8586_s11 + $0xd24] sm:$0xf]  ;;  %v7251_v41 = vor.u32 %v7838_v31, %v7248_v32  ;;  %v7729_v31 = vld [vmem:[%s8586_s11 + $0xbf4] sm:$0xf0] }
 0x221   : > { %4457 = vmatpush.bf16.msra.mxu3 %v6723_v61  ;;  %v1060_v61 = vperm.slane %v7994_v60, 3  ;;  %v7011_v1 = vor.u32 %v7778_v54, %v7008_v55  ;;  %v7834_v49 = vld [vmem:[%s8586_s11 + $0xf44] sm:$0xf]  ;;  %v6816_v55 = vld [vmem:[%s8586_s11 + $0xc10] sm:$0xf0] }
 0x222   : > { %4420 = vmatpush.bf16.msra.mxu0 %v6307_v4  ;;  %4433 = vmatpush.bf16.msra.mxu1 %v6435_v42  ;;  %v6864_v4 = vld [vmem:[%s8586_s11 + $0xc70] sm:$0xf0]  ;;  %v6422_v60 = vld [vmem:[%s8586_s11 + $0x8e8] sm:$0xf]  ;;  %v7235_v0 = vor.u32 %v7834_v49, %v7232_v50 }
 0x223   : > { %v6992_v42 = vld [vmem:[%s8586_s11 + $0xd70] sm:$0xf0]  ;;  %v6867_v16 = vor.u32 %v7742_v2, %v6864_v4  ;;  %v7798_v2 = vld [vmem:[%s8586_s11 + $0xe24] sm:$0xf]  ;;  %v6790_v50 = vld [vmem:[%s8586_s11 + $0xbc8] sm:$0xf] }
 0x224   : > { %4445 = vmatpush.bf16.msra.mxu2 %v6579_v14  ;;  %v7136_v14 = vld [vmem:[%s8586_s11 + $0xe90] sm:$0xf0]  ;;  %v2679_v15 = vpop.f32.mrf.mxu1  ;;  %v6995_v20 = vor.u32 %v7774_v9, %v6992_v42 }
 0x225   : > { %4458 = vmatpush.bf16.msra.mxu3 %v6707_v17  ;;  %4421 = vmatmul.bf16.vlgmr.msra.gmra.mxu0 %v8765_v3  ;;  %v7842_v17 = vld [vmem:[%s8586_s11 + $0xf84] sm:$0xf]  ;;  %v7088_v4 = vld [vmem:[%s8586_s11 + $0xe30] sm:$0xf0] }
 0x226   : > { %4465 = vmatpush.bf16.msrb.mxu0 %v6931_v51  ;;  %4478 = vmatpush.bf16.msrb.mxu1 %v7059_v13  ;;  %v2666_v51 = vpop.f32.mrf.mxu0  ;;  %v7810_v13 = vld [vmem:[%s8586_s11 + $0xe84] sm:$0xf]  ;;  %v7267_v28 = vor.u32 %v7842_v17, %v7264_v19  ;;  %v7091_v17 = vor.u32 %v7798_v2, %v7088_v4  ;;  %v7629_v19 = vld [vmem:[%s8586_s11 + $0x8d4] sm:$0xf0] }
 0x227   : > { %4434 = vmatmul.bf16.vlgmr.msra.gmra.mxu1 %v8770_v8  ;;  %v2667_v6 = vadd.f32 %v2666_v51, %v1060_v61  ;;  %v7139_v23 = vor.u32 %v7810_v13, %v7136_v14  ;;  %v7633_v61 = vld [vmem:[%s8586_s11 + $0x8f4] sm:$0xf0]  ;;  %v7830_v51 = vld [vmem:[%s8586_s11 + $0xf24] sm:$0xf] }
 0x228   : > { %4446 = vmatpush.bf16.msra.mxu2 %v6563_v29  ;;  %v7120_v29 = vld [vmem:[%s8586_s11 + $0xe70] sm:$0xf0]  ;;  %v6423_v14 = vor.u32 %v7633_v61, %v6422_v60  ;;  %v7653_v60 = vld [vmem:[%s8586_s11 + $0x994] sm:$0xf0] }
 0x229   : > { %4459 = vmatpush.bf16.msra.mxu3 %v6691_v33  ;;  %v2680_v11 = vadd.f32 %v2679_v15, %v2667_v6  ;;  %v6406_v6 = vld [vmem:[%s8586_s11 + $0x8c8] sm:$0xf]  ;;  %v7721_v2 = vld [vmem:[%s8586_s11 + $0xbb4] sm:$0xf0] }
 0x22a   : > { %4466 = vmatpush.bf16.msrb.mxu0 %v6915_v25  ;;  %4479 = vmatpush.bf16.msrb.mxu1 %v7043_v53  ;;  %v7770_v25 = vld [vmem:[%s8586_s11 + $0xd44] sm:$0xf] }
 0x22b   : > { %4447 = vmatmul.bf16.vlgmr.msra.gmra.mxu2 %v8785_v36  ;;  %v7806_v53 = vld [vmem:[%s8586_s11 + $0xe64] sm:$0xf]  ;;  %v6979_v33 = vor.u32 %v7770_v25, %v6976_v27  ;;  %v7200_v27 = vld [vmem:[%s8586_s11 + $0xf10] sm:$0xf0] }
 0x22c   : > { %4491 = vmatpush.bf16.msrb.mxu2 %v7187_v34  ;;  %4460 = vmatmul.bf16.vlgmr.msra.gmra.mxu3 %v8792_v43  ;;  %v7734_v34 = vld [vmem:[%s8586_s11 + $0xc24] sm:$0xf]  ;;  %v7123_v37 = vor.u32 %v7806_v53, %v7120_v29  ;;  %v2681_v46 = vpop.f32.mrf.mxu1  ;;  %v7697_v53 = vld [vmem:[%s8586_s11 + $0xaf4] sm:$0xf0]  ;;  %v6407_v29 = vor.u32 %v7629_v19, %v6406_v6  ;;  %v6630_v6 = vld [vmem:[%s8586_s11 + $0xa88] sm:$0xf] }
 0x22d   : > { %4504 = vmatpush.bf16.msrb.mxu3 %v7315_v39  ;;  %v6960_v39 = vld [vmem:[%s8586_s11 + $0xd30] sm:$0xf0]  ;;  %v7826_v25 = vld [vmem:[%s8586_s11 + $0xf04] sm:$0xf]  ;;  %v6662_v46 = vld [vmem:[%s8586_s11 + $0xac8] sm:$0xf] }
 0x22e   : > { %4467 = vmatpush.bf16.msrb.mxu0 %v6899_v44  ;;  %4480 = vmatpush.bf16.msrb.mxu1 %v7027_v48  ;;  %v2668_v40 = vpop.f32.mrf.mxu0  ;;  %v7802_v44 = vld [vmem:[%s8586_s11 + $0xe44] sm:$0xf]  ;;  %v6835_v48 = vor.u32 %v7734_v34, %v6832_v35  ;;  %v6963_v54 = vor.u32 %v7766_v38, %v6960_v39  ;;  %v2692_v63 = vpop.f32.mrf.mxu2  ;;  %v6390_v34 = vld [vmem:[%s8586_s11 + $0x8a8] sm:$0xf]  ;;  %v7625_v35 = vld [vmem:[%s8586_s11 + $0x8b4] sm:$0xf0]  ;;  %v7203_v38 = vor.u32 %v7826_v25, %v7200_v27 }
 0x22f   : > { %v7107_v59 = vor.u32 %v7802_v44, %v7104_v45  ;;  %v2705_v9 = vpop.f32.mrf.mxu3  ;;  %v6518_v40 = vld [vmem:[%s8586_s11 + $0x9a8] sm:$0xf]  ;;  %v6391_v49 = vor.u32 %v7625_v35, %v6390_v34  ;;  %v7613_v25 = vld [vmem:[%s8586_s11 + $0x854] sm:$0xf0] }
 0x230   : > { %4492 = vmatpush.bf16.msrb.mxu2 %v7171_v52  ;;  %v7730_v52 = vld [vmem:[%s8586_s11 + $0xc04] sm:$0xf]  ;;  %v7713_v34 = vld [vmem:[%s8586_s11 + $0xb74] sm:$0xf0] }
 0x231   : > { %4505 = vmatpush.bf16.msrb.mxu3 %v7299_v56  ;;  %v7762_v56 = vld [vmem:[%s8586_s11 + $0xd04] sm:$0xf]  ;;  %v6819_v42 = vor.u32 %v7730_v52, %v6816_v55  ;;  %v7725_v52 = vld [vmem:[%s8586_s11 + $0xbd4] sm:$0xf0]  ;;  %v6374_v55 = vld [vmem:[%s8586_s11 + $0x888] sm:$0xf] }
 0x232   : > { %4468 = vmatpush.bf16.msrb.mxu0 %v6883_v62  ;;  %4481 = vmatpush.bf16.msrb.mxu1 %v7011_v1  ;;  %v6550_v62 = vld [vmem:[%s8586_s11 + $0x9e8] sm:$0xf]  ;;  %v7665_v1 = vld [vmem:[%s8586_s11 + $0x9f4] sm:$0xf0]  ;;  %v6947_v13 = vor.u32 %v7762_v56, %v6944_v57  ;;  %v6791_v61 = vor.u32 %v7725_v52, %v6790_v50 }
 0x233   : > { %v7621_v56 = vld [vmem:[%s8586_s11 + $0x894] sm:$0xf0]  ;;  %v6726_v52 = vld [vmem:[%s8586_s11 + $0xb48] sm:$0xf] }
 0x234   : > { %4493 = vmatpush.bf16.msrb.mxu2 %v7155_v7  ;;  %v2693_v7 = vadd.f32 %v2692_v63, %v2680_v11  ;;  %v7794_v11 = vld [vmem:[%s8586_s11 + $0xe04] sm:$0xf]  ;;  %v7689_v63 = vld [vmem:[%s8586_s11 + $0xab4] sm:$0xf0] }
 0x235   : > { %4506 = vmatpush.bf16.msrb.mxu3 %v7283_v10  ;;  %v7216_v10 = vld [vmem:[%s8586_s11 + $0xf30] sm:$0xf0] }
 0x236   : > { %4469 = vmatpush.bf16.msrb.mxu0 %v6867_v16  ;;  %4482 = vmatpush.bf16.msrb.mxu1 %v6995_v20  ;;  %v9493_v15 = vadd.f32 %v2705_v9, %v2693_v7  ;;  %v6551_v16 = vor.u32 %v7665_v1, %v6550_v62  ;;  %v6534_v20 = vld [vmem:[%s8586_s11 + $0x9c8] sm:$0xf]  ;;  %v7219_v22 = vor.u32 %v7830_v51, %v7216_v10  ;;  %v7617_v9 = vld [vmem:[%s8586_s11 + $0x874] sm:$0xf0] }
 0x237   : > { %v6535_v32 = vor.u32 %v7661_v21, %v6534_v20  ;;  %v2707_v44 = vpop.f32.mrf.mxu3  ;;  %v6646_v62 = vld [vmem:[%s8586_s11 + $0xaa8] sm:$0xf]  ;;  %v7649_v10 = vld [vmem:[%s8586_s11 + $0x974] sm:$0xf0] }
 0x238   : > { %4494 = vmatpush.bf16.msrb.mxu2 %v7139_v23  ;;  %v7072_v23 = vld [vmem:[%s8586_s11 + $0xe10] sm:$0xf0]  ;;  %v6774_v1 = vld [vmem:[%s8586_s11 + $0xba8] sm:$0xf] }
 0x239   : > { %4507 = vmatpush.bf16.msrb.mxu3 %v7267_v28  ;;  %v6678_v28 = vld [vmem:[%s8586_s11 + $0xae8] sm:$0xf] }
 0x23a   : > { %4470 = vmatpush.bf16.msrb.mxu0 %v6851_v30  ;;  %4483 = vmatpush.bf16.msrb.mxu1 %v6979_v33  ;;  %v6806_v30 = vld [vmem:[%s8586_s11 + $0xbe8] sm:$0xf]  ;;  %v7075_v33 = vor.u32 %v7794_v11, %v7072_v23  ;;  %v6679_v39 = vor.u32 %v7697_v53, %v6678_v28 }
 0x23b   : > { %v6807_v45 = vor.u32 %v7729_v31, %v6806_v30  ;;  %v6358_v7 = vld [vmem:[%s8586_s11 + $0x868] sm:$0xf]  ;;  %v7681_v31 = vld [vmem:[%s8586_s11 + $0xa74] sm:$0xf0] }
 0x23c   : > { %4495 = vmatpush.bf16.msrb.mxu2 %v7123_v37  ;;  %v2694_v37 = vpop.f32.mrf.mxu2  ;;  %v6486_v51 = vld [vmem:[%s8586_s11 + $0x968] sm:$0xf]  ;;  %v6359_v20 = vor.u32 %v7617_v9, %v6358_v7  ;;  %v7673_v9 = vld [vmem:[%s8586_s11 + $0xa34] sm:$0xf0] }
 0x23d   : > { %4508 = vmatpush.bf16.msrb.mxu3 %v7251_v41  ;;  %v7657_v41 = vld [vmem:[%s8586_s11 + $0x9b4] sm:$0xf0]  ;;  %v6758_v21 = vld [vmem:[%s8586_s11 + $0xb88] sm:$0xf]  ;;  %v6487_v11 = vor.u32 %v7649_v10, %v6486_v51 }
 0x23e   : > { %4471 = vmatpush.bf16.msrb.mxu0 %v6835_v48  ;;  %4484 = vmatpush.bf16.msrb.mxu1 %v6963_v54  ;;  %v7693_v48 = vld [vmem:[%s8586_s11 + $0xad4] sm:$0xf0]  ;;  %v6519_v54 = vor.u32 %v7657_v41, %v6518_v40  ;;  %v6342_v23 = vld [vmem:[%s8586_s11 + $0x848] sm:$0xf] }
 0x23f   : > { %v6663_v57 = vor.u32 %v7693_v48, %v6662_v46  ;;  %v6470_v53 = vld [vmem:[%s8586_s11 + $0x948] sm:$0xf]  ;;  %v7641_v41 = vld [vmem:[%s8586_s11 + $0x934] sm:$0xf0] }
 0x240   : > { %4496 = vmatpush.bf16.msrb.mxu2 %v7107_v59  ;;  %v6502_v59 = vld [vmem:[%s8586_s11 + $0x988] sm:$0xf]  ;;  %v7677_v48 = vld [vmem:[%s8586_s11 + $0xa54] sm:$0xf0] }
 0x241   : > { %4509 = vmatpush.bf16.msrb.mxu3 %v7235_v0  ;;  %v6375_v0 = vor.u32 %v7621_v56, %v6374_v55  ;;  %v6503_v4 = vor.u32 %v7653_v60, %v6502_v59  ;;  %v6614_v30 = vld [vmem:[%s8586_s11 + $0xa68] sm:$0xf]  ;;  %v7637_v60 = vld [vmem:[%s8586_s11 + $0x914] sm:$0xf0] }
 0x242   : > { %4472 = vmatpush.bf16.msrb.mxu0 %v6819_v42  ;;  %4485 = vmatpush.bf16.msrb.mxu1 %v6947_v13  ;;  %v6647_v42 = vor.u32 %v7689_v63, %v6646_v62  ;;  %v2718_v13 = vpop.f32.mrf.mxu0  ;;  %v6326_v37 = vld [vmem:[%s8586_s11 + $0x828] sm:$0xf]  ;;  %v7761_v63 = vld [vmem:[%s8586_s11 + $0xcf4] sm:$0xf0] }
 0x243   : > { %v6454_v40 = vld [vmem:[%s8586_s11 + $0x928] sm:$0xf] }
 0x244   : > { %4497 = vmatpush.bf16.msrb.mxu2 %v7091_v17  ;;  %v2719_v17 = vadd.f32 %v2718_v13, %v9493_v15  ;;  %v2731_v19 = vpop.f32.mrf.mxu1  ;;  %v7645_v15 = vld [vmem:[%s8586_s11 + $0x954] sm:$0xf0]  ;;  %v6598_v46 = vld [vmem:[%s8586_s11 + $0xa48] sm:$0xf]  ;;  %v6455_v56 = vor.u32 %v7641_v41, %v6454_v40 }
 0x245   : > { %4510 = vmatpush.bf16.msrb.mxu3 %v7219_v22  ;;  %4473 = vmatmul.bf16.vlgmr.msrb.gmra.mxu0 %v8817_v18  ;;  %v7717_v22 = vld [vmem:[%s8586_s11 + $0xb94] sm:$0xf0]  ;;  %v6471_v35 = vor.u32 %v7645_v15, %v6470_v53  ;;  %v6310_v55 = vld [vmem:[%s8586_s11 + $0x808] sm:$0xf] }
 0x246   : > { %4517 = vmatpush.bf16.msra.mxu0 %v6423_v14  ;;  %4530 = vmatpush.bf16.msra.mxu1 %v6551_v16  ;;  %v6775_v14 = vor.u32 %v7721_v2, %v6774_v1  ;;  %v7685_v16 = vld [vmem:[%s8586_s11 + $0xa94] sm:$0xf0]  ;;  %v2732_v27 = vadd.f32 %v2731_v19, %v2719_v17  ;;  %v6438_v59 = vld [vmem:[%s8586_s11 + $0x908] sm:$0xf] }
 0x247   : > { %4486 = vmatmul.bf16.vlgmr.msrb.gmra.mxu1 %v8822_v24  ;;  %v6631_v28 = vor.u32 %v7685_v16, %v6630_v6  ;;  %v6934_v62 = vld [vmem:[%s8586_s11 + $0xce8] sm:$0xf]  ;;  %v6439_v6 = vor.u32 %v7637_v60, %v6438_v59  ;;  %v7701_v15 = vld [vmem:[%s8586_s11 + $0xb14] sm:$0xf0] }
 0x248   : > { %4498 = vmatpush.bf16.msrb.mxu2 %v7075_v33  ;;  %v6742_v33 = vld [vmem:[%s8586_s11 + $0xb68] sm:$0xf]  ;;  %v6935_v16 = vor.u32 %v7761_v63, %v6934_v62  ;;  %v7749_v59 = vld [vmem:[%s8586_s11 + $0xc94] sm:$0xf0] }
 0x249   : > { %4511 = vmatpush.bf16.msrb.mxu3 %v7203_v38  ;;  %v7609_v38 = vld [vmem:[%s8586_s11 + $0x834] sm:$0xf0]  ;;  %v6582_v7 = vld [vmem:[%s8586_s11 + $0xa28] sm:$0xf] }
 0x24a   : > { %4518 = vmatpush.bf16.msra.mxu0 %v6407_v29  ;;  %4531 = vmatpush.bf16.msra.mxu1 %v6535_v32  ;;  %v6759_v29 = vor.u32 %v7717_v22, %v6758_v21  ;;  %v6343_v32 = vor.u32 %v7613_v25, %v6342_v23  ;;  %v2720_v44 = vpop.f32.mrf.mxu0  ;;  %v6327_v50 = vor.u32 %v7609_v38, %v6326_v37  ;;  %v6710_v13 = vld [vmem:[%s8586_s11 + $0xb28] sm:$0xf]  ;;  %v7757_v22 = vld [vmem:[%s8586_s11 + $0xcd4] sm:$0xf0] }
 0x24b   : > { %4499 = vmatmul.bf16.vlgmr.msrb.gmra.mxu2 %v8837_v26  ;;  %v6918_v17 = vld [vmem:[%s8586_s11 + $0xcc8] sm:$0xf]  ;;  %v6583_v21 = vor.u32 %v7673_v9, %v6582_v7  ;;  %v7789_v23 = vld [vmem:[%s8586_s11 + $0xdd4] sm:$0xf0] }
 0x24c   : > { %4543 = vmatpush.bf16.msra.mxu2 %v6679_v39  ;;  %4512 = vmatmul.bf16.vlgmr.msrb.gmra.mxu3 %v8842_v58  ;;  %v6615_v39 = vor.u32 %v7681_v31, %v6614_v30  ;;  %v6694_v53 = vld [vmem:[%s8586_s11 + $0xb08] sm:$0xf]  ;;  %v7825_v30 = vld [vmem:[%s8586_s11 + $0xef4] sm:$0xf0]  ;;  %v6919_v31 = vor.u32 %v7757_v22, %v6918_v17 }
 0x24d   : > { %4556 = vmatpush.bf16.msra.mxu3 %v6807_v45  ;;  %v6743_v45 = vor.u32 %v7713_v34, %v6742_v33  ;;  %v7857_v33 = vld [vmem:[%s8586_s11 + $0xff4] sm:$0xf0]  ;;  %v6902_v37 = vld [vmem:[%s8586_s11 + $0xca8] sm:$0xf]  ;;  %v6695_v40 = vor.u32 %v7701_v15, %v6694_v53 }
 0x24e   : > { %4519 = vmatpush.bf16.msra.mxu0 %v6391_v49  ;;  %4532 = vmatpush.bf16.msra.mxu1 %v6519_v54  ;;  %v2733_v49 = vpop.f32.mrf.mxu1  ;;  %v7709_v54 = vld [vmem:[%s8586_s11 + $0xb54] sm:$0xf0]  ;;  %v2744_v1 = vpop.f32.mrf.mxu2  ;;  %v7030_v44 = vld [vmem:[%s8586_s11 + $0xda8] sm:$0xf] }
 0x24f   : > { %v6727_v2 = vor.u32 %v7709_v54, %v6726_v52  ;;  %v2757_v51 = vpop.f32.mrf.mxu3  ;;  %v7753_v38 = vld [vmem:[%s8586_s11 + $0xcb4] sm:$0xf0]  ;;  %v7174_v49 = vld [vmem:[%s8586_s11 + $0xec8] sm:$0xf] }
 0x250   : > { %4544 = vmatpush.bf16.msra.mxu2 %v6663_v57  ;;  %v7605_v57 = vld [vmem:[%s8586_s11 + $0x814] sm:$0xf0]  ;;  %v6903_v52 = vor.u32 %v7753_v38, %v6902_v37  ;;  %v7302_v54 = vld [vmem:[%s8586_s11 + $0xfc8] sm:$0xf] }
 0x251   : > { %4557 = vmatpush.bf16.msra.mxu3 %v6791_v61  ;;  %v6599_v61 = vor.u32 %v7677_v48, %v6598_v46  ;;  %v6311_v10 = vor.u32 %v7605_v57, %v6310_v55  ;;  %v7853_v55 = vld [vmem:[%s8586_s11 + $0xfd4] sm:$0xf0]  ;;  %v6886_v57 = vld [vmem:[%s8586_s11 + $0xc88] sm:$0xf] }
 0x252   : > { %4520 = vmatpush.bf16.msra.mxu0 %v6375_v0  ;;  %4533 = vmatpush.bf16.msra.mxu1 %v6503_v4  ;;  %v7062_v0 = vld [vmem:[%s8586_s11 + $0xde8] sm:$0xf]  ;;  %v7793_v4 = vld [vmem:[%s8586_s11 + $0xdf4] sm:$0xf0]  ;;  %v7303_v63 = vor.u32 %v7853_v55, %v7302_v54 }
 0x253   : > { %v7781_v62 = vld [vmem:[%s8586_s11 + $0xd94] sm:$0xf0]  ;;  %v7142_v17 = vld [vmem:[%s8586_s11 + $0xe88] sm:$0xf] }
 0x254   : > { %4545 = vmatpush.bf16.msra.mxu2 %v6647_v42  ;;  %v2745_v42 = vadd.f32 %v2744_v1, %v2732_v27  ;;  %v6566_v27 = vld [vmem:[%s8586_s11 + $0xa08] sm:$0xf]  ;;  %v7817_v1 = vld [vmem:[%s8586_s11 + $0xeb4] sm:$0xf0] }
 0x255   : > { %4558 = vmatpush.bf16.msra.mxu3 %v6775_v14  ;;  %v7705_v14 = vld [vmem:[%s8586_s11 + $0xb34] sm:$0xf0]  ;;  %v6982_v15 = vld [vmem:[%s8586_s11 + $0xd48] sm:$0xf] }
 0x256   : > { %4521 = vmatpush.bf16.msra.mxu0 %v6359_v20  ;;  %4534 = vmatpush.bf16.msra.mxu1 %v6487_v11  ;;  %v9564_v19 = vadd.f32 %v2757_v51, %v2745_v42  ;;  %v7063_v20 = vor.u32 %v7793_v4, %v7062_v0  ;;  %v7046_v11 = vld [vmem:[%s8586_s11 + $0xdc8] sm:$0xf]  ;;  %v6711_v25 = vor.u32 %v7705_v14, %v6710_v13  ;;  %v7849_v7 = vld [vmem:[%s8586_s11 + $0xfb4] sm:$0xf0] }
 0x257   : > { %v7047_v34 = vor.u32 %v7789_v23, %v7046_v11  ;;  %v2759_v46 = vpop.f32.mrf.mxu3  ;;  %v7158_v0 = vld [vmem:[%s8586_s11 + $0xea8] sm:$0xf]  ;;  %v7745_v51 = vld [vmem:[%s8586_s11 + $0xc74] sm:$0xf0] }
 0x258   : > { %4546 = vmatpush.bf16.msra.mxu2 %v6631_v28  ;;  %v7669_v28 = vld [vmem:[%s8586_s11 + $0xa14] sm:$0xf0]  ;;  %v7286_v4 = vld [vmem:[%s8586_s11 + $0xfa8] sm:$0xf] }
 0x259   : > { %4559 = vmatpush.bf16.msra.mxu3 %v6759_v29  ;;  %v7190_v29 = vld [vmem:[%s8586_s11 + $0xee8] sm:$0xf]  ;;  %v7777_v14 = vld [vmem:[%s8586_s11 + $0xd74] sm:$0xf0] }
 0x25a   : > { %4522 = vmatpush.bf16.msra.mxu0 %v6343_v32  ;;  %4535 = vmatpush.bf16.msra.mxu1 %v6471_v35  ;;  %v7318_v32 = vld [vmem:[%s8586_s11 + $0xfe8] sm:$0xf]  ;;  %v6567_v35 = vor.u32 %v7669_v28, %v6566_v27  ;;  %v7191_v41 = vor.u32 %v7825_v30, %v7190_v29  ;;  %v7845_v23 = vld [vmem:[%s8586_s11 + $0xf94] sm:$0xf0] }
 0x25b   : > { %v7319_v48 = vor.u32 %v7857_v33, %v7318_v32  ;;  %v6870_v42 = vld [vmem:[%s8586_s11 + $0xc68] sm:$0xf]  ;;  %v7741_v28 = vld [vmem:[%s8586_s11 + $0xc54] sm:$0xf0] }
 0x25c   : > { %4547 = vmatpush.bf16.msra.mxu2 %v6615_v39  ;;  %v2746_v39 = vpop.f32.mrf.mxu2  ;;  %v6998_v13 = vld [vmem:[%s8586_s11 + $0xd68] sm:$0xf]  ;;  %v6871_v22 = vor.u32 %v7745_v51, %v6870_v42  ;;  %v7773_v29 = vld [vmem:[%s8586_s11 + $0xd54] sm:$0xf0] }
 0x25d   : > { %4560 = vmatpush.bf16.msra.mxu3 %v6743_v45  ;;  %v7785_v45 = vld [vmem:[%s8586_s11 + $0xdb4] sm:$0xf0]  ;;  %v7270_v11 = vld [vmem:[%s8586_s11 + $0xf88] sm:$0xf]  ;;  %v6983_v37 = vor.u32 %v7773_v29, %v6982_v15 }
 0x25e   : > { %4523 = vmatpush.bf16.msra.mxu0 %v6327_v50  ;;  %4536 = vmatpush.bf16.msra.mxu1 %v6455_v56  ;;  %v7821_v50 = vld [vmem:[%s8586_s11 + $0xed4] sm:$0xf0]  ;;  %v7031_v56 = vor.u32 %v7785_v45, %v7030_v44  ;;  %v6854_v27 = vld [vmem:[%s8586_s11 + $0xc48] sm:$0xf]  ;;  %v7271_v30 = vor.u32 %v7845_v23, %v7270_v11 }
 0x25f   : > { %v7175_v60 = vor.u32 %v7821_v50, %v7174_v49  ;;  %v7809_v32 = vld [vmem:[%s8586_s11 + $0xe74] sm:$0xf0]  ;;  %v6855_v33 = vor.u32 %v7741_v28, %v6854_v27  ;;  %v6838_v38 = vld [vmem:[%s8586_s11 + $0xc28] sm:$0xf]  ;;  %v7659_v27 = vld [vmem:[%s8586_s11 + $0x9cc] sm:$0xf] }
 0x260   : > { %4548 = vmatpush.bf16.msra.mxu2 %v6599_v61  ;;  %v7014_v61 = vld [vmem:[%s8586_s11 + $0xd88] sm:$0xf]  ;;  %v7737_v39 = vld [vmem:[%s8586_s11 + $0xc34] sm:$0xf0]  ;;  %v6536_v28 = vld [vmem:[%s8586_s11 + $0x9d8] sm:$0xf0] }
 0x261   : > { %4561 = vmatpush.bf16.msra.mxu3 %v6727_v2  ;;  %v6887_v2 = vor.u32 %v7749_v59, %v6886_v57  ;;  %v7015_v9 = vor.u32 %v7781_v62, %v7014_v61  ;;  %v7769_v44 = vld [vmem:[%s8586_s11 + $0xd34] sm:$0xf0]  ;;  %v7238_v54 = vld [vmem:[%s8586_s11 + $0xf48] sm:$0xf] }
 0x262   : > { %4524 = vmatpush.bf16.msra.mxu0 %v6311_v10  ;;  %4537 = vmatpush.bf16.msra.mxu1 %v6439_v6  ;;  %v7159_v10 = vor.u32 %v7817_v1, %v7158_v0  ;;  %v9601_v6 = vpop.f32.mrf.mxu0  ;;  %v7805_v49 = vld [vmem:[%s8586_s11 + $0xe54] sm:$0xf0]  ;;  %v6424_v0 = vld [vmem:[%s8586_s11 + $0x8f8] sm:$0xf0]  ;;  %v7663_v1 = vld [vmem:[%s8586_s11 + $0x9ec] sm:$0xf] }
 0x263   : > { %v7837_v55 = vld [vmem:[%s8586_s11 + $0xf54] sm:$0xf0]  ;;  %v7078_v15 = vld [vmem:[%s8586_s11 + $0xe08] sm:$0xf] }
 0x264   : > { %4549 = vmatpush.bf16.msra.mxu2 %v6583_v21  ;;  %v9605_v21 = vpop.f32.mrf.mxu1  ;;  %v7733_v59 = vld [vmem:[%s8586_s11 + $0xc14] sm:$0xf0] }
 0x265   : > { %4562 = vmatpush.bf16.msra.mxu3 %v6711_v25  ;;  %4525 = vmatmul.bf16.vlgmr.msra.gmra.mxu0 %v8765_v3  ;;  %v6999_v25 = vor.u32 %v7777_v14, %v6998_v13  ;;  %v7765_v61 = vld [vmem:[%s8586_s11 + $0xd14] sm:$0xf0]  ;;  %v7222_v13 = vld [vmem:[%s8586_s11 + $0xf28] sm:$0xf] }
 0x266   : > { %4569 = vmatpush.bf16.msrb.mxu0 %v6935_v16  ;;  %4582 = vmatpush.bf16.msrb.mxu1 %v7063_v20  ;;  %v7287_v16 = vor.u32 %v7849_v7, %v7286_v4  ;;  %v7813_v20 = vld [vmem:[%s8586_s11 + $0xe94] sm:$0xf0]  ;;  %v7239_v4 = vor.u32 %v7837_v55, %v7238_v54  ;;  %v6552_v7 = vld [vmem:[%s8586_s11 + $0x9f8] sm:$0xf0]  ;;  %v7691_v55 = vld [vmem:[%s8586_s11 + $0xacc] sm:$0xf] }
 0x267   : > { %4538 = vmatmul.bf16.vlgmr.msra.gmra.mxu1 %v8770_v8  ;;  %v7143_v53 = vor.u32 %v7813_v20, %v7142_v17  ;;  %v7801_v42 = vld [vmem:[%s8586_s11 + $0xe34] sm:$0xf0]  ;;  %v7627_v20 = vld [vmem:[%s8586_s11 + $0x8cc] sm:$0xf]  ;;  %v6555_v11 = vor.u32 %v7663_v1, %v6552_v7  ;;  %v6504_v7 = vld [vmem:[%s8586_s11 + $0x998] sm:$0xf0] }
 0x268   : > { %4550 = vmatpush.bf16.msra.mxu2 %v6567_v35  ;;  %v7841_v35 = vld [vmem:[%s8586_s11 + $0xf74] sm:$0xf0] }
 0x269   : > { %4563 = vmatpush.bf16.msra.mxu3 %v6695_v40  ;;  %v7833_v14 = vld [vmem:[%s8586_s11 + $0xf34] sm:$0xf0] }
 0x26a   : > { %4570 = vmatpush.bf16.msrb.mxu0 %v6919_v31  ;;  %4583 = vmatpush.bf16.msrb.mxu1 %v7047_v34  ;;  %v7126_v31 = vld [vmem:[%s8586_s11 + $0xe68] sm:$0xf]  ;;  %v4320_v45 = vpop.f32.mrf.mxu0  ;;  %v7797_v29 = vld [vmem:[%s8586_s11 + $0xe14] sm:$0xf0] }
 0x26b   : > { %4551 = vmatmul.bf16.vlgmr.msra.gmra.mxu2 %v8785_v36  ;;  %v7254_v34 = vld [vmem:[%s8586_s11 + $0xf68] sm:$0xf]  ;;  %v7127_v40 = vor.u32 %v7809_v32, %v7126_v31  ;;  %v7829_v31 = vld [vmem:[%s8586_s11 + $0xf14] sm:$0xf0]  ;;  %v7695_v32 = vld [vmem:[%s8586_s11 + $0xaec] sm:$0xf] }
 0x26c   : > { %4595 = vmatpush.bf16.msrb.mxu2 %v7191_v41  ;;  %4564 = vmatmul.bf16.vlgmr.msra.gmra.mxu3 %v8792_v43  ;;  %v6966_v41 = vld [vmem:[%s8586_s11 + $0xd28] sm:$0xf]  ;;  %v7255_v46 = vor.u32 %v7841_v35, %v7254_v34  ;;  %v4333_v50 = vpop.f32.mrf.mxu1  ;;  %v7727_v35 = vld [vmem:[%s8586_s11 + $0xbec] sm:$0xf] }
 0x26d   : > { %4608 = vmatpush.bf16.msrb.mxu3 %v7319_v48  ;;  %v7110_v48 = vld [vmem:[%s8586_s11 + $0xe48] sm:$0xf]  ;;  %v6967_v57 = vor.u32 %v7769_v44, %v6966_v41  ;;  %v6392_v41 = vld [vmem:[%s8586_s11 + $0x8b8] sm:$0xf0] }
 0x26e   : > { %4571 = vmatpush.bf16.msrb.mxu0 %v6903_v52  ;;  %4584 = vmatpush.bf16.msrb.mxu1 %v7031_v56  ;;  %v6839_v52 = vor.u32 %v7737_v39, %v6838_v38  ;;  %v6822_v56 = vld [vmem:[%s8586_s11 + $0xc08] sm:$0xf]  ;;  %v7111_v62 = vor.u32 %v7805_v49, %v7110_v48  ;;  %v6539_v38 = vor.u32 %v7659_v27, %v6536_v28  ;;  %v7655_v49 = vld [vmem:[%s8586_s11 + $0x9ac] sm:$0xf]  ;;  %v6520_v50 = vld [vmem:[%s8586_s11 + $0x9b8] sm:$0xf0] }
 0x26f   : > { %v9637_v51 = vpop.f32.mrf.mxu3  ;;  %v7079_v39 = vor.u32 %v7797_v29, %v7078_v15  ;;  %v6488_v27 = vld [vmem:[%s8586_s11 + $0x978] sm:$0xf0]  ;;  %v7683_v15 = vld [vmem:[%s8586_s11 + $0xa8c] sm:$0xf] }
 0x270   : > { %4596 = vmatpush.bf16.msrb.mxu2 %v7175_v60  ;;  %v6950_v60 = vld [vmem:[%s8586_s11 + $0xd08] sm:$0xf]  ;;  %v6632_v29 = vld [vmem:[%s8586_s11 + $0xa98] sm:$0xf0] }
 0x271   : > { %4609 = vmatpush.bf16.msrb.mxu3 %v7303_v63  ;;  %v7631_v63 = vld [vmem:[%s8586_s11 + $0x8ec] sm:$0xf] }
 0x272   : > { %4572 = vmatpush.bf16.msrb.mxu0 %v6887_v2  ;;  %4585 = vmatpush.bf16.msrb.mxu1 %v7015_v9  ;;  %v9632_v2 = vpop.f32.mrf.mxu2  ;;  %v7094_v9 = vld [vmem:[%s8586_s11 + $0xe28] sm:$0xf]  ;;  %v6427_v17 = vor.u32 %v7631_v63, %v6424_v0  ;;  %v6376_v63 = vld [vmem:[%s8586_s11 + $0x898] sm:$0xf0] }
 0x273   : > { %v7095_v23 = vor.u32 %v7801_v42, %v7094_v9  ;;  %v7687_v42 = vld [vmem:[%s8586_s11 + $0xaac] sm:$0xf] }
 0x274   : > { %4597 = vmatpush.bf16.msrb.mxu2 %v7159_v10  ;;  %v6823_v10 = vor.u32 %v7733_v59, %v6822_v56  ;;  %v6664_v56 = vld [vmem:[%s8586_s11 + $0xad8] sm:$0xf0]  ;;  %v7723_v59 = vld [vmem:[%s8586_s11 + $0xbcc] sm:$0xf] }
 0x275   : > { %4610 = vmatpush.bf16.msrb.mxu3 %v7287_v16  ;;  %v6951_v16 = vor.u32 %v7765_v61, %v6950_v60  ;;  %v6792_v60 = vld [vmem:[%s8586_s11 + $0xbd8] sm:$0xf0]  ;;  %v6523_v61 = vor.u32 %v7655_v49, %v6520_v50  ;;  %v6667_v1 = vor.u32 %v7691_v55, %v6664_v56 }
 0x276   : > { %4573 = vmatpush.bf16.msrb.mxu0 %v6871_v22  ;;  %4586 = vmatpush.bf16.msrb.mxu1 %v6999_v25  ;;  %v9643_v22 = vld [vmem:[%s8593_s26 + $0x4] sm:$0xf]  ;;  %v6408_v25 = vld [vmem:[%s8586_s11 + $0x8d8] sm:$0xf0]  ;;  %v6795_v9 = vor.u32 %v7723_v59, %v6792_v60 }
 0x277   : > { %v6411_v34 = vor.u32 %v7627_v20, %v6408_v25  ;;  %v3021_v44 = vperm.slane %v9643_v22, 0  ;;  %v6360_v20 = vld [vmem:[%s8586_s11 + $0x878] sm:$0xf0]  ;;  %v7647_v25 = vld [vmem:[%s8586_s11 + $0x96c] sm:$0xf] }
 0x278   : > { %4598 = vmatpush.bf16.msrb.mxu2 %v7143_v53  ;;  %v7223_v53 = vor.u32 %v7833_v14, %v7222_v13  ;;  %v7719_v14 = vld [vmem:[%s8586_s11 + $0xbac] sm:$0xf]  ;;  %v6744_v49 = vld [vmem:[%s8586_s11 + $0xb78] sm:$0xf0] }
 0x279   : > { %4611 = vmatpush.bf16.msrb.mxu3 %v7271_v30  ;;  %v7206_v30 = vld [vmem:[%s8586_s11 + $0xf08] sm:$0xf]  ;;  %v4319_v0 = vadd.f32 %v9601_v6, %v3021_v44  ;;  %v6776_v6 = vld [vmem:[%s8586_s11 + $0xbb8] sm:$0xf0] }
 0x27a   : > { %4574 = vmatpush.bf16.msrb.mxu0 %v6855_v33  ;;  %4587 = vmatpush.bf16.msrb.mxu1 %v6983_v37  ;;  %v6680_v33 = vld [vmem:[%s8586_s11 + $0xaf8] sm:$0xf0]  ;;  %v4346_v45 = vpop.f32.mrf.mxu2 }
 0x27b   : > { %v6808_v37 = vld [vmem:[%s8586_s11 + $0xbf8] sm:$0xf0]  ;;  %v6683_v48 = vor.u32 %v7695_v32, %v6680_v33  ;;  %v7715_v32 = vld [vmem:[%s8586_s11 + $0xb8c] sm:$0xf] }
 0x27c   : > { %4599 = vmatpush.bf16.msrb.mxu2 %v7127_v40  ;;  %v7623_v40 = vld [vmem:[%s8586_s11 + $0x8ac] sm:$0xf]  ;;  %v6811_v54 = vor.u32 %v7727_v35, %v6808_v37  ;;  %v6760_v33 = vld [vmem:[%s8586_s11 + $0xb98] sm:$0xf0] }
 0x27d   : > { %4612 = vmatpush.bf16.msrb.mxu3 %v7255_v46  ;;  %v7207_v46 = vor.u32 %v7829_v31, %v7206_v30  ;;  %v7611_v35 = vld [vmem:[%s8586_s11 + $0x84c] sm:$0xf]  ;;  %v6344_v37 = vld [vmem:[%s8586_s11 + $0x858] sm:$0xf0] }
 0x27e   : > { %4575 = vmatpush.bf16.msrb.mxu0 %v6839_v52  ;;  %4588 = vmatpush.bf16.msrb.mxu1 %v6967_v57  ;;  %v4359_v52 = vpop.f32.mrf.mxu3  ;;  %v6395_v57 = vor.u32 %v7623_v40, %v6392_v41  ;;  %v6763_v40 = vor.u32 %v7715_v32, %v6760_v33  ;;  %v7679_v41 = vld [vmem:[%s8586_s11 + $0xa6c] sm:$0xf]  ;;  %v6616_v44 = vld [vmem:[%s8586_s11 + $0xa78] sm:$0xf0] }
 0x27f   : > { %v7607_v52 = vld [vmem:[%s8586_s11 + $0x82c] sm:$0xf]  ;;  %v6619_v56 = vor.u32 %v7679_v41, %v6616_v44  ;;  %v6456_v59 = vld [vmem:[%s8586_s11 + $0x938] sm:$0xf0] }
 0x280   : > { %4600 = vmatpush.bf16.msrb.mxu2 %v7111_v62  ;;  %v7619_v62 = vld [vmem:[%s8586_s11 + $0x88c] sm:$0xf] }
 0x281   : > { %4613 = vmatpush.bf16.msrb.mxu3 %v7239_v4  ;;  %v7651_v4 = vld [vmem:[%s8586_s11 + $0x98c] sm:$0xf]  ;;  %v6379_v13 = vor.u32 %v7619_v62, %v6376_v63  ;;  %v6600_v62 = vld [vmem:[%s8586_s11 + $0xa58] sm:$0xf0]  ;;  %v789_v63 = vstv %s9685_s25 }
 0x282   : > { %4576 = vmatpush.bf16.msrb.mxu0 %v6823_v10  ;;  %4589 = vmatpush.bf16.msrb.mxu1 %v6951_v16  ;;  %v6648_v10 = vld [vmem:[%s8586_s11 + $0xab8] sm:$0xf0]  ;;  %v6507_v16 = vor.u32 %v7651_v4, %v6504_v7  ;;  %v4370_v28 = vpop.f32.mrf.mxu0  ;;  %v7707_v4 = vld [vmem:[%s8586_s11 + $0xb4c] sm:$0xf] }
 0x283   : > { %v6728_v7 = vld [vmem:[%s8586_s11 + $0xb58] sm:$0xf0] }
 0x284   : > { %4601 = vmatpush.bf16.msrb.mxu2 %v7095_v23  ;;  %v6651_v23 = vor.u32 %v7687_v42, %v6648_v10  ;;  %v4383_v31 = vpop.f32.mrf.mxu1  ;;  %v787_v42 = vpop.xlane.xlu0 %786 }
 0x285   : > { %4614 = vmatpush.bf16.msrb.mxu3 %v7223_v53  ;;  %4577 = vmatmul.bf16.vlgmr.msrb.gmra.mxu0 %v8817_v18  ;;  %v6779_v53 = vor.u32 %v7719_v14, %v6776_v6  ;;  %v795_v14 = vpop.xlane.xlu1 %794  ;;  %v6312_v6 = vld [vmem:[%s8586_s11 + $0x818] sm:$0xf0] }
 0x286   : > { %4621 = vmatpush.bf16.msra.mxu0 %v6427_v17  ;;  %4634 = vmatpush.bf16.msra.mxu1 %v6555_v11  ;;  %v7615_v17 = vld [vmem:[%s8586_s11 + $0x86c] sm:$0xf]  ;;  %v4332_v11 = vadd.f32 %v9605_v21, %v4319_v0 }
 0x287   : > { %4590 = vmatmul.bf16.vlgmr.msrb.gmra.mxu1 %v8822_v24  ;;  %v6363_v21 = vor.u32 %v7615_v17, %v6360_v20  ;;  %v6440_v17 = vld [vmem:[%s8586_s11 + $0x918] sm:$0xf0] }
 0x288   : > { %4602 = vmatpush.bf16.msrb.mxu2 %v7079_v39  ;;  %v4345_v30 = vadd.f32 %v9632_v2, %v4332_v11  ;;  %v7643_v2 = vld [vmem:[%s8586_s11 + $0x94c] sm:$0xf]  ;;  %v6472_v39 = vld [vmem:[%s8586_s11 + $0x958] sm:$0xf0] }
 0x289   : > { %4615 = vmatpush.bf16.msrb.mxu3 %v7207_v46  ;;  %v6347_v46 = vor.u32 %v7611_v35, %v6344_v37  ;;  %v6475_v50 = vor.u32 %v7643_v2, %v6472_v39  ;;  %v7703_v35 = vld [vmem:[%s8586_s11 + $0xb2c] sm:$0xf]  ;;  %v6712_v37 = vld [vmem:[%s8586_s11 + $0xb38] sm:$0xf0] }
 0x28a   : > { %4622 = vmatpush.bf16.msra.mxu0 %v6411_v34  ;;  %4635 = vmatpush.bf16.msra.mxu1 %v6539_v38  ;;  %v6491_v34 = vor.u32 %v7647_v25, %v6488_v27  ;;  %v6635_v38 = vor.u32 %v7683_v15, %v6632_v29  ;;  %v4358_v45 = vadd.f32 %v9637_v51, %v4345_v30  ;;  %v4372_v51 = vpop.f32.mrf.mxu0  ;;  %v6936_v25 = vld [vmem:[%s8586_s11 + $0xcf8] sm:$0xf0]  ;;  %v7791_v27 = vld [vmem:[%s8586_s11 + $0xdec] sm:$0xf] }
 0x28b   : > { %4603 = vmatmul.bf16.vlgmr.msrb.gmra.mxu2 %v8837_v26  ;;  %v7064_v15 = vld [vmem:[%s8586_s11 + $0xdf8] sm:$0xf0]  ;;  %v7671_v29 = vld [vmem:[%s8586_s11 + $0xa2c] sm:$0xf] }
 0x28c   : > { %4647 = vmatpush.bf16.msra.mxu2 %v6683_v48  ;;  %4616 = vmatmul.bf16.vlgmr.msrb.gmra.mxu3 %v8842_v58  ;;  %v7711_v48 = vld [vmem:[%s8586_s11 + $0xb6c] sm:$0xf]  ;;  %v4371_v55 = vadd.f32 %v4370_v28, %v4358_v45  ;;  %v4385_v0 = vpop.f32.mrf.mxu1  ;;  %v6584_v30 = vld [vmem:[%s8586_s11 + $0xa38] sm:$0xf0]  ;;  %v7067_v41 = vor.u32 %v7791_v27, %v7064_v15 }
 0x28d   : > { %4660 = vmatpush.bf16.msra.mxu3 %v6811_v54  ;;  %v6328_v54 = vld [vmem:[%s8586_s11 + $0x838] sm:$0xf0]  ;;  %v6747_v60 = vor.u32 %v7711_v48, %v6744_v49  ;;  %v7755_v39 = vld [vmem:[%s8586_s11 + $0xccc] sm:$0xf]  ;;  %v6587_v44 = vor.u32 %v7671_v29, %v6584_v30  ;;  %v6715_v49 = vor.u32 %v7703_v35, %v6712_v37 }
 0x28e   : > { %4623 = vmatpush.bf16.msra.mxu0 %v6395_v57  ;;  %4636 = vmatpush.bf16.msra.mxu1 %v6523_v61  ;;  %v7639_v57 = vld [vmem:[%s8586_s11 + $0x92c] sm:$0xf]  ;;  %v4384_v20 = vadd.f32 %v4383_v31, %v4371_v55  ;;  %v4396_v28 = vpop.f32.mrf.mxu2  ;;  %v6920_v45 = vld [vmem:[%s8586_s11 + $0xcd8] sm:$0xf0] }
 0x28f   : > { %v7675_v61 = vld [vmem:[%s8586_s11 + $0xa4c] sm:$0xf]  ;;  %v6459_v10 = vor.u32 %v7639_v57, %v6456_v59  ;;  %v4409_v31 = vpop.f32.mrf.mxu3  ;;  %v7048_v48 = vld [vmem:[%s8586_s11 + $0xdd8] sm:$0xf0] }
 0x290   : > { %4648 = vmatpush.bf16.msra.mxu2 %v6667_v1  ;;  %v6331_v1 = vor.u32 %v7607_v52, %v6328_v54  ;;  %v6603_v11 = vor.u32 %v7675_v61, %v6600_v62  ;;  %v4397_v32 = vadd.f32 %v4396_v28, %v4384_v20  ;;  %v6568_v52 = vld [vmem:[%s8586_s11 + $0xa18] sm:$0xf0]  ;;  %v7699_v54 = vld [vmem:[%s8586_s11 + $0xb0c] sm:$0xf] }
 0x291   : > { %4661 = vmatpush.bf16.msra.mxu3 %v6795_v9  ;;  %v7603_v9 = vld [vmem:[%s8586_s11 + $0x80c] sm:$0xf]  ;;  %v6696_v57 = vld [vmem:[%s8586_s11 + $0xb18] sm:$0xf0] }
 0x292   : > { %4624 = vmatpush.bf16.msra.mxu0 %v6379_v13  ;;  %4637 = vmatpush.bf16.msra.mxu1 %v6507_v16  ;;  %v797_v13 = vstv %s9692_s10  ;;  %v7635_v16 = vld [vmem:[%s8586_s11 + $0x90c] sm:$0xf]  ;;  %v7192_v51 = vld [vmem:[%s8586_s11 + $0xef8] sm:$0xf0] }
 0x293   : > { %v9723_v33 = vadd.f32 %v797_v13, %v795_v14  ;;  %v7823_v59 = vld [vmem:[%s8586_s11 + $0xeec] sm:$0xf]  ;;  %v7320_v62 = vld [vmem:[%s8586_s11 + $0xff8] sm:$0xf0] }
 0x294   : > { %4649 = vmatpush.bf16.msra.mxu2 %v6651_v23  ;;  %v7759_v23 = vld [vmem:[%s8586_s11 + $0xcec] sm:$0xf]  ;;  %v7032_v13 = vld [vmem:[%s8586_s11 + $0xdb8] sm:$0xf0] }
 0x295   : > { %4662 = vmatpush.bf16.msra.mxu3 %v6779_v53  ;;  %v6731_v53 = vor.u32 %v7707_v4, %v6728_v7  ;;  %v6939_v2 = vor.u32 %v7759_v23, %v6936_v25  ;;  %v7855_v61 = vld [vmem:[%s8586_s11 + $0xfec] sm:$0xf]  ;;  %v6904_v4 = vld [vmem:[%s8586_s11 + $0xcb8] sm:$0xf0] }
 0x296   : > { %4625 = vmatpush.bf16.msra.mxu0 %v6363_v21  ;;  %4638 = vmatpush.bf16.msra.mxu1 %v6491_v34  ;;  %v9721_v21 = vadd.f32 %v789_v63, %v787_v42  ;;  %v6315_v34 = vor.u32 %v7603_v9, %v6312_v6  ;;  %v4398_v7 = vpop.f32.mrf.mxu2  ;;  %v6699_v9 = vor.u32 %v7699_v54, %v6696_v57  ;;  %v7851_v20 = vld [vmem:[%s8586_s11 + $0xfcc] sm:$0xf]  ;;  %v6888_v25 = vld [vmem:[%s8586_s11 + $0xc98] sm:$0xf0] }
 0x297   : > { %v7195_v42 = vor.u32 %v7823_v59, %v7192_v51  ;;  %v4411_v14 = vpop.f32.mrf.mxu3  ;;  %v7323_v6 = vor.u32 %v7855_v61, %v7320_v62  ;;  %v7747_v23 = vld [vmem:[%s8586_s11 + $0xc8c] sm:$0xf]  ;;  %v7160_v30 = vld [vmem:[%s8586_s11 + $0xeb8] sm:$0xf0] }
 0x298   : > { %4650 = vmatpush.bf16.msra.mxu2 %v6635_v38  ;;  %v6443_v38 = vor.u32 %v7635_v16, %v6440_v17  ;;  %v4725_v55 = vmul.f32 %v9170_v47, %v9721_v21  ;;  %v7819_v16 = vld [vmem:[%s8586_s11 + $0xecc] sm:$0xf]  ;;  %v7176_v17 = vld [vmem:[%s8586_s11 + $0xed8] sm:$0xf0] }
 0x299   : > { %4663 = vmatpush.bf16.msra.mxu3 %v6763_v40  ;;  %v4410_v40 = vadd.f32 %v4409_v31, %v4397_v32  ;;  %v7179_v27 = vor.u32 %v7819_v16, %v7176_v17  ;;  %v7779_v28 = vld [vmem:[%s8586_s11 + $0xd8c] sm:$0xf]  ;;  %v6891_v32 = vor.u32 %v7747_v23, %v6888_v25  ;;  %v6856_v54 = vld [vmem:[%s8586_s11 + $0xc58] sm:$0xf0] }
 0x29a   : > { %4626 = vmatpush.bf16.msra.mxu0 %v6347_v46  ;;  %4639 = vmatpush.bf16.msra.mxu1 %v6475_v50  ;;  %v7787_v46 = vld [vmem:[%s8586_s11 + $0xdcc] sm:$0xf]  ;;  %v6984_v57 = vld [vmem:[%s8586_s11 + $0xd58] sm:$0xf0] }
 0x29b   : > { %v7667_v50 = vld [vmem:[%s8586_s11 + $0xa0c] sm:$0xf]  ;;  %v7051_v47 = vor.u32 %v7787_v46, %v7048_v48  ;;  %v7112_v14 = vld [vmem:[%s8586_s11 + $0xe58] sm:$0xf0] }
 0x29c   : > { %4651 = vmatpush.bf16.msra.mxu2 %v6619_v56  ;;  %v4729_v56 = vmul.f32 %v4410_v40, %v9723_v33  ;;  %v6571_v0 = vor.u32 %v7667_v50, %v6568_v52  ;;  %v7815_v29 = vld [vmem:[%s8586_s11 + $0xeac] sm:$0xf] }
 0x29d   : > { %4664 = vmatpush.bf16.msra.mxu3 %v6747_v60  ;;  %v6923_v60 = vor.u32 %v7755_v39, %v6920_v45  ;;  %v7847_v31 = vld [vmem:[%s8586_s11 + $0xfac] sm:$0xf] }
 0x29e   : > { %4627 = vmatpush.bf16.msra.mxu0 %v6331_v1  ;;  %4640 = vmatpush.bf16.msra.mxu1 %v6459_v10  ;;  %v4733_v63 = vadd.f32 %v4729_v56, %v4725_v55  ;;  %v7751_v1 = vld [vmem:[%s8586_s11 + $0xcac] sm:$0xf] }
 0x29f   : > { %v7783_v10 = vld [vmem:[%s8586_s11 + $0xdac] sm:$0xf] }
 0x2a0   : > { %4652 = vmatpush.bf16.msra.mxu2 %v6603_v11  ;;  %4737 = vst [vmem:[%s9753_s24] sm:$0xff] %v4733_v63  ;;  %v7304_v11 = vld [vmem:[%s8586_s11 + $0xfd8] sm:$0xf0]  ;;  %v7743_v37 = vld [vmem:[%s8586_s11 + $0xc6c] sm:$0xf] }
 0x2a1   : > { %4665 = vmatpush.bf16.msra.mxu3 %v6731_v53  ;;  %v7016_v53 = vld [vmem:[%s8586_s11 + $0xd98] sm:$0xf0]  ;;  %v7307_v15 = vor.u32 %v7851_v20, %v7304_v11  ;;  %v7775_v39 = vld [vmem:[%s8586_s11 + $0xd6c] sm:$0xf] }
 0x2a2   : > { %4628 = vmatpush.bf16.msra.mxu0 %v6315_v34  ;;  %4641 = vmatpush.bf16.msra.mxu1 %v6443_v38  ;;  %v7288_v34 = vld [vmem:[%s8586_s11 + $0xfb8] sm:$0xf0]  ;;  %v7019_v35 = vor.u32 %v7779_v28, %v7016_v53  ;;  %v9772_v40 = vpop.f32.mrf.mxu0  ;;  %v7843_v48 = vld [vmem:[%s8586_s11 + $0xf8c] sm:$0xf] }
 0x2a3   : > { %v6872_v38 = vld [vmem:[%s8586_s11 + $0xc78] sm:$0xf0]  ;;  %v7739_v52 = vld [vmem:[%s8586_s11 + $0xc4c] sm:$0xf] }
 0x2a4   : > { %4653 = vmatpush.bf16.msra.mxu2 %v6587_v44  ;;  %v7811_v44 = vld [vmem:[%s8586_s11 + $0xe8c] sm:$0xf]  ;;  %v9776_v45 = vpop.f32.mrf.mxu1  ;;  %v6875_v46 = vor.u32 %v7743_v37, %v6872_v38  ;;  %v6859_v61 = vor.u32 %v7739_v52, %v6856_v54  ;;  %v7256_v63 = vld [vmem:[%s8586_s11 + $0xf78] sm:$0xf0] }
 0x2a5   : > { %4666 = vmatpush.bf16.msra.mxu3 %v6715_v49  ;;  %4629 = vmatmul.bf16.vlgmr.msra.gmra.mxu0 %v8765_v3  ;;  %v6907_v3 = vor.u32 %v7751_v1, %v6904_v4  ;;  %v7272_v49 = vld [vmem:[%s8586_s11 + $0xf98] sm:$0xf0]  ;;  %v7771_v56 = vld [vmem:[%s8586_s11 + $0xd4c] sm:$0xf] }
 0x2a6   : > { %4673 = vmatpush.bf16.msrb.mxu0 %v6939_v2  ;;  %4686 = vmatpush.bf16.msrb.mxu1 %v7067_v41  ;;  %v7163_v2 = vor.u32 %v7815_v29, %v7160_v30  ;;  %v7291_v41 = vor.u32 %v7847_v31, %v7288_v34  ;;  %v7275_v59 = vor.u32 %v7843_v48, %v7272_v49  ;;  %v7807_v51 = vld [vmem:[%s8586_s11 + $0xe6c] sm:$0xf]  ;;  %v6840_v1 = vld [vmem:[%s8586_s11 + $0xc38] sm:$0xf0] }
 0x2a7   : > { %4642 = vmatmul.bf16.vlgmr.msra.gmra.mxu1 %v8770_v8  ;;  %v7035_v8 = vor.u32 %v7783_v10, %v7032_v13  ;;  %v7839_v62 = vld [vmem:[%s8586_s11 + $0xf6c] sm:$0xf]  ;;  %v7096_v29 = vld [vmem:[%s8586_s11 + $0xe38] sm:$0xf0] }
 0x2a8   : > { %4654 = vmatpush.bf16.msra.mxu2 %v6571_v0  ;;  %v7735_v0 = vld [vmem:[%s8586_s11 + $0xc2c] sm:$0xf]  ;;  %v7259_v10 = vor.u32 %v7839_v62, %v7256_v63  ;;  %v7224_v34 = vld [vmem:[%s8586_s11 + $0xf38] sm:$0xf0] }
 0x2a9   : > { %4667 = vmatpush.bf16.msra.mxu3 %v6699_v9  ;;  %v7767_v7 = vld [vmem:[%s8586_s11 + $0xd2c] sm:$0xf]  ;;  %v6968_v9 = vld [vmem:[%s8586_s11 + $0xd38] sm:$0xf0]  ;;  %v6843_v16 = vor.u32 %v7735_v0, %v6840_v1 }
 0x2aa   : > { %4674 = vmatpush.bf16.msrb.mxu0 %v6923_v60  ;;  %4687 = vmatpush.bf16.msrb.mxu1 %v7051_v47  ;;  %v7128_v60 = vld [vmem:[%s8586_s11 + $0xe78] sm:$0xf0]  ;;  %v6987_v47 = vor.u32 %v7771_v56, %v6984_v57  ;;  %v7803_v13 = vld [vmem:[%s8586_s11 + $0xe4c] sm:$0xf]  ;;  %v6971_v20 = vor.u32 %v7767_v7, %v6968_v9 }
 0x2ab   : > { %4655 = vmatmul.bf16.vlgmr.msra.gmra.mxu2 %v8785_v36  ;;  %v7000_v36 = vld [vmem:[%s8586_s11 + $0xd78] sm:$0xf0]  ;;  %v7131_v4 = vor.u32 %v7807_v51, %v7128_v60  ;;  %v7835_v17 = vld [vmem:[%s8586_s11 + $0xf4c] sm:$0xf]  ;;  %v7115_v23 = vor.u32 %v7803_v13, %v7112_v14 }
 0x2ac   : > { %4699 = vmatpush.bf16.msrb.mxu2 %v7195_v42  ;;  %4668 = vmatmul.bf16.vlgmr.msra.gmra.mxu3 %v8792_v43  ;;  %v7144_v43 = vld [vmem:[%s8586_s11 + $0xe98] sm:$0xf0]  ;;  %v7003_v50 = vor.u32 %v7775_v39, %v7000_v36  ;;  %v4424_v42 = vpop.f32.mrf.mxu0  ;;  %v7731_v11 = vld [vmem:[%s8586_s11 + $0xc0c] sm:$0xf] }
 0x2ad   : > { %4712 = vmatpush.bf16.msrb.mxu3 %v7323_v6  ;;  %v7147_v55 = vor.u32 %v7811_v44, %v7144_v43  ;;  %v4437_v6 = vpop.f32.mrf.mxu1  ;;  %v7763_v25 = vld [vmem:[%s8586_s11 + $0xd0c] sm:$0xf]  ;;  %v7080_v39 = vld [vmem:[%s8586_s11 + $0xe18] sm:$0xf0]  ;;  %v3022_v43 = vperm.slane %v9643_v22, 1 }
 0x2ae   : > { %4675 = vmatpush.bf16.msrb.mxu0 %v6907_v3  ;;  %4688 = vmatpush.bf16.msrb.mxu1 %v7035_v8  ;;  %v7240_v3 = vld [vmem:[%s8586_s11 + $0xf58] sm:$0xf0]  ;;  %v4448_v28 = vpop.f32.mrf.mxu2  ;;  %v7831_v31 = vld [vmem:[%s8586_s11 + $0xf2c] sm:$0xf] }
 0x2af   : > { %v6824_v8 = vld [vmem:[%s8586_s11 + $0xc18] sm:$0xf0]  ;;  %v7243_v53 = vor.u32 %v7835_v17, %v7240_v3  ;;  %v4461_v30 = vpop.f32.mrf.mxu3  ;;  %v7227_v38 = vor.u32 %v7831_v31, %v7224_v34  ;;  %v7827_v36 = vld [vmem:[%s8586_s11 + $0xf0c] sm:$0xf] }
 0x2b0   : > { %4700 = vmatpush.bf16.msrb.mxu2 %v7179_v27  ;;  %v6952_v27 = vld [vmem:[%s8586_s11 + $0xd18] sm:$0xf0] }
 0x2b1   : > { %4713 = vmatpush.bf16.msrb.mxu3 %v7307_v15  ;;  %v7799_v15 = vld [vmem:[%s8586_s11 + $0xe2c] sm:$0xf] }
 0x2b2   : > { %4676 = vmatpush.bf16.msrb.mxu0 %v6891_v32  ;;  %4689 = vmatpush.bf16.msrb.mxu1 %v7019_v35  ;;  %v6827_v32 = vor.u32 %v7731_v11, %v6824_v8  ;;  %v6955_v35 = vor.u32 %v7763_v25, %v6952_v27  ;;  %v7099_v37 = vor.u32 %v7799_v15, %v7096_v29 }
 0x2b3   : > { %v4727_v29 = vmul.f32 %v9422_v12, %v9721_v21 }
 0x2b4   : > { %4701 = vmatpush.bf16.msrb.mxu2 %v7163_v2  ;;  %v7795_v2 = vld [vmem:[%s8586_s11 + $0xe0c] sm:$0xf] }
 0x2b5   : > { %4714 = vmatpush.bf16.msrb.mxu3 %v7291_v41  ;;  %v7208_v41 = vld [vmem:[%s8586_s11 + $0xf18] sm:$0xf0]  ;;  %v7083_v44 = vor.u32 %v7795_v2, %v7080_v39 }
 0x2b6   : > { %4677 = vmatpush.bf16.msrb.mxu0 %v6875_v46  ;;  %4690 = vmatpush.bf16.msrb.mxu1 %v7003_v50  ;;  %v4450_v46 = vpop.f32.mrf.mxu2  ;;  %v7211_v48 = vor.u32 %v7827_v36, %v7208_v41  ;;  %v4423_v50 = vadd.f32 %v9772_v40, %v3022_v43  ;;  %v3024_v41 = vperm.slane %v9643_v22, 3 }
 0x2b7   : > { %v4463_v49 = vpop.f32.mrf.mxu3 }
 0x2b8   : > { %4702 = vmatpush.bf16.msrb.mxu2 %v7147_v55  ;;  %v4436_v52 = vadd.f32 %v9776_v45, %v4423_v50 }
 0x2b9   : > { %4715 = vmatpush.bf16.msrb.mxu3 %v7275_v59 }
 0x2ba   : > { %4678 = vmatpush.bf16.msrb.mxu0 %v6859_v61  ;;  %4691 = vmatpush.bf16.msrb.mxu1 %v6987_v47  ;;  %v4449_v55 = vadd.f32 %v4448_v28, %v4436_v52 }
 0x2bc   : > { %4703 = vmatpush.bf16.msrb.mxu2 %v7131_v4  ;;  %v4462_v57 = vadd.f32 %v4461_v30, %v4449_v55 }
 0x2bd   : > { %4716 = vmatpush.bf16.msrb.mxu3 %v7259_v10  ;;  %v3023_v10 = vperm.slane %v9643_v22, 2 }
 0x2be   : > { %4679 = vmatpush.bf16.msrb.mxu0 %v6843_v16  ;;  %4692 = vmatpush.bf16.msrb.mxu1 %v6971_v20 }
 0x2c0   : > { %4704 = vmatpush.bf16.msrb.mxu2 %v7115_v23 }
 0x2c1   : > { %4717 = vmatpush.bf16.msrb.mxu3 %v7243_v53 }
 0x2c2   : > { %4680 = vmatpush.bf16.msrb.mxu0 %v6827_v32  ;;  %4693 = vmatpush.bf16.msrb.mxu1 %v6955_v35  ;;  %v4474_v54 = vpop.f32.mrf.mxu0 }
 0x2c4   : > { %4705 = vmatpush.bf16.msrb.mxu2 %v7099_v37  ;;  %v4487_v56 = vpop.f32.mrf.mxu1 }
 0x2c5   : > { %4718 = vmatpush.bf16.msrb.mxu3 %v7227_v38  ;;  %4681 = vmatmul.bf16.vlgmr.msrb.gmra.mxu0 %v8817_v18  ;;  %v4475_v18 = vadd.f32 %v4474_v54, %v4462_v57 }
 0x2c6   : > { %4694 = vmatmul.bf16.vlgmr.msrb.gmra.mxu1 %v8822_v24 }
 0x2c7   : > { %v4488_v60 = vadd.f32 %v4487_v56, %v4475_v18 }
 0x2c8   : > { %4706 = vmatpush.bf16.msrb.mxu2 %v7083_v44 }
 0x2c9   : > { %4719 = vmatpush.bf16.msrb.mxu3 %v7211_v48 }
 0x2ca   : > { %v4476_v59 = vpop.f32.mrf.mxu0 }
 0x2cb   : > { %4707 = vmatmul.bf16.vlgmr.msrb.gmra.mxu2 %v8837_v26  ;;  %v4726_v26 = vmul.f32 %v9278_v5, %v9721_v21 }
 0x2cc   : > { %4720 = vmatmul.bf16.vlgmr.msrb.gmra.mxu3 %v8842_v58  ;;  %v4489_v51 = vpop.f32.mrf.mxu1 }
 0x2ce   : > { %v4500_v24 = vpop.f32.mrf.mxu2 }
 0x2cf   : > { %v4501_v61 = vadd.f32 %v4500_v24, %v4488_v60  ;;  %v4513_v62 = vpop.f32.mrf.mxu3  ;;  %v4728_v60 = vmul.f32 %v9564_v19, %v9721_v21 }
 0x2d1   : > { %v4514_v40 = vadd.f32 %v4513_v62, %v4501_v61 }
 0x2d3   : > { %v4730_v58 = vmul.f32 %v4514_v40, %v9723_v33 }
 0x2d5   : > { %v4734_v63 = vadd.f32 %v4730_v58, %v4726_v26 }
 0x2d6   : > { %v4502_v45 = vpop.f32.mrf.mxu2 }
 0x2d7   : > { %4738 = vst [vmem:[%s9753_s24 + $0x8] sm:$0xff] %v4734_v63  ;;  %v4515_v47 = vpop.f32.mrf.mxu3 }
 0x2e2   : > { %v4526_v0 = vpop.f32.mrf.mxu0 }
 0x2e3   : > { %v4527_v6 = vadd.f32 %v4526_v0, %v3023_v10 }
 0x2e4   : > { %v4539_v1 = vpop.f32.mrf.mxu1 }
 0x2e5   : > { %v4540_v16 = vadd.f32 %v4539_v1, %v4527_v6 }
 0x2ea   : > { %v4528_v4 = vpop.f32.mrf.mxu0 }
 0x2ec   : > { %v4541_v7 = vpop.f32.mrf.mxu1 }
 0x2ee   : > { %v4552_v9 = vpop.f32.mrf.mxu2 }
 0x2ef   : > { %v4565_v42 = vpop.f32.mrf.mxu3  ;;  %v4553_v5 = vadd.f32 %v4552_v9, %v4540_v16 }
 0x2f1   : > { %v4566_v20 = vadd.f32 %v4565_v42, %v4553_v5 }
 0x2f6   : > { %v4554_v13 = vpop.f32.mrf.mxu2 }
 0x2f7   : > { %v4567_v14 = vpop.f32.mrf.mxu3 }
 0x302   : > { %v4578_v17 = vpop.f32.mrf.mxu0 }
 0x303   : > { %v4579_v11 = vadd.f32 %v4578_v17, %v4566_v20 }
 0x304   : > { %v4591_v3 = vpop.f32.mrf.mxu1 }
 0x305   : > { %v4592_v25 = vadd.f32 %v4591_v3, %v4579_v11 }
 0x30a   : > { %v4580_v8 = vpop.f32.mrf.mxu0 }
 0x30c   : > { %v4593_v23 = vpop.f32.mrf.mxu1 }
 0x30e   : > { %v4604_v27 = vpop.f32.mrf.mxu2 }
 0x30f   : > { %v4605_v28 = vadd.f32 %v4604_v27, %v4592_v25  ;;  %v4617_v53 = vpop.f32.mrf.mxu3 }
 0x311   : > { %v4618_v15 = vadd.f32 %v4617_v53, %v4605_v28 }
 0x313   : > { %v4731_v30 = vmul.f32 %v4618_v15, %v9723_v33 }
 0x315   : > { %v4735_v32 = vadd.f32 %v4731_v30, %v4727_v29 }
 0x316   : > { %v4606_v31 = vpop.f32.mrf.mxu2 }
 0x317   : > { %4739 = vst [vmem:[%s9753_s24 + $0x10] sm:$0xff] %v4735_v32  ;;  %v4619_v34 = vpop.f32.mrf.mxu3 }
 0x322   : > { %v4630_v35 = vpop.f32.mrf.mxu0 }
 0x323   : > { %v4631_v46 = vadd.f32 %v4630_v35, %v3024_v41 }
 0x324   : > { %v4643_v37 = vpop.f32.mrf.mxu1 }
 0x325   : > { %v4644_v12 = vadd.f32 %v4643_v37, %v4631_v46 }
 0x32a   : > { %v4632_v38 = vpop.f32.mrf.mxu0 }
 0x32c   : > { %v4645_v2 = vpop.f32.mrf.mxu1 }
 0x32e   : > { %v4656_v39 = vpop.f32.mrf.mxu2 }
 0x32f   : > { %v4669_v36 = vpop.f32.mrf.mxu3  ;;  %v4657_v49 = vadd.f32 %v4656_v39, %v4644_v12 }
 0x331   : > { %v4670_v52 = vadd.f32 %v4669_v36, %v4657_v49 }
 0x336   : > { %v4658_v44 = vpop.f32.mrf.mxu2 }
 0x337   : > { %v4671_v43 = vpop.f32.mrf.mxu3 }
 0x342   : > { %v4682_v48 = vpop.f32.mrf.mxu0 }
 0x343   : > { %v4695_v50 = vpop.f32.mrf.mxu1  ;;  %v4683_v54 = vadd.f32 %v4682_v48, %v4670_v52 }
 0x345   : > { %v4696_v57 = vadd.f32 %v4695_v50, %v4683_v54 }
 0x34a   : > { %v4684_v55 = vpop.f32.mrf.mxu0 }
 0x34b   : > { %v4697_v56 = vpop.f32.mrf.mxu1 }
 0x34e   : > { %v4708_v18 = vpop.f32.mrf.mxu2 }
 0x34f   : > { %v4709_v59 = vadd.f32 %v4708_v18, %v4696_v57  ;;  %v4721_v51 = vpop.f32.mrf.mxu3 }
 0x351   : > { %v4722_v22 = vadd.f32 %v4721_v51, %v4709_v59 }
 0x353   : > { %v4732_v24 = vmul.f32 %v4722_v22, %v9723_v33 }
 0x355   : > { %v4736_v61 = vadd.f32 %v4732_v24, %v4728_v60 }
 0x356   : > { %v4710_v62 = vpop.f32.mrf.mxu2 }
 0x357   : > { %4740 = vst [vmem:[%s9753_s24 + $0x18] sm:$0xff] %v4736_v61  ;;  %v4723_v40 = vpop.f32.mrf.mxu3 }
 0x358   : > { %8277 = shalt.err (!%p8274_p3)
}
 0x359   : > { %7891 = dma.vmem_to_hbm [thread:$0]  (%p8487_p4), %s4756_s18, 512, %s4758_s6, %s4742_s20  }
 0x35a PF: > { %s9917_s28 = sld [smem:[#allocation26_spill]]  ;;  %p9919_p8 = scmp.ge.s32.totalorder %s8336_s16, 2 }
 0x35c   : > { %p7923_p9 = pnand %p9919_p8, %p8491_p7 }
 0x35e   : > { %p7924_p6 = pneg %p7923_p9 }
 0x360   : > { %s4769_s25 = sand.u32 1, %s9917_s28  }
 0x361   : > { %s4770_s10 = scalar_lea.sflag [#allocation4], %s4769_s25 }
 0x362   : > { %8319 = dma.done.wait (%p7924_p6), %s4770_s10, 512  }
 0x363   : > { %8321 = vsyncadd (%p7924_p6), %s4770_s10, 4294966784  ;;  %s9920_s16 = sld [smem:[#allocation28_spill]]  ;;  %s9923_s13 = smov %s8328_s14 }
 0x364   : > { %s9921_s29 = sld [smem:[#allocation27_spill]] }
 0x365   : > { %s9922_s15 = sld [smem:[#allocation29_spill]] }
 0x369   : > { %p28_p13 = scmp.ge.s32.totalorder %s9920_s16, 4  }
 0x36a   : > { %s9924_s14 = smov %s9921_s29 }
 0x36b   :  { %30 = sbr.rel (!%p28_p13) target bundleno = 15 (0xf), region = 148 }
 0x370   :  { %4776 = vsyncpa [#allocation3], 1 }
 0x371   :  { %4778 = vsyncpa [#allocation3 + $0x1], 1 }
 0x372   :  { %4779 = vsyncpa [#allocation7], 1 }
 0x373   :  { %4780 = vsyncpa [#allocation10], 1 }
 0x374   :  { %4782 = vsyncpa [#allocation10 + $0x1], 1 }
 0x375   :  { %4783 = vsyncpa [#allocation13], 1 }
 0x376   :  { %4784 = vsyncpa [#allocation16], 1 }
 0x377   :  { %4785 = vsyncpa [#allocation4], 1 }
 0x378   :  { %4787 = vsyncpa [#allocation4 + $0x1], 1 }
 0x379   :  { %4788 = vsyncpa [#allocation5], 1 }
 0x37a   :  { %4790 = vsyncpa [#allocation5 + $0x1], 1 }

</bundles_post_ra>
